<compile_context>
chip_gen: v7x
topology: tpu7x:2x2x1
jax: 0.10.0
libtpu: 0.0.40
codegen_flags: <defaults>
</compile_context>

<pallas_src>
import functools

import jax
import jax.numpy as jnp
from jax import lax
from jax.experimental import pallas as pl
from jax.experimental.pallas import tpu as pltpu


# ----------------------------- GELU (erf-based) -----------------------------
def _erf_approx(z):
    # Abramowitz & Stegun 7.1.26 rational approximation, |abs err| <= 1.5e-7.
    # Matches torch.nn.GELU()'s exact-erf GELU far below the test tolerance.
    a1, a2, a3 = 0.254829592, -0.284496736, 1.421413741
    a4, a5, pp = -1.453152027, 1.061405429, 0.3275911
    az = jnp.abs(z)
    # approx reciprocal -> EUP slot (near-free); ~1e-4 rel err is negligible.
    t = pl.reciprocal(1.0 + pp * az, approx=True)
    poly = ((((a5 * t + a4) * t + a3) * t + a2) * t + a1) * t
    y = 1.0 - poly * jnp.exp(-az * az)
    return jnp.where(z >= 0.0, y, -y)


def _gelu_erf(v):
    return 0.5 * v * (1.0 + _erf_approx(v * 0.7071067811865476))


# --------------------------------- kernel -----------------------------------
def _safm_kernel(coord_ref, x_ref, at_ref, mask_ref, ab_ref, o_ref,
                 *, n_levels, cd, H, W):
    HW = H * W
    dim = n_levels * cd
    kmax = 2 ** (n_levels - 1)

    hh = coord_ref[0:1, :]                      # (1, HW) int32 : flat -> row h
    ww = coord_ref[1:2, :]                      # (1, HW) int32 : flat -> col w

    # Parity masks for the block-max butterfly, hoisted across levels.
    par_h, par_w = {}, {}
    b = 1
    while b < kmax:
        par_h[b] = (hh & b) == 0
        par_w[b] = (ww & b) == 0
        b *= 2

    def rot(v, s):
        # ret[:, j] = v[:, (j + s) % HW]   (jnp.roll(v, -s) semantics).
        # Wrapped entries are never selected: the parity masks keep butterfly
        # partners inside their own k-block, and the {0,1} border masks zero
        # every out-of-image conv tap.  One XLU rotate, no VMEM round-trip.
        a = (-s) % HW
        if a == 0:
            return v
        return pltpu.roll(v, shift=a, axis=1)

    # f32 accumulator for the (folded) aggr output; bias added at the end.
    agg = jnp.zeros((dim, HW), jnp.float32)

    for i in range(n_levels):
        k = 2 ** i
        lo = i * cd
        # Butterfly stays f32 (exact for max/select; also v5e has no bf16 VPU).
        p = x_ref[0, lo:lo + cd, :].astype(jnp.float32)          # (cd, HW)

        # ---- adaptive_max_pool2d(k x k) as a block-constant max map ---------
        b = 1
        while b < k:                                             # along W
            p = jnp.maximum(p, jnp.where(par_w[b], rot(p, b), rot(p, -b)))
            b *= 2
        b = 1
        while b < k:                                             # along H
            p = jnp.maximum(p, jnp.where(par_h[b], rot(p, b * W),
                                         rot(p, -b * W)))
            b *= 2

        # ---- depthwise 3x3 @ pooled scale + nearest upsample, folded into ---
        # ---- per-tap slices of the aggr matrix -> MXU matmuls ---------------
        # TODO(synk): for large k at production H, W, compute this level at
        # pooled resolution and repeat-expand instead of the k^2-redundant
        # full-resolution formulation.
        for dy in (-1, 0, 1):
            for dx in (-1, 0, 1):
                t = (dy + 1) * 3 + (dx + 1)
                it = i * 9 + t
                tap = rot(p, dy * k * W + dx * k)                # (cd, HW) f32
                if dy != 0 or dx != 0:
                    tap = tap * mask_ref[it:it + 1, :]           # {0,1} border
                agg = agg + jnp.dot(at_ref[it],                  # (dim, cd) bf16
                                    tap.astype(jnp.bfloat16),    # (cd, HW) bf16
                                    preferred_element_type=jnp.float32)

    agg = agg + ab_ref[...]      # aggr bias (+ exactly-folded depthwise bias)

    # ---- GELU(out) * x modulation, in sublane-aligned row chunks ------------
    rc = 8 if dim % 8 == 0 else dim
    for r in range(0, dim, rc):
        xin = x_ref[0, r:r + rc, :].astype(jnp.float32)
        o_ref[0, r:r + rc, :] = (
            _gelu_erf(agg[r:r + rc, :]) * xin).astype(o_ref.dtype)


# -------------------------------- wrapper ------------------------------------
def safm_pallas(x, dw_w, dw_b, aggr_w, aggr_b, n_levels):
    N, dim, H, W = x.shape
    assert dim % n_levels == 0, "dim must be divisible by n_levels"
    cd = dim // n_levels
    kmax = 2 ** (n_levels - 1)
    assert H % kmax == 0 and W % kmax == 0, \
        "H, W must be divisible by 2**(n_levels-1)"
    HW = H * W

    # Lane-dense layout: flatten the spatial dims (free reshape in XLA).
    x_flat = x.reshape(N, dim, HW)

    aw = aggr_w.astype(jnp.float32).reshape(dim, dim)
    dww = dw_w.astype(jnp.float32).reshape(dim, 9)             # per-channel taps
    # Fold the spatially-constant depthwise bias into the aggr bias (exact):
    #   aggr(cat + dwb) = aggr(cat) + aw @ dwb
    dwb = dw_b.astype(jnp.float32).reshape(dim)
    ab_eff = (aggr_b.astype(jnp.float32).reshape(dim) + aw @ dwb).reshape(dim, 1)

    # Fold the depthwise tap weights into per-(level, tap) slices of the aggr
    # matrix:  at[i*9+t] = aw[:, lo:lo+cd] * dww[lo:lo+cd, t]   (column scale).
    at_list = []
    for i in range(n_levels):
        lo = i * cd
        aw_i = aw[:, lo:lo + cd]                               # (dim, cd)
        for t in range(9):
            at_list.append(aw_i * dww[lo:lo + cd, t][None, :])
    at = jnp.stack(at_list, axis=0).astype(jnp.bfloat16)       # (L*9, dim, cd)

    # {0,1} zero-padding border masks per (level, tap), flattened spatially.
    idx = jnp.arange(HW, dtype=jnp.int32)
    hh = idx // W
    ww = idx % W
    mask_list = []
    for i in range(n_levels):
        k = 2 ** i
        for dy in (-1, 0, 1):
            mh = (hh >= k) if dy < 0 else ((hh < H - k) if dy > 0 else None)
            for dx in (-1, 0, 1):
                mw = (ww >= k) if dx < 0 else ((ww < W - k) if dx > 0 else None)
                m = jnp.ones((HW,), jnp.bool_)
                if mh is not None:
                    m = jnp.logical_and(m, mh)
                if mw is not None:
                    m = jnp.logical_and(m, mw)
                mask_list.append(m.astype(jnp.float32))
    masks = jnp.stack(mask_list, axis=0)                       # (L*9, HW)

    coords = jnp.stack([hh, ww], axis=0)                       # (2, HW) int32

    kernel = functools.partial(_safm_kernel, n_levels=n_levels, cd=cd, H=H, W=W)
    out = pl.pallas_call(
        kernel,
        out_shape=jax.ShapeDtypeStruct((N, dim, HW), x.dtype),
        grid_spec=pltpu.PrefetchScalarGridSpec(
            num_scalar_prefetch=0,
            grid=(N,),                                         # one batch / step
            in_specs=[
                pl.BlockSpec((2, HW), lambda n: (0, 0)),       # (h, w) lookup
                pl.BlockSpec((1, dim, HW), lambda n: (n, 0, 0)),
                pl.BlockSpec((n_levels * 9, dim, cd), lambda n: (0, 0, 0)),
                pl.BlockSpec((n_levels * 9, HW), lambda n: (0, 0)),
                pl.BlockSpec((dim, 1), lambda n: (0, 0)),      # folded bias
            ],
            out_specs=pl.BlockSpec((1, dim, HW), lambda n: (n, 0, 0)),
        ),
        compiler_params=pltpu.CompilerParams(
            dimension_semantics=("parallel",)),
    )(coords, x_flat, at, masks, ab_eff)
    return out.reshape(N, dim, H, W)


# ---------------------- pure-JAX reference (for checking) --------------------
def safm_reference(x, dw_w, dw_b, aggr_w, aggr_b, n_levels):
    N, dim, H, W = x.shape
    cd = dim // n_levels
    outs = []
    for i in range(n_levels):
        k = 2 ** i
        xi = x[:, i * cd:(i + 1) * cd]
        if k > 1:
            s = lax.reduce_window(xi, -jnp.inf, lax.max,
                                  (1, 1, k, k), (1, 1, k, k), 'VALID')
        else:
            s = xi
        w = dw_w[i].reshape(cd, 1, 3, 3)
        s = lax.conv_general_dilated(
            s, w, window_strides=(1, 1), padding=((1, 1), (1, 1)),
            dimension_numbers=('NCHW', 'OIHW', 'NCHW'), feature_group_count=cd)
        s = s + dw_b[i].reshape(1, cd, 1, 1)
        if k > 1:
            s = jnp.repeat(jnp.repeat(s, k, axis=2), k, axis=3)
        outs.append(s)
    cat = jnp.concatenate(outs, axis=1)
    agg = jnp.einsum('oc,nchw->nohw', aggr_w, cat) + aggr_b.reshape(1, dim, 1, 1)
    return jax.nn.gelu(agg, approximate=False) * x


# ----------------------------------- main ------------------------------------
if __name__ == "__main__":
    N, DIM, H, W = 2, 32, 16, 16
    N_LEVELS = 4
    CD = DIM // N_LEVELS

    key = jax.random.PRNGKey(0)
    kx, k1, k2, k3, k4 = jax.random.split(key, 5)
    x = jax.random.normal(kx, (N, DIM, H, W), jnp.float32)
    # deterministic synthetic parameters (shapes per the module's __init__)
    dw_w = jax.random.normal(k1, (N_LEVELS, CD, 3, 3), jnp.float32) * 0.25
    dw_b = jax.random.normal(k2, (N_LEVELS, CD), jnp.float32) * 0.1
    aggr_w = jax.random.normal(k3, (DIM, DIM), jnp.float32) * 0.1
    aggr_b = jax.random.normal(k4, (DIM,), jnp.float32) * 0.1

    y = safm_pallas(x, dw_w, dw_b, aggr_w, aggr_b, N_LEVELS)
    y = jax.block_until_ready(y)

    y_ref = safm_reference(x, dw_w, dw_b, aggr_w, aggr_b, N_LEVELS)
    diff = y - y_ref
    abs_err = float(jnp.max(jnp.abs(diff)))
    rel_err = float(jnp.linalg.norm(diff.ravel()) /
                    jnp.linalg.norm(y_ref.ravel()))
    assert y.shape == (N, DIM, H, W)
    # The kernel now runs its matmuls as a single bf16 MXU pass with f32
    # accumulation (per the perf review), so the match against the full-f32
    # reference is ~3e-3 relative / ~1e-2-level worst-case absolute at these
    # magnitudes.  Structural bugs (wrong roll direction, wrong border masks,
    # wrong weight fold) produce O(1)+ errors, so these bounds remain a real
    # correctness check.
    assert rel_err < 2e-2 and abs_err < 1e-1, \
        f"mismatch vs reference: rel={rel_err}, max abs={abs_err}"
    print("KERNEL_OK")
</pallas_src>

<mosaic_0001>
module attributes {stable_mosaic.version = 11 : i64} {
  func.func @_safm_kernel(%arg0: i32, %arg1: memref<2x256xi32, #tpu.memory_space<vmem>>, %arg2: memref<1x32x256xf32, #tpu.memory_space<vmem>>, %arg3: memref<36x32x8xbf16, #tpu.memory_space<vmem>>, %arg4: memref<36x256xf32, #tpu.memory_space<vmem>>, %arg5: memref<32x1xf32, #tpu.memory_space<vmem>>, %arg6: memref<1x32x256xf32, #tpu.memory_space<vmem>>) attributes {dimension_semantics = [#tpu.dimension_semantics<parallel>], iteration_bounds = array<i64: 2>, scalar_prefetch = 0 : i64, scratch_operands = 0 : i64, tpu.core_type = #tpu.core_type<tc>, window_params = [{pipeline_mode = #tpu.pipeline_mode<synchronous>, transform_indices = @transform_0, window_bounds = array<i64: 2, 256>}, {transform_indices = @transform_1, window_bounds = array<i64: 1, 32, 256>}, {pipeline_mode = #tpu.pipeline_mode<synchronous>, transform_indices = @transform_2, window_bounds = array<i64: 36, 32, 8>}, {pipeline_mode = #tpu.pipeline_mode<synchronous>, transform_indices = @transform_3, window_bounds = array<i64: 36, 256>}, {pipeline_mode = #tpu.pipeline_mode<synchronous>, transform_indices = @transform_4, window_bounds = array<i64: 32, 1>}, {transform_indices = @transform_5, window_bounds = array<i64: 1, 32, 256>}]} {
    %c0 = arith.constant 0 : index
    %c0_0 = arith.constant 0 : index
    %0 = vector.load %arg1[%c0, %c0_0] : memref<2x256xi32, #tpu.memory_space<vmem>>, vector<1x256xi32>
    %c1 = arith.constant 1 : index
    %c0_1 = arith.constant 0 : index
    %1 = vector.load %arg1[%c1, %c0_1] : memref<2x256xi32, #tpu.memory_space<vmem>>, vector<1x256xi32>
    %c1_i32 = arith.constant 1 : i32
    %2 = vector.broadcast %c1_i32 : i32 to vector<1x256xi32>
    %3 = arith.andi %0, %2 : vector<1x256xi32>
    %c0_i32 = arith.constant 0 : i32
    %4 = vector.broadcast %c0_i32 : i32 to vector<1x256xi32>
    %5 = arith.cmpi eq, %3, %4 : vector<1x256xi32>
    %c1_i32_2 = arith.constant 1 : i32
    %6 = vector.broadcast %c1_i32_2 : i32 to vector<1x256xi32>
    %7 = arith.andi %1, %6 : vector<1x256xi32>
    %c0_i32_3 = arith.constant 0 : i32
    %8 = vector.broadcast %c0_i32_3 : i32 to vector<1x256xi32>
    %9 = arith.cmpi eq, %7, %8 : vector<1x256xi32>
    %c2_i32 = arith.constant 2 : i32
    %10 = vector.broadcast %c2_i32 : i32 to vector<1x256xi32>
    %11 = arith.andi %0, %10 : vector<1x256xi32>
    %c0_i32_4 = arith.constant 0 : i32
    %12 = vector.broadcast %c0_i32_4 : i32 to vector<1x256xi32>
    %13 = arith.cmpi eq, %11, %12 : vector<1x256xi32>
    %c2_i32_5 = arith.constant 2 : i32
    %14 = vector.broadcast %c2_i32_5 : i32 to vector<1x256xi32>
    %15 = arith.andi %1, %14 : vector<1x256xi32>
    %c0_i32_6 = arith.constant 0 : i32
    %16 = vector.broadcast %c0_i32_6 : i32 to vector<1x256xi32>
    %17 = arith.cmpi eq, %15, %16 : vector<1x256xi32>
    %c4_i32 = arith.constant 4 : i32
    %18 = vector.broadcast %c4_i32 : i32 to vector<1x256xi32>
    %19 = arith.andi %0, %18 : vector<1x256xi32>
    %c0_i32_7 = arith.constant 0 : i32
    %20 = vector.broadcast %c0_i32_7 : i32 to vector<1x256xi32>
    %21 = arith.cmpi eq, %19, %20 : vector<1x256xi32>
    %c4_i32_8 = arith.constant 4 : i32
    %22 = vector.broadcast %c4_i32_8 : i32 to vector<1x256xi32>
    %23 = arith.andi %1, %22 : vector<1x256xi32>
    %c0_i32_9 = arith.constant 0 : i32
    %24 = vector.broadcast %c0_i32_9 : i32 to vector<1x256xi32>
    %25 = arith.cmpi eq, %23, %24 : vector<1x256xi32>
    %cst = arith.constant 0.000000e+00 : f32
    %26 = vector.broadcast %cst : f32 to vector<32x256xf32>
    %c0_10 = arith.constant 0 : index
    %c0_11 = arith.constant 0 : index
    %c0_12 = arith.constant 0 : index
    %27 = vector.load %arg2[%c0_10, %c0_11, %c0_12] : memref<1x32x256xf32, #tpu.memory_space<vmem>>, vector<1x8x256xf32>
    %28 = vector.shape_cast %27 : vector<1x8x256xf32> to vector<8x256xf32>
    %c17_i32 = arith.constant 17 : i32
    %29 = tpu.dynamic_rotate %28 by %c17_i32 dim 1 : vector<8x256xf32>, i32 -> vector<8x256xf32>
    %c0_13 = arith.constant 0 : index
    %c0_14 = arith.constant 0 : index
    %30 = vector.load %arg4[%c0_13, %c0_14] : memref<36x256xf32, #tpu.memory_space<vmem>>, vector<1x256xf32>
    %31 = vector.broadcast %30 : vector<1x256xf32> to vector<8x256xf32>
    %32 = arith.mulf %29, %31 : vector<8x256xf32>
    %c0_15 = arith.constant 0 : index
    %c0_16 = arith.constant 0 : index
    %c0_17 = arith.constant 0 : index
    %33 = vector.load %arg3[%c0_15, %c0_16, %c0_17] : memref<36x32x8xbf16, #tpu.memory_space<vmem>>, vector<1x32x8xbf16>
    %34 = vector.shape_cast %33 : vector<1x32x8xbf16> to vector<32x8xbf16>
    %35 = arith.truncf %32 : vector<8x256xf32> to vector<8x256xbf16>
    %cst_18 = arith.constant dense<0.000000e+00> : vector<32x256xf32>
    %36 = tpu.matmul %34, %35, %cst_18 {dimension_numbers = #tpu.dot_dimension_numbers<[1], [0], [0], [1], [0, 0, 1, 1], [], []>} : vector<32x8xbf16>, vector<8x256xbf16>, vector<32x256xf32> -> vector<32x256xf32>
    %37 = arith.addf %26, %36 : vector<32x256xf32>
    %c16_i32 = arith.constant 16 : i32
    %38 = tpu.dynamic_rotate %28 by %c16_i32 dim 1 : vector<8x256xf32>, i32 -> vector<8x256xf32>
    %c1_19 = arith.constant 1 : index
    %c0_20 = arith.constant 0 : index
    %39 = vector.load %arg4[%c1_19, %c0_20] : memref<36x256xf32, #tpu.memory_space<vmem>>, vector<1x256xf32>
    %40 = vector.broadcast %39 : vector<1x256xf32> to vector<8x256xf32>
    %41 = arith.mulf %38, %40 : vector<8x256xf32>
    %c1_21 = arith.constant 1 : index
    %c0_22 = arith.constant 0 : index
    %c0_23 = arith.constant 0 : index
    %42 = vector.load %arg3[%c1_21, %c0_22, %c0_23] : memref<36x32x8xbf16, #tpu.memory_space<vmem>>, vector<1x32x8xbf16>
    %43 = vector.shape_cast %42 : vector<1x32x8xbf16> to vector<32x8xbf16>
    %44 = arith.truncf %41 : vector<8x256xf32> to vector<8x256xbf16>
    %cst_24 = arith.constant dense<0.000000e+00> : vector<32x256xf32>
    %45 = tpu.matmul %43, %44, %cst_24 {dimension_numbers = #tpu.dot_dimension_numbers<[1], [0], [0], [1], [0, 0, 1, 1], [], []>} : vector<32x8xbf16>, vector<8x256xbf16>, vector<32x256xf32> -> vector<32x256xf32>
    %46 = arith.addf %37, %45 : vector<32x256xf32>
    %c15_i32 = arith.constant 15 : i32
    %47 = tpu.dynamic_rotate %28 by %c15_i32 dim 1 : vector<8x256xf32>, i32 -> vector<8x256xf32>
    %c2 = arith.constant 2 : index
    %c0_25 = arith.constant 0 : index
    %48 = vector.load %arg4[%c2, %c0_25] : memref<36x256xf32, #tpu.memory_space<vmem>>, vector<1x256xf32>
    %49 = vector.broadcast %48 : vector<1x256xf32> to vector<8x256xf32>
    %50 = arith.mulf %47, %49 : vector<8x256xf32>
    %c2_26 = arith.constant 2 : index
    %c0_27 = arith.constant 0 : index
    %c0_28 = arith.constant 0 : index
    %51 = vector.load %arg3[%c2_26, %c0_27, %c0_28] : memref<36x32x8xbf16, #tpu.memory_space<vmem>>, vector<1x32x8xbf16>
    %52 = vector.shape_cast %51 : vector<1x32x8xbf16> to vector<32x8xbf16>
    %53 = arith.truncf %50 : vector<8x256xf32> to vector<8x256xbf16>
    %cst_29 = arith.constant dense<0.000000e+00> : vector<32x256xf32>
    %54 = tpu.matmul %52, %53, %cst_29 {dimension_numbers = #tpu.dot_dimension_numbers<[1], [0], [0], [1], [0, 0, 1, 1], [], []>} : vector<32x8xbf16>, vector<8x256xbf16>, vector<32x256xf32> -> vector<32x256xf32>
    %55 = arith.addf %46, %54 : vector<32x256xf32>
    %c1_i32_30 = arith.constant 1 : i32
    %56 = tpu.dynamic_rotate %28 by %c1_i32_30 dim 1 : vector<8x256xf32>, i32 -> vector<8x256xf32>
    %c3 = arith.constant 3 : index
    %c0_31 = arith.constant 0 : index
    %57 = vector.load %arg4[%c3, %c0_31] : memref<36x256xf32, #tpu.memory_space<vmem>>, vector<1x256xf32>
    %58 = vector.broadcast %57 : vector<1x256xf32> to vector<8x256xf32>
    %59 = arith.mulf %56, %58 : vector<8x256xf32>
    %c3_32 = arith.constant 3 : index
    %c0_33 = arith.constant 0 : index
    %c0_34 = arith.constant 0 : index
    %60 = vector.load %arg3[%c3_32, %c0_33, %c0_34] : memref<36x32x8xbf16, #tpu.memory_space<vmem>>, vector<1x32x8xbf16>
    %61 = vector.shape_cast %60 : vector<1x32x8xbf16> to vector<32x8xbf16>
    %62 = arith.truncf %59 : vector<8x256xf32> to vector<8x256xbf16>
    %cst_35 = arith.constant dense<0.000000e+00> : vector<32x256xf32>
    %63 = tpu.matmul %61, %62, %cst_35 {dimension_numbers = #tpu.dot_dimension_numbers<[1], [0], [0], [1], [0, 0, 1, 1], [], []>} : vector<32x8xbf16>, vector<8x256xbf16>, vector<32x256xf32> -> vector<32x256xf32>
    %64 = arith.addf %55, %63 : vector<32x256xf32>
    %c4 = arith.constant 4 : index
    %c0_36 = arith.constant 0 : index
    %c0_37 = arith.constant 0 : index
    %65 = vector.load %arg3[%c4, %c0_36, %c0_37] : memref<36x32x8xbf16, #tpu.memory_space<vmem>>, vector<1x32x8xbf16>
    %66 = vector.shape_cast %65 : vector<1x32x8xbf16> to vector<32x8xbf16>
    %67 = arith.truncf %28 : vector<8x256xf32> to vector<8x256xbf16>
    %cst_38 = arith.constant dense<0.000000e+00> : vector<32x256xf32>
    %68 = tpu.matmul %66, %67, %cst_38 {dimension_numbers = #tpu.dot_dimension_numbers<[1], [0], [0], [1], [0, 0, 1, 1], [], []>} : vector<32x8xbf16>, vector<8x256xbf16>, vector<32x256xf32> -> vector<32x256xf32>
    %69 = arith.addf %64, %68 : vector<32x256xf32>
    %c255_i32 = arith.constant 255 : i32
    %70 = tpu.dynamic_rotate %28 by %c255_i32 dim 1 : vector<8x256xf32>, i32 -> vector<8x256xf32>
    %c5 = arith.constant 5 : index
    %c0_39 = arith.constant 0 : index
    %71 = vector.load %arg4[%c5, %c0_39] : memref<36x256xf32, #tpu.memory_space<vmem>>, vector<1x256xf32>
    %72 = vector.broadcast %71 : vector<1x256xf32> to vector<8x256xf32>
    %73 = arith.mulf %70, %72 : vector<8x256xf32>
    %c5_40 = arith.constant 5 : index
    %c0_41 = arith.constant 0 : index
    %c0_42 = arith.constant 0 : index
    %74 = vector.load %arg3[%c5_40, %c0_41, %c0_42] : memref<36x32x8xbf16, #tpu.memory_space<vmem>>, vector<1x32x8xbf16>
    %75 = vector.shape_cast %74 : vector<1x32x8xbf16> to vector<32x8xbf16>
    %76 = arith.truncf %73 : vector<8x256xf32> to vector<8x256xbf16>
    %cst_43 = arith.constant dense<0.000000e+00> : vector<32x256xf32>
    %77 = tpu.matmul %75, %76, %cst_43 {dimension_numbers = #tpu.dot_dimension_numbers<[1], [0], [0], [1], [0, 0, 1, 1], [], []>} : vector<32x8xbf16>, vector<8x256xbf16>, vector<32x256xf32> -> vector<32x256xf32>
    %78 = arith.addf %69, %77 : vector<32x256xf32>
    %c241_i32 = arith.constant 241 : i32
    %79 = tpu.dynamic_rotate %28 by %c241_i32 dim 1 : vector<8x256xf32>, i32 -> vector<8x256xf32>
    %c6 = arith.constant 6 : index
    %c0_44 = arith.constant 0 : index
    %80 = vector.load %arg4[%c6, %c0_44] : memref<36x256xf32, #tpu.memory_space<vmem>>, vector<1x256xf32>
    %81 = vector.broadcast %80 : vector<1x256xf32> to vector<8x256xf32>
    %82 = arith.mulf %79, %81 : vector<8x256xf32>
    %c6_45 = arith.constant 6 : index
    %c0_46 = arith.constant 0 : index
    %c0_47 = arith.constant 0 : index
    %83 = vector.load %arg3[%c6_45, %c0_46, %c0_47] : memref<36x32x8xbf16, #tpu.memory_space<vmem>>, vector<1x32x8xbf16>
    %84 = vector.shape_cast %83 : vector<1x32x8xbf16> to vector<32x8xbf16>
    %85 = arith.truncf %82 : vector<8x256xf32> to vector<8x256xbf16>
    %cst_48 = arith.constant dense<0.000000e+00> : vector<32x256xf32>
    %86 = tpu.matmul %84, %85, %cst_48 {dimension_numbers = #tpu.dot_dimension_numbers<[1], [0], [0], [1], [0, 0, 1, 1], [], []>} : vector<32x8xbf16>, vector<8x256xbf16>, vector<32x256xf32> -> vector<32x256xf32>
    %87 = arith.addf %78, %86 : vector<32x256xf32>
    %c240_i32 = arith.constant 240 : i32
    %88 = tpu.dynamic_rotate %28 by %c240_i32 dim 1 : vector<8x256xf32>, i32 -> vector<8x256xf32>
    %c7 = arith.constant 7 : index
    %c0_49 = arith.constant 0 : index
    %89 = vector.load %arg4[%c7, %c0_49] : memref<36x256xf32, #tpu.memory_space<vmem>>, vector<1x256xf32>
    %90 = vector.broadcast %89 : vector<1x256xf32> to vector<8x256xf32>
    %91 = arith.mulf %88, %90 : vector<8x256xf32>
    %c7_50 = arith.constant 7 : index
    %c0_51 = arith.constant 0 : index
    %c0_52 = arith.constant 0 : index
    %92 = vector.load %arg3[%c7_50, %c0_51, %c0_52] : memref<36x32x8xbf16, #tpu.memory_space<vmem>>, vector<1x32x8xbf16>
    %93 = vector.shape_cast %92 : vector<1x32x8xbf16> to vector<32x8xbf16>
    %94 = arith.truncf %91 : vector<8x256xf32> to vector<8x256xbf16>
    %cst_53 = arith.constant dense<0.000000e+00> : vector<32x256xf32>
    %95 = tpu.matmul %93, %94, %cst_53 {dimension_numbers = #tpu.dot_dimension_numbers<[1], [0], [0], [1], [0, 0, 1, 1], [], []>} : vector<32x8xbf16>, vector<8x256xbf16>, vector<32x256xf32> -> vector<32x256xf32>
    %96 = arith.addf %87, %95 : vector<32x256xf32>
    %c239_i32 = arith.constant 239 : i32
    %97 = tpu.dynamic_rotate %28 by %c239_i32 dim 1 : vector<8x256xf32>, i32 -> vector<8x256xf32>
    %c8 = arith.constant 8 : index
    %c0_54 = arith.constant 0 : index
    %98 = vector.load %arg4[%c8, %c0_54] : memref<36x256xf32, #tpu.memory_space<vmem>>, vector<1x256xf32>
    %99 = vector.broadcast %98 : vector<1x256xf32> to vector<8x256xf32>
    %100 = arith.mulf %97, %99 : vector<8x256xf32>
    %c8_55 = arith.constant 8 : index
    %c0_56 = arith.constant 0 : index
    %c0_57 = arith.constant 0 : index
    %101 = vector.load %arg3[%c8_55, %c0_56, %c0_57] : memref<36x32x8xbf16, #tpu.memory_space<vmem>>, vector<1x32x8xbf16>
    %102 = vector.shape_cast %101 : vector<1x32x8xbf16> to vector<32x8xbf16>
    %103 = arith.truncf %100 : vector<8x256xf32> to vector<8x256xbf16>
    %cst_58 = arith.constant dense<0.000000e+00> : vector<32x256xf32>
    %104 = tpu.matmul %102, %103, %cst_58 {dimension_numbers = #tpu.dot_dimension_numbers<[1], [0], [0], [1], [0, 0, 1, 1], [], []>} : vector<32x8xbf16>, vector<8x256xbf16>, vector<32x256xf32> -> vector<32x256xf32>
    %105 = arith.addf %96, %104 : vector<32x256xf32>
    %c0_59 = arith.constant 0 : index
    %c8_60 = arith.constant 8 : index
    %c0_61 = arith.constant 0 : index
    %106 = vector.load %arg2[%c0_59, %c8_60, %c0_61] : memref<1x32x256xf32, #tpu.memory_space<vmem>>, vector<1x8x256xf32>
    %107 = vector.shape_cast %106 : vector<1x8x256xf32> to vector<8x256xf32>
    %c255_i32_62 = arith.constant 255 : i32
    %108 = tpu.dynamic_rotate %107 by %c255_i32_62 dim 1 : vector<8x256xf32>, i32 -> vector<8x256xf32>
    %c1_i32_63 = arith.constant 1 : i32
    %109 = tpu.dynamic_rotate %107 by %c1_i32_63 dim 1 : vector<8x256xf32>, i32 -> vector<8x256xf32>
    %110 = vector.shape_cast %9 : vector<1x256xi1> to vector<1x256xi1>
    %111 = vector.broadcast %110 : vector<1x256xi1> to vector<8x256xi1>
    %112 = arith.select %111, %108, %109 : vector<8x256xi1>, vector<8x256xf32>
    %113 = arith.maximumf %107, %112 : vector<8x256xf32>
    %c240_i32_64 = arith.constant 240 : i32
    %114 = tpu.dynamic_rotate %113 by %c240_i32_64 dim 1 : vector<8x256xf32>, i32 -> vector<8x256xf32>
    %c16_i32_65 = arith.constant 16 : i32
    %115 = tpu.dynamic_rotate %113 by %c16_i32_65 dim 1 : vector<8x256xf32>, i32 -> vector<8x256xf32>
    %116 = vector.shape_cast %5 : vector<1x256xi1> to vector<1x256xi1>
    %117 = vector.broadcast %116 : vector<1x256xi1> to vector<8x256xi1>
    %118 = arith.select %117, %114, %115 : vector<8x256xi1>, vector<8x256xf32>
    %119 = arith.maximumf %113, %118 : vector<8x256xf32>
    %c34_i32 = arith.constant 34 : i32
    %120 = tpu.dynamic_rotate %119 by %c34_i32 dim 1 : vector<8x256xf32>, i32 -> vector<8x256xf32>
    %c9 = arith.constant 9 : index
    %c0_66 = arith.constant 0 : index
    %121 = vector.load %arg4[%c9, %c0_66] : memref<36x256xf32, #tpu.memory_space<vmem>>, vector<1x256xf32>
    %122 = vector.broadcast %121 : vector<1x256xf32> to vector<8x256xf32>
    %123 = arith.mulf %120, %122 : vector<8x256xf32>
    %c9_67 = arith.constant 9 : index
    %c0_68 = arith.constant 0 : index
    %c0_69 = arith.constant 0 : index
    %124 = vector.load %arg3[%c9_67, %c0_68, %c0_69] : memref<36x32x8xbf16, #tpu.memory_space<vmem>>, vector<1x32x8xbf16>
    %125 = vector.shape_cast %124 : vector<1x32x8xbf16> to vector<32x8xbf16>
    %126 = arith.truncf %123 : vector<8x256xf32> to vector<8x256xbf16>
    %cst_70 = arith.constant dense<0.000000e+00> : vector<32x256xf32>
    %127 = tpu.matmul %125, %126, %cst_70 {dimension_numbers = #tpu.dot_dimension_numbers<[1], [0], [0], [1], [0, 0, 1, 1], [], []>} : vector<32x8xbf16>, vector<8x256xbf16>, vector<32x256xf32> -> vector<32x256xf32>
    %128 = arith.addf %105, %127 : vector<32x256xf32>
    %c32_i32 = arith.constant 32 : i32
    %129 = tpu.dynamic_rotate %119 by %c32_i32 dim 1 : vector<8x256xf32>, i32 -> vector<8x256xf32>
    %c10 = arith.constant 10 : index
    %c0_71 = arith.constant 0 : index
    %130 = vector.load %arg4[%c10, %c0_71] : memref<36x256xf32, #tpu.memory_space<vmem>>, vector<1x256xf32>
    %131 = vector.broadcast %130 : vector<1x256xf32> to vector<8x256xf32>
    %132 = arith.mulf %129, %131 : vector<8x256xf32>
    %c10_72 = arith.constant 10 : index
    %c0_73 = arith.constant 0 : index
    %c0_74 = arith.constant 0 : index
    %133 = vector.load %arg3[%c10_72, %c0_73, %c0_74] : memref<36x32x8xbf16, #tpu.memory_space<vmem>>, vector<1x32x8xbf16>
    %134 = vector.shape_cast %133 : vector<1x32x8xbf16> to vector<32x8xbf16>
    %135 = arith.truncf %132 : vector<8x256xf32> to vector<8x256xbf16>
    %cst_75 = arith.constant dense<0.000000e+00> : vector<32x256xf32>
    %136 = tpu.matmul %134, %135, %cst_75 {dimension_numbers = #tpu.dot_dimension_numbers<[1], [0], [0], [1], [0, 0, 1, 1], [], []>} : vector<32x8xbf16>, vector<8x256xbf16>, vector<32x256xf32> -> vector<32x256xf32>
    %137 = arith.addf %128, %136 : vector<32x256xf32>
    %c30_i32 = arith.constant 30 : i32
    %138 = tpu.dynamic_rotate %119 by %c30_i32 dim 1 : vector<8x256xf32>, i32 -> vector<8x256xf32>
    %c11 = arith.constant 11 : index
    %c0_76 = arith.constant 0 : index
    %139 = vector.load %arg4[%c11, %c0_76] : memref<36x256xf32, #tpu.memory_space<vmem>>, vector<1x256xf32>
    %140 = vector.broadcast %139 : vector<1x256xf32> to vector<8x256xf32>
    %141 = arith.mulf %138, %140 : vector<8x256xf32>
    %c11_77 = arith.constant 11 : index
    %c0_78 = arith.constant 0 : index
    %c0_79 = arith.constant 0 : index
    %142 = vector.load %arg3[%c11_77, %c0_78, %c0_79] : memref<36x32x8xbf16, #tpu.memory_space<vmem>>, vector<1x32x8xbf16>
    %143 = vector.shape_cast %142 : vector<1x32x8xbf16> to vector<32x8xbf16>
    %144 = arith.truncf %141 : vector<8x256xf32> to vector<8x256xbf16>
    %cst_80 = arith.constant dense<0.000000e+00> : vector<32x256xf32>
    %145 = tpu.matmul %143, %144, %cst_80 {dimension_numbers = #tpu.dot_dimension_numbers<[1], [0], [0], [1], [0, 0, 1, 1], [], []>} : vector<32x8xbf16>, vector<8x256xbf16>, vector<32x256xf32> -> vector<32x256xf32>
    %146 = arith.addf %137, %145 : vector<32x256xf32>
    %c2_i32_81 = arith.constant 2 : i32
    %147 = tpu.dynamic_rotate %119 by %c2_i32_81 dim 1 : vector<8x256xf32>, i32 -> vector<8x256xf32>
    %c12 = arith.constant 12 : index
    %c0_82 = arith.constant 0 : index
    %148 = vector.load %arg4[%c12, %c0_82] : memref<36x256xf32, #tpu.memory_space<vmem>>, vector<1x256xf32>
    %149 = vector.broadcast %148 : vector<1x256xf32> to vector<8x256xf32>
    %150 = arith.mulf %147, %149 : vector<8x256xf32>
    %c12_83 = arith.constant 12 : index
    %c0_84 = arith.constant 0 : index
    %c0_85 = arith.constant 0 : index
    %151 = vector.load %arg3[%c12_83, %c0_84, %c0_85] : memref<36x32x8xbf16, #tpu.memory_space<vmem>>, vector<1x32x8xbf16>
    %152 = vector.shape_cast %151 : vector<1x32x8xbf16> to vector<32x8xbf16>
    %153 = arith.truncf %150 : vector<8x256xf32> to vector<8x256xbf16>
    %cst_86 = arith.constant dense<0.000000e+00> : vector<32x256xf32>
    %154 = tpu.matmul %152, %153, %cst_86 {dimension_numbers = #tpu.dot_dimension_numbers<[1], [0], [0], [1], [0, 0, 1, 1], [], []>} : vector<32x8xbf16>, vector<8x256xbf16>, vector<32x256xf32> -> vector<32x256xf32>
    %155 = arith.addf %146, %154 : vector<32x256xf32>
    %c13 = arith.constant 13 : index
    %c0_87 = arith.constant 0 : index
    %c0_88 = arith.constant 0 : index
    %156 = vector.load %arg3[%c13, %c0_87, %c0_88] : memref<36x32x8xbf16, #tpu.memory_space<vmem>>, vector<1x32x8xbf16>
    %157 = vector.shape_cast %156 : vector<1x32x8xbf16> to vector<32x8xbf16>
    %158 = arith.truncf %119 : vector<8x256xf32> to vector<8x256xbf16>
    %cst_89 = arith.constant dense<0.000000e+00> : vector<32x256xf32>
    %159 = tpu.matmul %157, %158, %cst_89 {dimension_numbers = #tpu.dot_dimension_numbers<[1], [0], [0], [1], [0, 0, 1, 1], [], []>} : vector<32x8xbf16>, vector<8x256xbf16>, vector<32x256xf32> -> vector<32x256xf32>
    %160 = arith.addf %155, %159 : vector<32x256xf32>
    %c254_i32 = arith.constant 254 : i32
    %161 = tpu.dynamic_rotate %119 by %c254_i32 dim 1 : vector<8x256xf32>, i32 -> vector<8x256xf32>
    %c14 = arith.constant 14 : index
    %c0_90 = arith.constant 0 : index
    %162 = vector.load %arg4[%c14, %c0_90] : memref<36x256xf32, #tpu.memory_space<vmem>>, vector<1x256xf32>
    %163 = vector.broadcast %162 : vector<1x256xf32> to vector<8x256xf32>
    %164 = arith.mulf %161, %163 : vector<8x256xf32>
    %c14_91 = arith.constant 14 : index
    %c0_92 = arith.constant 0 : index
    %c0_93 = arith.constant 0 : index
    %165 = vector.load %arg3[%c14_91, %c0_92, %c0_93] : memref<36x32x8xbf16, #tpu.memory_space<vmem>>, vector<1x32x8xbf16>
    %166 = vector.shape_cast %165 : vector<1x32x8xbf16> to vector<32x8xbf16>
    %167 = arith.truncf %164 : vector<8x256xf32> to vector<8x256xbf16>
    %cst_94 = arith.constant dense<0.000000e+00> : vector<32x256xf32>
    %168 = tpu.matmul %166, %167, %cst_94 {dimension_numbers = #tpu.dot_dimension_numbers<[1], [0], [0], [1], [0, 0, 1, 1], [], []>} : vector<32x8xbf16>, vector<8x256xbf16>, vector<32x256xf32> -> vector<32x256xf32>
    %169 = arith.addf %160, %168 : vector<32x256xf32>
    %c226_i32 = arith.constant 226 : i32
    %170 = tpu.dynamic_rotate %119 by %c226_i32 dim 1 : vector<8x256xf32>, i32 -> vector<8x256xf32>
    %c15 = arith.constant 15 : index
    %c0_95 = arith.constant 0 : index
    %171 = vector.load %arg4[%c15, %c0_95] : memref<36x256xf32, #tpu.memory_space<vmem>>, vector<1x256xf32>
    %172 = vector.broadcast %171 : vector<1x256xf32> to vector<8x256xf32>
    %173 = arith.mulf %170, %172 : vector<8x256xf32>
    %c15_96 = arith.constant 15 : index
    %c0_97 = arith.constant 0 : index
    %c0_98 = arith.constant 0 : index
    %174 = vector.load %arg3[%c15_96, %c0_97, %c0_98] : memref<36x32x8xbf16, #tpu.memory_space<vmem>>, vector<1x32x8xbf16>
    %175 = vector.shape_cast %174 : vector<1x32x8xbf16> to vector<32x8xbf16>
    %176 = arith.truncf %173 : vector<8x256xf32> to vector<8x256xbf16>
    %cst_99 = arith.constant dense<0.000000e+00> : vector<32x256xf32>
    %177 = tpu.matmul %175, %176, %cst_99 {dimension_numbers = #tpu.dot_dimension_numbers<[1], [0], [0], [1], [0, 0, 1, 1], [], []>} : vector<32x8xbf16>, vector<8x256xbf16>, vector<32x256xf32> -> vector<32x256xf32>
    %178 = arith.addf %169, %177 : vector<32x256xf32>
    %c224_i32 = arith.constant 224 : i32
    %179 = tpu.dynamic_rotate %119 by %c224_i32 dim 1 : vector<8x256xf32>, i32 -> vector<8x256xf32>
    %c16 = arith.constant 16 : index
    %c0_100 = arith.constant 0 : index
    %180 = vector.load %arg4[%c16, %c0_100] : memref<36x256xf32, #tpu.memory_space<vmem>>, vector<1x256xf32>
    %181 = vector.broadcast %180 : vector<1x256xf32> to vector<8x256xf32>
    %182 = arith.mulf %179, %181 : vector<8x256xf32>
    %c16_101 = arith.constant 16 : index
    %c0_102 = arith.constant 0 : index
    %c0_103 = arith.constant 0 : index
    %183 = vector.load %arg3[%c16_101, %c0_102, %c0_103] : memref<36x32x8xbf16, #tpu.memory_space<vmem>>, vector<1x32x8xbf16>
    %184 = vector.shape_cast %183 : vector<1x32x8xbf16> to vector<32x8xbf16>
    %185 = arith.truncf %182 : vector<8x256xf32> to vector<8x256xbf16>
    %cst_104 = arith.constant dense<0.000000e+00> : vector<32x256xf32>
    %186 = tpu.matmul %184, %185, %cst_104 {dimension_numbers = #tpu.dot_dimension_numbers<[1], [0], [0], [1], [0, 0, 1, 1], [], []>} : vector<32x8xbf16>, vector<8x256xbf16>, vector<32x256xf32> -> vector<32x256xf32>
    %187 = arith.addf %178, %186 : vector<32x256xf32>
    %c222_i32 = arith.constant 222 : i32
    %188 = tpu.dynamic_rotate %119 by %c222_i32 dim 1 : vector<8x256xf32>, i32 -> vector<8x256xf32>
    %c17 = arith.constant 17 : index
    %c0_105 = arith.constant 0 : index
    %189 = vector.load %arg4[%c17, %c0_105] : memref<36x256xf32, #tpu.memory_space<vmem>>, vector<1x256xf32>
    %190 = vector.broadcast %189 : vector<1x256xf32> to vector<8x256xf32>
    %191 = arith.mulf %188, %190 : vector<8x256xf32>
    %c17_106 = arith.constant 17 : index
    %c0_107 = arith.constant 0 : index
    %c0_108 = arith.constant 0 : index
    %192 = vector.load %arg3[%c17_106, %c0_107, %c0_108] : memref<36x32x8xbf16, #tpu.memory_space<vmem>>, vector<1x32x8xbf16>
    %193 = vector.shape_cast %192 : vector<1x32x8xbf16> to vector<32x8xbf16>
    %194 = arith.truncf %191 : vector<8x256xf32> to vector<8x256xbf16>
    %cst_109 = arith.constant dense<0.000000e+00> : vector<32x256xf32>
    %195 = tpu.matmul %193, %194, %cst_109 {dimension_numbers = #tpu.dot_dimension_numbers<[1], [0], [0], [1], [0, 0, 1, 1], [], []>} : vector<32x8xbf16>, vector<8x256xbf16>, vector<32x256xf32> -> vector<32x256xf32>
    %196 = arith.addf %187, %195 : vector<32x256xf32>
    %c0_110 = arith.constant 0 : index
    %c16_111 = arith.constant 16 : index
    %c0_112 = arith.constant 0 : index
    %197 = vector.load %arg2[%c0_110, %c16_111, %c0_112] : memref<1x32x256xf32, #tpu.memory_space<vmem>>, vector<1x8x256xf32>
    %198 = vector.shape_cast %197 : vector<1x8x256xf32> to vector<8x256xf32>
    %c255_i32_113 = arith.constant 255 : i32
    %199 = tpu.dynamic_rotate %198 by %c255_i32_113 dim 1 : vector<8x256xf32>, i32 -> vector<8x256xf32>
    %c1_i32_114 = arith.constant 1 : i32
    %200 = tpu.dynamic_rotate %198 by %c1_i32_114 dim 1 : vector<8x256xf32>, i32 -> vector<8x256xf32>
    %201 = vector.shape_cast %9 : vector<1x256xi1> to vector<1x256xi1>
    %202 = vector.broadcast %201 : vector<1x256xi1> to vector<8x256xi1>
    %203 = arith.select %202, %199, %200 : vector<8x256xi1>, vector<8x256xf32>
    %204 = arith.maximumf %198, %203 : vector<8x256xf32>
    %c254_i32_115 = arith.constant 254 : i32
    %205 = tpu.dynamic_rotate %204 by %c254_i32_115 dim 1 : vector<8x256xf32>, i32 -> vector<8x256xf32>
    %c2_i32_116 = arith.constant 2 : i32
    %206 = tpu.dynamic_rotate %204 by %c2_i32_116 dim 1 : vector<8x256xf32>, i32 -> vector<8x256xf32>
    %207 = vector.shape_cast %17 : vector<1x256xi1> to vector<1x256xi1>
    %208 = vector.broadcast %207 : vector<1x256xi1> to vector<8x256xi1>
    %209 = arith.select %208, %205, %206 : vector<8x256xi1>, vector<8x256xf32>
    %210 = arith.maximumf %204, %209 : vector<8x256xf32>
    %c240_i32_117 = arith.constant 240 : i32
    %211 = tpu.dynamic_rotate %210 by %c240_i32_117 dim 1 : vector<8x256xf32>, i32 -> vector<8x256xf32>
    %c16_i32_118 = arith.constant 16 : i32
    %212 = tpu.dynamic_rotate %210 by %c16_i32_118 dim 1 : vector<8x256xf32>, i32 -> vector<8x256xf32>
    %213 = vector.shape_cast %5 : vector<1x256xi1> to vector<1x256xi1>
    %214 = vector.broadcast %213 : vector<1x256xi1> to vector<8x256xi1>
    %215 = arith.select %214, %211, %212 : vector<8x256xi1>, vector<8x256xf32>
    %216 = arith.maximumf %210, %215 : vector<8x256xf32>
    %c224_i32_119 = arith.constant 224 : i32
    %217 = tpu.dynamic_rotate %216 by %c224_i32_119 dim 1 : vector<8x256xf32>, i32 -> vector<8x256xf32>
    %c32_i32_120 = arith.constant 32 : i32
    %218 = tpu.dynamic_rotate %216 by %c32_i32_120 dim 1 : vector<8x256xf32>, i32 -> vector<8x256xf32>
    %219 = vector.shape_cast %13 : vector<1x256xi1> to vector<1x256xi1>
    %220 = vector.broadcast %219 : vector<1x256xi1> to vector<8x256xi1>
    %221 = arith.select %220, %217, %218 : vector<8x256xi1>, vector<8x256xf32>
    %222 = arith.maximumf %216, %221 : vector<8x256xf32>
    %c68_i32 = arith.constant 68 : i32
    %223 = tpu.dynamic_rotate %222 by %c68_i32 dim 1 : vector<8x256xf32>, i32 -> vector<8x256xf32>
    %c18 = arith.constant 18 : index
    %c0_121 = arith.constant 0 : index
    %224 = vector.load %arg4[%c18, %c0_121] : memref<36x256xf32, #tpu.memory_space<vmem>>, vector<1x256xf32>
    %225 = vector.broadcast %224 : vector<1x256xf32> to vector<8x256xf32>
    %226 = arith.mulf %223, %225 : vector<8x256xf32>
    %c18_122 = arith.constant 18 : index
    %c0_123 = arith.constant 0 : index
    %c0_124 = arith.constant 0 : index
    %227 = vector.load %arg3[%c18_122, %c0_123, %c0_124] : memref<36x32x8xbf16, #tpu.memory_space<vmem>>, vector<1x32x8xbf16>
    %228 = vector.shape_cast %227 : vector<1x32x8xbf16> to vector<32x8xbf16>
    %229 = arith.truncf %226 : vector<8x256xf32> to vector<8x256xbf16>
    %cst_125 = arith.constant dense<0.000000e+00> : vector<32x256xf32>
    %230 = tpu.matmul %228, %229, %cst_125 {dimension_numbers = #tpu.dot_dimension_numbers<[1], [0], [0], [1], [0, 0, 1, 1], [], []>} : vector<32x8xbf16>, vector<8x256xbf16>, vector<32x256xf32> -> vector<32x256xf32>
    %231 = arith.addf %196, %230 : vector<32x256xf32>
    %c64_i32 = arith.constant 64 : i32
    %232 = tpu.dynamic_rotate %222 by %c64_i32 dim 1 : vector<8x256xf32>, i32 -> vector<8x256xf32>
    %c19 = arith.constant 19 : index
    %c0_126 = arith.constant 0 : index
    %233 = vector.load %arg4[%c19, %c0_126] : memref<36x256xf32, #tpu.memory_space<vmem>>, vector<1x256xf32>
    %234 = vector.broadcast %233 : vector<1x256xf32> to vector<8x256xf32>
    %235 = arith.mulf %232, %234 : vector<8x256xf32>
    %c19_127 = arith.constant 19 : index
    %c0_128 = arith.constant 0 : index
    %c0_129 = arith.constant 0 : index
    %236 = vector.load %arg3[%c19_127, %c0_128, %c0_129] : memref<36x32x8xbf16, #tpu.memory_space<vmem>>, vector<1x32x8xbf16>
    %237 = vector.shape_cast %236 : vector<1x32x8xbf16> to vector<32x8xbf16>
    %238 = arith.truncf %235 : vector<8x256xf32> to vector<8x256xbf16>
    %cst_130 = arith.constant dense<0.000000e+00> : vector<32x256xf32>
    %239 = tpu.matmul %237, %238, %cst_130 {dimension_numbers = #tpu.dot_dimension_numbers<[1], [0], [0], [1], [0, 0, 1, 1], [], []>} : vector<32x8xbf16>, vector<8x256xbf16>, vector<32x256xf32> -> vector<32x256xf32>
    %240 = arith.addf %231, %239 : vector<32x256xf32>
    %c60_i32 = arith.constant 60 : i32
    %241 = tpu.dynamic_rotate %222 by %c60_i32 dim 1 : vector<8x256xf32>, i32 -> vector<8x256xf32>
    %c20 = arith.constant 20 : index
    %c0_131 = arith.constant 0 : index
    %242 = vector.load %arg4[%c20, %c0_131] : memref<36x256xf32, #tpu.memory_space<vmem>>, vector<1x256xf32>
    %243 = vector.broadcast %242 : vector<1x256xf32> to vector<8x256xf32>
    %244 = arith.mulf %241, %243 : vector<8x256xf32>
    %c20_132 = arith.constant 20 : index
    %c0_133 = arith.constant 0 : index
    %c0_134 = arith.constant 0 : index
    %245 = vector.load %arg3[%c20_132, %c0_133, %c0_134] : memref<36x32x8xbf16, #tpu.memory_space<vmem>>, vector<1x32x8xbf16>
    %246 = vector.shape_cast %245 : vector<1x32x8xbf16> to vector<32x8xbf16>
    %247 = arith.truncf %244 : vector<8x256xf32> to vector<8x256xbf16>
    %cst_135 = arith.constant dense<0.000000e+00> : vector<32x256xf32>
    %248 = tpu.matmul %246, %247, %cst_135 {dimension_numbers = #tpu.dot_dimension_numbers<[1], [0], [0], [1], [0, 0, 1, 1], [], []>} : vector<32x8xbf16>, vector<8x256xbf16>, vector<32x256xf32> -> vector<32x256xf32>
    %249 = arith.addf %240, %248 : vector<32x256xf32>
    %c4_i32_136 = arith.constant 4 : i32
    %250 = tpu.dynamic_rotate %222 by %c4_i32_136 dim 1 : vector<8x256xf32>, i32 -> vector<8x256xf32>
    %c21 = arith.constant 21 : index
    %c0_137 = arith.constant 0 : index
    %251 = vector.load %arg4[%c21, %c0_137] : memref<36x256xf32, #tpu.memory_space<vmem>>, vector<1x256xf32>
    %252 = vector.broadcast %251 : vector<1x256xf32> to vector<8x256xf32>
    %253 = arith.mulf %250, %252 : vector<8x256xf32>
    %c21_138 = arith.constant 21 : index
    %c0_139 = arith.constant 0 : index
    %c0_140 = arith.constant 0 : index
    %254 = vector.load %arg3[%c21_138, %c0_139, %c0_140] : memref<36x32x8xbf16, #tpu.memory_space<vmem>>, vector<1x32x8xbf16>
    %255 = vector.shape_cast %254 : vector<1x32x8xbf16> to vector<32x8xbf16>
    %256 = arith.truncf %253 : vector<8x256xf32> to vector<8x256xbf16>
    %cst_141 = arith.constant dense<0.000000e+00> : vector<32x256xf32>
    %257 = tpu.matmul %255, %256, %cst_141 {dimension_numbers = #tpu.dot_dimension_numbers<[1], [0], [0], [1], [0, 0, 1, 1], [], []>} : vector<32x8xbf16>, vector<8x256xbf16>, vector<32x256xf32> -> vector<32x256xf32>
    %258 = arith.addf %249, %257 : vector<32x256xf32>
    %c22 = arith.constant 22 : index
    %c0_142 = arith.constant 0 : index
    %c0_143 = arith.constant 0 : index
    %259 = vector.load %arg3[%c22, %c0_142, %c0_143] : memref<36x32x8xbf16, #tpu.memory_space<vmem>>, vector<1x32x8xbf16>
    %260 = vector.shape_cast %259 : vector<1x32x8xbf16> to vector<32x8xbf16>
    %261 = arith.truncf %222 : vector<8x256xf32> to vector<8x256xbf16>
    %cst_144 = arith.constant dense<0.000000e+00> : vector<32x256xf32>
    %262 = tpu.matmul %260, %261, %cst_144 {dimension_numbers = #tpu.dot_dimension_numbers<[1], [0], [0], [1], [0, 0, 1, 1], [], []>} : vector<32x8xbf16>, vector<8x256xbf16>, vector<32x256xf32> -> vector<32x256xf32>
    %263 = arith.addf %258, %262 : vector<32x256xf32>
    %c252_i32 = arith.constant 252 : i32
    %264 = tpu.dynamic_rotate %222 by %c252_i32 dim 1 : vector<8x256xf32>, i32 -> vector<8x256xf32>
    %c23 = arith.constant 23 : index
    %c0_145 = arith.constant 0 : index
    %265 = vector.load %arg4[%c23, %c0_145] : memref<36x256xf32, #tpu.memory_space<vmem>>, vector<1x256xf32>
    %266 = vector.broadcast %265 : vector<1x256xf32> to vector<8x256xf32>
    %267 = arith.mulf %264, %266 : vector<8x256xf32>
    %c23_146 = arith.constant 23 : index
    %c0_147 = arith.constant 0 : index
    %c0_148 = arith.constant 0 : index
    %268 = vector.load %arg3[%c23_146, %c0_147, %c0_148] : memref<36x32x8xbf16, #tpu.memory_space<vmem>>, vector<1x32x8xbf16>
    %269 = vector.shape_cast %268 : vector<1x32x8xbf16> to vector<32x8xbf16>
    %270 = arith.truncf %267 : vector<8x256xf32> to vector<8x256xbf16>
    %cst_149 = arith.constant dense<0.000000e+00> : vector<32x256xf32>
    %271 = tpu.matmul %269, %270, %cst_149 {dimension_numbers = #tpu.dot_dimension_numbers<[1], [0], [0], [1], [0, 0, 1, 1], [], []>} : vector<32x8xbf16>, vector<8x256xbf16>, vector<32x256xf32> -> vector<32x256xf32>
    %272 = arith.addf %263, %271 : vector<32x256xf32>
    %c196_i32 = arith.constant 196 : i32
    %273 = tpu.dynamic_rotate %222 by %c196_i32 dim 1 : vector<8x256xf32>, i32 -> vector<8x256xf32>
    %c24 = arith.constant 24 : index
    %c0_150 = arith.constant 0 : index
    %274 = vector.load %arg4[%c24, %c0_150] : memref<36x256xf32, #tpu.memory_space<vmem>>, vector<1x256xf32>
    %275 = vector.broadcast %274 : vector<1x256xf32> to vector<8x256xf32>
    %276 = arith.mulf %273, %275 : vector<8x256xf32>
    %c24_151 = arith.constant 24 : index
    %c0_152 = arith.constant 0 : index
    %c0_153 = arith.constant 0 : index
    %277 = vector.load %arg3[%c24_151, %c0_152, %c0_153] : memref<36x32x8xbf16, #tpu.memory_space<vmem>>, vector<1x32x8xbf16>
    %278 = vector.shape_cast %277 : vector<1x32x8xbf16> to vector<32x8xbf16>
    %279 = arith.truncf %276 : vector<8x256xf32> to vector<8x256xbf16>
    %cst_154 = arith.constant dense<0.000000e+00> : vector<32x256xf32>
    %280 = tpu.matmul %278, %279, %cst_154 {dimension_numbers = #tpu.dot_dimension_numbers<[1], [0], [0], [1], [0, 0, 1, 1], [], []>} : vector<32x8xbf16>, vector<8x256xbf16>, vector<32x256xf32> -> vector<32x256xf32>
    %281 = arith.addf %272, %280 : vector<32x256xf32>
    %c192_i32 = arith.constant 192 : i32
    %282 = tpu.dynamic_rotate %222 by %c192_i32 dim 1 : vector<8x256xf32>, i32 -> vector<8x256xf32>
    %c25 = arith.constant 25 : index
    %c0_155 = arith.constant 0 : index
    %283 = vector.load %arg4[%c25, %c0_155] : memref<36x256xf32, #tpu.memory_space<vmem>>, vector<1x256xf32>
    %284 = vector.broadcast %283 : vector<1x256xf32> to vector<8x256xf32>
    %285 = arith.mulf %282, %284 : vector<8x256xf32>
    %c25_156 = arith.constant 25 : index
    %c0_157 = arith.constant 0 : index
    %c0_158 = arith.constant 0 : index
    %286 = vector.load %arg3[%c25_156, %c0_157, %c0_158] : memref<36x32x8xbf16, #tpu.memory_space<vmem>>, vector<1x32x8xbf16>
    %287 = vector.shape_cast %286 : vector<1x32x8xbf16> to vector<32x8xbf16>
    %288 = arith.truncf %285 : vector<8x256xf32> to vector<8x256xbf16>
    %cst_159 = arith.constant dense<0.000000e+00> : vector<32x256xf32>
    %289 = tpu.matmul %287, %288, %cst_159 {dimension_numbers = #tpu.dot_dimension_numbers<[1], [0], [0], [1], [0, 0, 1, 1], [], []>} : vector<32x8xbf16>, vector<8x256xbf16>, vector<32x256xf32> -> vector<32x256xf32>
    %290 = arith.addf %281, %289 : vector<32x256xf32>
    %c188_i32 = arith.constant 188 : i32
    %291 = tpu.dynamic_rotate %222 by %c188_i32 dim 1 : vector<8x256xf32>, i32 -> vector<8x256xf32>
    %c26 = arith.constant 26 : index
    %c0_160 = arith.constant 0 : index
    %292 = vector.load %arg4[%c26, %c0_160] : memref<36x256xf32, #tpu.memory_space<vmem>>, vector<1x256xf32>
    %293 = vector.broadcast %292 : vector<1x256xf32> to vector<8x256xf32>
    %294 = arith.mulf %291, %293 : vector<8x256xf32>
    %c26_161 = arith.constant 26 : index
    %c0_162 = arith.constant 0 : index
    %c0_163 = arith.constant 0 : index
    %295 = vector.load %arg3[%c26_161, %c0_162, %c0_163] : memref<36x32x8xbf16, #tpu.memory_space<vmem>>, vector<1x32x8xbf16>
    %296 = vector.shape_cast %295 : vector<1x32x8xbf16> to vector<32x8xbf16>
    %297 = arith.truncf %294 : vector<8x256xf32> to vector<8x256xbf16>
    %cst_164 = arith.constant dense<0.000000e+00> : vector<32x256xf32>
    %298 = tpu.matmul %296, %297, %cst_164 {dimension_numbers = #tpu.dot_dimension_numbers<[1], [0], [0], [1], [0, 0, 1, 1], [], []>} : vector<32x8xbf16>, vector<8x256xbf16>, vector<32x256xf32> -> vector<32x256xf32>
    %299 = arith.addf %290, %298 : vector<32x256xf32>
    %c0_165 = arith.constant 0 : index
    %c24_166 = arith.constant 24 : index
    %c0_167 = arith.constant 0 : index
    %300 = vector.load %arg2[%c0_165, %c24_166, %c0_167] : memref<1x32x256xf32, #tpu.memory_space<vmem>>, vector<1x8x256xf32>
    %301 = vector.shape_cast %300 : vector<1x8x256xf32> to vector<8x256xf32>
    %c255_i32_168 = arith.constant 255 : i32
    %302 = tpu.dynamic_rotate %301 by %c255_i32_168 dim 1 : vector<8x256xf32>, i32 -> vector<8x256xf32>
    %c1_i32_169 = arith.constant 1 : i32
    %303 = tpu.dynamic_rotate %301 by %c1_i32_169 dim 1 : vector<8x256xf32>, i32 -> vector<8x256xf32>
    %304 = vector.shape_cast %9 : vector<1x256xi1> to vector<1x256xi1>
    %305 = vector.broadcast %304 : vector<1x256xi1> to vector<8x256xi1>
    %306 = arith.select %305, %302, %303 : vector<8x256xi1>, vector<8x256xf32>
    %307 = arith.maximumf %301, %306 : vector<8x256xf32>
    %c254_i32_170 = arith.constant 254 : i32
    %308 = tpu.dynamic_rotate %307 by %c254_i32_170 dim 1 : vector<8x256xf32>, i32 -> vector<8x256xf32>
    %c2_i32_171 = arith.constant 2 : i32
    %309 = tpu.dynamic_rotate %307 by %c2_i32_171 dim 1 : vector<8x256xf32>, i32 -> vector<8x256xf32>
    %310 = vector.shape_cast %17 : vector<1x256xi1> to vector<1x256xi1>
    %311 = vector.broadcast %310 : vector<1x256xi1> to vector<8x256xi1>
    %312 = arith.select %311, %308, %309 : vector<8x256xi1>, vector<8x256xf32>
    %313 = arith.maximumf %307, %312 : vector<8x256xf32>
    %c252_i32_172 = arith.constant 252 : i32
    %314 = tpu.dynamic_rotate %313 by %c252_i32_172 dim 1 : vector<8x256xf32>, i32 -> vector<8x256xf32>
    %c4_i32_173 = arith.constant 4 : i32
    %315 = tpu.dynamic_rotate %313 by %c4_i32_173 dim 1 : vector<8x256xf32>, i32 -> vector<8x256xf32>
    %316 = vector.shape_cast %25 : vector<1x256xi1> to vector<1x256xi1>
    %317 = vector.broadcast %316 : vector<1x256xi1> to vector<8x256xi1>
    %318 = arith.select %317, %314, %315 : vector<8x256xi1>, vector<8x256xf32>
    %319 = arith.maximumf %313, %318 : vector<8x256xf32>
    %c240_i32_174 = arith.constant 240 : i32
    %320 = tpu.dynamic_rotate %319 by %c240_i32_174 dim 1 : vector<8x256xf32>, i32 -> vector<8x256xf32>
    %c16_i32_175 = arith.constant 16 : i32
    %321 = tpu.dynamic_rotate %319 by %c16_i32_175 dim 1 : vector<8x256xf32>, i32 -> vector<8x256xf32>
    %322 = vector.shape_cast %5 : vector<1x256xi1> to vector<1x256xi1>
    %323 = vector.broadcast %322 : vector<1x256xi1> to vector<8x256xi1>
    %324 = arith.select %323, %320, %321 : vector<8x256xi1>, vector<8x256xf32>
    %325 = arith.maximumf %319, %324 : vector<8x256xf32>
    %c224_i32_176 = arith.constant 224 : i32
    %326 = tpu.dynamic_rotate %325 by %c224_i32_176 dim 1 : vector<8x256xf32>, i32 -> vector<8x256xf32>
    %c32_i32_177 = arith.constant 32 : i32
    %327 = tpu.dynamic_rotate %325 by %c32_i32_177 dim 1 : vector<8x256xf32>, i32 -> vector<8x256xf32>
    %328 = vector.shape_cast %13 : vector<1x256xi1> to vector<1x256xi1>
    %329 = vector.broadcast %328 : vector<1x256xi1> to vector<8x256xi1>
    %330 = arith.select %329, %326, %327 : vector<8x256xi1>, vector<8x256xf32>
    %331 = arith.maximumf %325, %330 : vector<8x256xf32>
    %c192_i32_178 = arith.constant 192 : i32
    %332 = tpu.dynamic_rotate %331 by %c192_i32_178 dim 1 : vector<8x256xf32>, i32 -> vector<8x256xf32>
    %c64_i32_179 = arith.constant 64 : i32
    %333 = tpu.dynamic_rotate %331 by %c64_i32_179 dim 1 : vector<8x256xf32>, i32 -> vector<8x256xf32>
    %334 = vector.shape_cast %21 : vector<1x256xi1> to vector<1x256xi1>
    %335 = vector.broadcast %334 : vector<1x256xi1> to vector<8x256xi1>
    %336 = arith.select %335, %332, %333 : vector<8x256xi1>, vector<8x256xf32>
    %337 = arith.maximumf %331, %336 : vector<8x256xf32>
    %c136_i32 = arith.constant 136 : i32
    %338 = tpu.dynamic_rotate %337 by %c136_i32 dim 1 : vector<8x256xf32>, i32 -> vector<8x256xf32>
    %c27 = arith.constant 27 : index
    %c0_180 = arith.constant 0 : index
    %339 = vector.load %arg4[%c27, %c0_180] : memref<36x256xf32, #tpu.memory_space<vmem>>, vector<1x256xf32>
    %340 = vector.broadcast %339 : vector<1x256xf32> to vector<8x256xf32>
    %341 = arith.mulf %338, %340 : vector<8x256xf32>
    %c27_181 = arith.constant 27 : index
    %c0_182 = arith.constant 0 : index
    %c0_183 = arith.constant 0 : index
    %342 = vector.load %arg3[%c27_181, %c0_182, %c0_183] : memref<36x32x8xbf16, #tpu.memory_space<vmem>>, vector<1x32x8xbf16>
    %343 = vector.shape_cast %342 : vector<1x32x8xbf16> to vector<32x8xbf16>
    %344 = arith.truncf %341 : vector<8x256xf32> to vector<8x256xbf16>
    %cst_184 = arith.constant dense<0.000000e+00> : vector<32x256xf32>
    %345 = tpu.matmul %343, %344, %cst_184 {dimension_numbers = #tpu.dot_dimension_numbers<[1], [0], [0], [1], [0, 0, 1, 1], [], []>} : vector<32x8xbf16>, vector<8x256xbf16>, vector<32x256xf32> -> vector<32x256xf32>
    %346 = arith.addf %299, %345 : vector<32x256xf32>
    %c128_i32 = arith.constant 128 : i32
    %347 = tpu.dynamic_rotate %337 by %c128_i32 dim 1 : vector<8x256xf32>, i32 -> vector<8x256xf32>
    %c28 = arith.constant 28 : index
    %c0_185 = arith.constant 0 : index
    %348 = vector.load %arg4[%c28, %c0_185] : memref<36x256xf32, #tpu.memory_space<vmem>>, vector<1x256xf32>
    %349 = vector.broadcast %348 : vector<1x256xf32> to vector<8x256xf32>
    %350 = arith.mulf %347, %349 : vector<8x256xf32>
    %c28_186 = arith.constant 28 : index
    %c0_187 = arith.constant 0 : index
    %c0_188 = arith.constant 0 : index
    %351 = vector.load %arg3[%c28_186, %c0_187, %c0_188] : memref<36x32x8xbf16, #tpu.memory_space<vmem>>, vector<1x32x8xbf16>
    %352 = vector.shape_cast %351 : vector<1x32x8xbf16> to vector<32x8xbf16>
    %353 = arith.truncf %350 : vector<8x256xf32> to vector<8x256xbf16>
    %cst_189 = arith.constant dense<0.000000e+00> : vector<32x256xf32>
    %354 = tpu.matmul %352, %353, %cst_189 {dimension_numbers = #tpu.dot_dimension_numbers<[1], [0], [0], [1], [0, 0, 1, 1], [], []>} : vector<32x8xbf16>, vector<8x256xbf16>, vector<32x256xf32> -> vector<32x256xf32>
    %355 = arith.addf %346, %354 : vector<32x256xf32>
    %c120_i32 = arith.constant 120 : i32
    %356 = tpu.dynamic_rotate %337 by %c120_i32 dim 1 : vector<8x256xf32>, i32 -> vector<8x256xf32>
    %c29 = arith.constant 29 : index
    %c0_190 = arith.constant 0 : index
    %357 = vector.load %arg4[%c29, %c0_190] : memref<36x256xf32, #tpu.memory_space<vmem>>, vector<1x256xf32>
    %358 = vector.broadcast %357 : vector<1x256xf32> to vector<8x256xf32>
    %359 = arith.mulf %356, %358 : vector<8x256xf32>
    %c29_191 = arith.constant 29 : index
    %c0_192 = arith.constant 0 : index
    %c0_193 = arith.constant 0 : index
    %360 = vector.load %arg3[%c29_191, %c0_192, %c0_193] : memref<36x32x8xbf16, #tpu.memory_space<vmem>>, vector<1x32x8xbf16>
    %361 = vector.shape_cast %360 : vector<1x32x8xbf16> to vector<32x8xbf16>
    %362 = arith.truncf %359 : vector<8x256xf32> to vector<8x256xbf16>
    %cst_194 = arith.constant dense<0.000000e+00> : vector<32x256xf32>
    %363 = tpu.matmul %361, %362, %cst_194 {dimension_numbers = #tpu.dot_dimension_numbers<[1], [0], [0], [1], [0, 0, 1, 1], [], []>} : vector<32x8xbf16>, vector<8x256xbf16>, vector<32x256xf32> -> vector<32x256xf32>
    %364 = arith.addf %355, %363 : vector<32x256xf32>
    %c8_i32 = arith.constant 8 : i32
    %365 = tpu.dynamic_rotate %337 by %c8_i32 dim 1 : vector<8x256xf32>, i32 -> vector<8x256xf32>
    %c30 = arith.constant 30 : index
    %c0_195 = arith.constant 0 : index
    %366 = vector.load %arg4[%c30, %c0_195] : memref<36x256xf32, #tpu.memory_space<vmem>>, vector<1x256xf32>
    %367 = vector.broadcast %366 : vector<1x256xf32> to vector<8x256xf32>
    %368 = arith.mulf %365, %367 : vector<8x256xf32>
    %c30_196 = arith.constant 30 : index
    %c0_197 = arith.constant 0 : index
    %c0_198 = arith.constant 0 : index
    %369 = vector.load %arg3[%c30_196, %c0_197, %c0_198] : memref<36x32x8xbf16, #tpu.memory_space<vmem>>, vector<1x32x8xbf16>
    %370 = vector.shape_cast %369 : vector<1x32x8xbf16> to vector<32x8xbf16>
    %371 = arith.truncf %368 : vector<8x256xf32> to vector<8x256xbf16>
    %cst_199 = arith.constant dense<0.000000e+00> : vector<32x256xf32>
    %372 = tpu.matmul %370, %371, %cst_199 {dimension_numbers = #tpu.dot_dimension_numbers<[1], [0], [0], [1], [0, 0, 1, 1], [], []>} : vector<32x8xbf16>, vector<8x256xbf16>, vector<32x256xf32> -> vector<32x256xf32>
    %373 = arith.addf %364, %372 : vector<32x256xf32>
    %c31 = arith.constant 31 : index
    %c0_200 = arith.constant 0 : index
    %c0_201 = arith.constant 0 : index
    %374 = vector.load %arg3[%c31, %c0_200, %c0_201] : memref<36x32x8xbf16, #tpu.memory_space<vmem>>, vector<1x32x8xbf16>
    %375 = vector.shape_cast %374 : vector<1x32x8xbf16> to vector<32x8xbf16>
    %376 = arith.truncf %337 : vector<8x256xf32> to vector<8x256xbf16>
    %cst_202 = arith.constant dense<0.000000e+00> : vector<32x256xf32>
    %377 = tpu.matmul %375, %376, %cst_202 {dimension_numbers = #tpu.dot_dimension_numbers<[1], [0], [0], [1], [0, 0, 1, 1], [], []>} : vector<32x8xbf16>, vector<8x256xbf16>, vector<32x256xf32> -> vector<32x256xf32>
    %378 = arith.addf %373, %377 : vector<32x256xf32>
    %c248_i32 = arith.constant 248 : i32
    %379 = tpu.dynamic_rotate %337 by %c248_i32 dim 1 : vector<8x256xf32>, i32 -> vector<8x256xf32>
    %c32 = arith.constant 32 : index
    %c0_203 = arith.constant 0 : index
    %380 = vector.load %arg4[%c32, %c0_203] : memref<36x256xf32, #tpu.memory_space<vmem>>, vector<1x256xf32>
    %381 = vector.broadcast %380 : vector<1x256xf32> to vector<8x256xf32>
    %382 = arith.mulf %379, %381 : vector<8x256xf32>
    %c32_204 = arith.constant 32 : index
    %c0_205 = arith.constant 0 : index
    %c0_206 = arith.constant 0 : index
    %383 = vector.load %arg3[%c32_204, %c0_205, %c0_206] : memref<36x32x8xbf16, #tpu.memory_space<vmem>>, vector<1x32x8xbf16>
    %384 = vector.shape_cast %383 : vector<1x32x8xbf16> to vector<32x8xbf16>
    %385 = arith.truncf %382 : vector<8x256xf32> to vector<8x256xbf16>
    %cst_207 = arith.constant dense<0.000000e+00> : vector<32x256xf32>
    %386 = tpu.matmul %384, %385, %cst_207 {dimension_numbers = #tpu.dot_dimension_numbers<[1], [0], [0], [1], [0, 0, 1, 1], [], []>} : vector<32x8xbf16>, vector<8x256xbf16>, vector<32x256xf32> -> vector<32x256xf32>
    %387 = arith.addf %378, %386 : vector<32x256xf32>
    %c136_i32_208 = arith.constant 136 : i32
    %388 = tpu.dynamic_rotate %337 by %c136_i32_208 dim 1 : vector<8x256xf32>, i32 -> vector<8x256xf32>
    %c33 = arith.constant 33 : index
    %c0_209 = arith.constant 0 : index
    %389 = vector.load %arg4[%c33, %c0_209] : memref<36x256xf32, #tpu.memory_space<vmem>>, vector<1x256xf32>
    %390 = vector.broadcast %389 : vector<1x256xf32> to vector<8x256xf32>
    %391 = arith.mulf %388, %390 : vector<8x256xf32>
    %c33_210 = arith.constant 33 : index
    %c0_211 = arith.constant 0 : index
    %c0_212 = arith.constant 0 : index
    %392 = vector.load %arg3[%c33_210, %c0_211, %c0_212] : memref<36x32x8xbf16, #tpu.memory_space<vmem>>, vector<1x32x8xbf16>
    %393 = vector.shape_cast %392 : vector<1x32x8xbf16> to vector<32x8xbf16>
    %394 = arith.truncf %391 : vector<8x256xf32> to vector<8x256xbf16>
    %cst_213 = arith.constant dense<0.000000e+00> : vector<32x256xf32>
    %395 = tpu.matmul %393, %394, %cst_213 {dimension_numbers = #tpu.dot_dimension_numbers<[1], [0], [0], [1], [0, 0, 1, 1], [], []>} : vector<32x8xbf16>, vector<8x256xbf16>, vector<32x256xf32> -> vector<32x256xf32>
    %396 = arith.addf %387, %395 : vector<32x256xf32>
    %c128_i32_214 = arith.constant 128 : i32
    %397 = tpu.dynamic_rotate %337 by %c128_i32_214 dim 1 : vector<8x256xf32>, i32 -> vector<8x256xf32>
    %c34 = arith.constant 34 : index
    %c0_215 = arith.constant 0 : index
    %398 = vector.load %arg4[%c34, %c0_215] : memref<36x256xf32, #tpu.memory_space<vmem>>, vector<1x256xf32>
    %399 = vector.broadcast %398 : vector<1x256xf32> to vector<8x256xf32>
    %400 = arith.mulf %397, %399 : vector<8x256xf32>
    %c34_216 = arith.constant 34 : index
    %c0_217 = arith.constant 0 : index
    %c0_218 = arith.constant 0 : index
    %401 = vector.load %arg3[%c34_216, %c0_217, %c0_218] : memref<36x32x8xbf16, #tpu.memory_space<vmem>>, vector<1x32x8xbf16>
    %402 = vector.shape_cast %401 : vector<1x32x8xbf16> to vector<32x8xbf16>
    %403 = arith.truncf %400 : vector<8x256xf32> to vector<8x256xbf16>
    %cst_219 = arith.constant dense<0.000000e+00> : vector<32x256xf32>
    %404 = tpu.matmul %402, %403, %cst_219 {dimension_numbers = #tpu.dot_dimension_numbers<[1], [0], [0], [1], [0, 0, 1, 1], [], []>} : vector<32x8xbf16>, vector<8x256xbf16>, vector<32x256xf32> -> vector<32x256xf32>
    %405 = arith.addf %396, %404 : vector<32x256xf32>
    %c120_i32_220 = arith.constant 120 : i32
    %406 = tpu.dynamic_rotate %337 by %c120_i32_220 dim 1 : vector<8x256xf32>, i32 -> vector<8x256xf32>
    %c35 = arith.constant 35 : index
    %c0_221 = arith.constant 0 : index
    %407 = vector.load %arg4[%c35, %c0_221] : memref<36x256xf32, #tpu.memory_space<vmem>>, vector<1x256xf32>
    %408 = vector.broadcast %407 : vector<1x256xf32> to vector<8x256xf32>
    %409 = arith.mulf %406, %408 : vector<8x256xf32>
    %c35_222 = arith.constant 35 : index
    %c0_223 = arith.constant 0 : index
    %c0_224 = arith.constant 0 : index
    %410 = vector.load %arg3[%c35_222, %c0_223, %c0_224] : memref<36x32x8xbf16, #tpu.memory_space<vmem>>, vector<1x32x8xbf16>
    %411 = vector.shape_cast %410 : vector<1x32x8xbf16> to vector<32x8xbf16>
    %412 = arith.truncf %409 : vector<8x256xf32> to vector<8x256xbf16>
    %cst_225 = arith.constant dense<0.000000e+00> : vector<32x256xf32>
    %413 = tpu.matmul %411, %412, %cst_225 {dimension_numbers = #tpu.dot_dimension_numbers<[1], [0], [0], [1], [0, 0, 1, 1], [], []>} : vector<32x8xbf16>, vector<8x256xbf16>, vector<32x256xf32> -> vector<32x256xf32>
    %414 = arith.addf %405, %413 : vector<32x256xf32>
    %c0_226 = arith.constant 0 : index
    %c0_227 = arith.constant 0 : index
    %415 = vector.load %arg5[%c0_226, %c0_227] : memref<32x1xf32, #tpu.memory_space<vmem>>, vector<32x1xf32>
    %416 = vector.broadcast %415 : vector<32x1xf32> to vector<32x256xf32>
    %417 = arith.addf %414, %416 : vector<32x256xf32>
    %c0_228 = arith.constant 0 : index
    %c0_229 = arith.constant 0 : index
    %c0_230 = arith.constant 0 : index
    %418 = vector.load %arg2[%c0_228, %c0_229, %c0_230] : memref<1x32x256xf32, #tpu.memory_space<vmem>>, vector<1x8x256xf32>
    %419 = vector.shape_cast %418 : vector<1x8x256xf32> to vector<8x256xf32>
    %420 = vector.extract_strided_slice %417 {offsets = [0, 0], sizes = [8, 256], strides = [1, 1]} : vector<32x256xf32> to vector<8x256xf32>
    %cst_231 = arith.constant 5.000000e-01 : f32
    %421 = vector.broadcast %cst_231 : f32 to vector<8x256xf32>
    %422 = arith.mulf %421, %420 : vector<8x256xf32>
    %cst_232 = arith.constant 0.707106769 : f32
    %423 = vector.broadcast %cst_232 : f32 to vector<8x256xf32>
    %424 = arith.mulf %420, %423 : vector<8x256xf32>
    %425 = math.absf %424 : vector<8x256xf32>
    %cst_233 = arith.constant 0.327591091 : f32
    %426 = vector.broadcast %cst_233 : f32 to vector<8x256xf32>
    %427 = arith.mulf %426, %425 : vector<8x256xf32>
    %cst_234 = arith.constant 1.000000e+00 : f32
    %428 = vector.broadcast %cst_234 : f32 to vector<8x256xf32>
    %429 = arith.addf %428, %427 : vector<8x256xf32>
    %430 = tpu.reciprocal %429 {approx = true} : vector<8x256xf32> -> vector<8x256xf32>
    %cst_235 = arith.constant 1.06140542 : f32
    %431 = vector.broadcast %cst_235 : f32 to vector<8x256xf32>
    %432 = arith.mulf %431, %430 : vector<8x256xf32>
    %cst_236 = arith.constant -1.45315206 : f32
    %433 = vector.broadcast %cst_236 : f32 to vector<8x256xf32>
    %434 = arith.addf %432, %433 : vector<8x256xf32>
    %435 = arith.mulf %434, %430 : vector<8x256xf32>
    %cst_237 = arith.constant 1.42141378 : f32
    %436 = vector.broadcast %cst_237 : f32 to vector<8x256xf32>
    %437 = arith.addf %435, %436 : vector<8x256xf32>
    %438 = arith.mulf %437, %430 : vector<8x256xf32>
    %cst_238 = arith.constant -0.284496725 : f32
    %439 = vector.broadcast %cst_238 : f32 to vector<8x256xf32>
    %440 = arith.addf %438, %439 : vector<8x256xf32>
    %441 = arith.mulf %440, %430 : vector<8x256xf32>
    %cst_239 = arith.constant 0.254829586 : f32
    %442 = vector.broadcast %cst_239 : f32 to vector<8x256xf32>
    %443 = arith.addf %441, %442 : vector<8x256xf32>
    %444 = arith.mulf %443, %430 : vector<8x256xf32>
    %cst_240 = arith.constant 0.000000e+00 : f32
    %445 = vector.broadcast %cst_240 : f32 to vector<8x256xf32>
    %446 = arith.subf %445, %425 : vector<8x256xf32>
    %447 = arith.mulf %446, %425 : vector<8x256xf32>
    %448 = math.exp %447 : vector<8x256xf32>
    %449 = arith.mulf %444, %448 : vector<8x256xf32>
    %cst_241 = arith.constant 1.000000e+00 : f32
    %450 = vector.broadcast %cst_241 : f32 to vector<8x256xf32>
    %451 = arith.subf %450, %449 : vector<8x256xf32>
    %cst_242 = arith.constant 0.000000e+00 : f32
    %452 = vector.broadcast %cst_242 : f32 to vector<8x256xf32>
    %453 = arith.cmpf oge, %424, %452 : vector<8x256xf32>
    %cst_243 = arith.constant 0.000000e+00 : f32
    %454 = vector.broadcast %cst_243 : f32 to vector<8x256xf32>
    %455 = arith.subf %454, %451 : vector<8x256xf32>
    %456 = arith.select %453, %451, %455 : vector<8x256xi1>, vector<8x256xf32>
    %cst_244 = arith.constant 1.000000e+00 : f32
    %457 = vector.broadcast %cst_244 : f32 to vector<8x256xf32>
    %458 = arith.addf %457, %456 : vector<8x256xf32>
    %459 = arith.mulf %422, %458 : vector<8x256xf32>
    %460 = arith.mulf %459, %419 : vector<8x256xf32>
    %c0_245 = arith.constant 0 : index
    %c0_246 = arith.constant 0 : index
    %c0_247 = arith.constant 0 : index
    %461 = vector.load %arg6[%c0_245, %c0_246, %c0_247] : memref<1x32x256xf32, #tpu.memory_space<vmem>>, vector<1x8x256xf32>
    %462 = vector.shape_cast %461 : vector<1x8x256xf32> to vector<8x256xf32>
    %463 = vector.shape_cast %460 : vector<8x256xf32> to vector<1x8x256xf32>
    tpu.vector_store %arg6[%c0_245, %c0_246, %c0_247], %463 {strides = array<i32>} : memref<1x32x256xf32, #tpu.memory_space<vmem>>, vector<1x8x256xf32>,
    %c0_248 = arith.constant 0 : index
    %c8_249 = arith.constant 8 : index
    %c0_250 = arith.constant 0 : index
    %464 = vector.load %arg2[%c0_248, %c8_249, %c0_250] : memref<1x32x256xf32, #tpu.memory_space<vmem>>, vector<1x8x256xf32>
    %465 = vector.shape_cast %464 : vector<1x8x256xf32> to vector<8x256xf32>
    %466 = vector.extract_strided_slice %417 {offsets = [8, 0], sizes = [8, 256], strides = [1, 1]} : vector<32x256xf32> to vector<8x256xf32>
    %cst_251 = arith.constant 5.000000e-01 : f32
    %467 = vector.broadcast %cst_251 : f32 to vector<8x256xf32>
    %468 = arith.mulf %467, %466 : vector<8x256xf32>
    %cst_252 = arith.constant 0.707106769 : f32
    %469 = vector.broadcast %cst_252 : f32 to vector<8x256xf32>
    %470 = arith.mulf %466, %469 : vector<8x256xf32>
    %471 = math.absf %470 : vector<8x256xf32>
    %cst_253 = arith.constant 0.327591091 : f32
    %472 = vector.broadcast %cst_253 : f32 to vector<8x256xf32>
    %473 = arith.mulf %472, %471 : vector<8x256xf32>
    %cst_254 = arith.constant 1.000000e+00 : f32
    %474 = vector.broadcast %cst_254 : f32 to vector<8x256xf32>
    %475 = arith.addf %474, %473 : vector<8x256xf32>
    %476 = tpu.reciprocal %475 {approx = true} : vector<8x256xf32> -> vector<8x256xf32>
    %cst_255 = arith.constant 1.06140542 : f32
    %477 = vector.broadcast %cst_255 : f32 to vector<8x256xf32>
    %478 = arith.mulf %477, %476 : vector<8x256xf32>
    %cst_256 = arith.constant -1.45315206 : f32
    %479 = vector.broadcast %cst_256 : f32 to vector<8x256xf32>
    %480 = arith.addf %478, %479 : vector<8x256xf32>
    %481 = arith.mulf %480, %476 : vector<8x256xf32>
    %cst_257 = arith.constant 1.42141378 : f32
    %482 = vector.broadcast %cst_257 : f32 to vector<8x256xf32>
    %483 = arith.addf %481, %482 : vector<8x256xf32>
    %484 = arith.mulf %483, %476 : vector<8x256xf32>
    %cst_258 = arith.constant -0.284496725 : f32
    %485 = vector.broadcast %cst_258 : f32 to vector<8x256xf32>
    %486 = arith.addf %484, %485 : vector<8x256xf32>
    %487 = arith.mulf %486, %476 : vector<8x256xf32>
    %cst_259 = arith.constant 0.254829586 : f32
    %488 = vector.broadcast %cst_259 : f32 to vector<8x256xf32>
    %489 = arith.addf %487, %488 : vector<8x256xf32>
    %490 = arith.mulf %489, %476 : vector<8x256xf32>
    %cst_260 = arith.constant 0.000000e+00 : f32
    %491 = vector.broadcast %cst_260 : f32 to vector<8x256xf32>
    %492 = arith.subf %491, %471 : vector<8x256xf32>
    %493 = arith.mulf %492, %471 : vector<8x256xf32>
    %494 = math.exp %493 : vector<8x256xf32>
    %495 = arith.mulf %490, %494 : vector<8x256xf32>
    %cst_261 = arith.constant 1.000000e+00 : f32
    %496 = vector.broadcast %cst_261 : f32 to vector<8x256xf32>
    %497 = arith.subf %496, %495 : vector<8x256xf32>
    %cst_262 = arith.constant 0.000000e+00 : f32
    %498 = vector.broadcast %cst_262 : f32 to vector<8x256xf32>
    %499 = arith.cmpf oge, %470, %498 : vector<8x256xf32>
    %cst_263 = arith.constant 0.000000e+00 : f32
    %500 = vector.broadcast %cst_263 : f32 to vector<8x256xf32>
    %501 = arith.subf %500, %497 : vector<8x256xf32>
    %502 = arith.select %499, %497, %501 : vector<8x256xi1>, vector<8x256xf32>
    %cst_264 = arith.constant 1.000000e+00 : f32
    %503 = vector.broadcast %cst_264 : f32 to vector<8x256xf32>
    %504 = arith.addf %503, %502 : vector<8x256xf32>
    %505 = arith.mulf %468, %504 : vector<8x256xf32>
    %506 = arith.mulf %505, %465 : vector<8x256xf32>
    %c0_265 = arith.constant 0 : index
    %c8_266 = arith.constant 8 : index
    %c0_267 = arith.constant 0 : index
    %507 = vector.load %arg6[%c0_265, %c8_266, %c0_267] : memref<1x32x256xf32, #tpu.memory_space<vmem>>, vector<1x8x256xf32>
    %508 = vector.shape_cast %507 : vector<1x8x256xf32> to vector<8x256xf32>
    %509 = vector.shape_cast %506 : vector<8x256xf32> to vector<1x8x256xf32>
    tpu.vector_store %arg6[%c0_265, %c8_266, %c0_267], %509 {strides = array<i32>} : memref<1x32x256xf32, #tpu.memory_space<vmem>>, vector<1x8x256xf32>,
    %c0_268 = arith.constant 0 : index
    %c16_269 = arith.constant 16 : index
    %c0_270 = arith.constant 0 : index
    %510 = vector.load %arg2[%c0_268, %c16_269, %c0_270] : memref<1x32x256xf32, #tpu.memory_space<vmem>>, vector<1x8x256xf32>
    %511 = vector.shape_cast %510 : vector<1x8x256xf32> to vector<8x256xf32>
    %512 = vector.extract_strided_slice %417 {offsets = [16, 0], sizes = [8, 256], strides = [1, 1]} : vector<32x256xf32> to vector<8x256xf32>
    %cst_271 = arith.constant 5.000000e-01 : f32
    %513 = vector.broadcast %cst_271 : f32 to vector<8x256xf32>
    %514 = arith.mulf %513, %512 : vector<8x256xf32>
    %cst_272 = arith.constant 0.707106769 : f32
    %515 = vector.broadcast %cst_272 : f32 to vector<8x256xf32>
    %516 = arith.mulf %512, %515 : vector<8x256xf32>
    %517 = math.absf %516 : vector<8x256xf32>
    %cst_273 = arith.constant 0.327591091 : f32
    %518 = vector.broadcast %cst_273 : f32 to vector<8x256xf32>
    %519 = arith.mulf %518, %517 : vector<8x256xf32>
    %cst_274 = arith.constant 1.000000e+00 : f32
    %520 = vector.broadcast %cst_274 : f32 to vector<8x256xf32>
    %521 = arith.addf %520, %519 : vector<8x256xf32>
    %522 = tpu.reciprocal %521 {approx = true} : vector<8x256xf32> -> vector<8x256xf32>
    %cst_275 = arith.constant 1.06140542 : f32
    %523 = vector.broadcast %cst_275 : f32 to vector<8x256xf32>
    %524 = arith.mulf %523, %522 : vector<8x256xf32>
    %cst_276 = arith.constant -1.45315206 : f32
    %525 = vector.broadcast %cst_276 : f32 to vector<8x256xf32>
    %526 = arith.addf %524, %525 : vector<8x256xf32>
    %527 = arith.mulf %526, %522 : vector<8x256xf32>
    %cst_277 = arith.constant 1.42141378 : f32
    %528 = vector.broadcast %cst_277 : f32 to vector<8x256xf32>
    %529 = arith.addf %527, %528 : vector<8x256xf32>
    %530 = arith.mulf %529, %522 : vector<8x256xf32>
    %cst_278 = arith.constant -0.284496725 : f32
    %531 = vector.broadcast %cst_278 : f32 to vector<8x256xf32>
    %532 = arith.addf %530, %531 : vector<8x256xf32>
    %533 = arith.mulf %532, %522 : vector<8x256xf32>
    %cst_279 = arith.constant 0.254829586 : f32
    %534 = vector.broadcast %cst_279 : f32 to vector<8x256xf32>
    %535 = arith.addf %533, %534 : vector<8x256xf32>
    %536 = arith.mulf %535, %522 : vector<8x256xf32>
    %cst_280 = arith.constant 0.000000e+00 : f32
    %537 = vector.broadcast %cst_280 : f32 to vector<8x256xf32>
    %538 = arith.subf %537, %517 : vector<8x256xf32>
    %539 = arith.mulf %538, %517 : vector<8x256xf32>
    %540 = math.exp %539 : vector<8x256xf32>
    %541 = arith.mulf %536, %540 : vector<8x256xf32>
    %cst_281 = arith.constant 1.000000e+00 : f32
    %542 = vector.broadcast %cst_281 : f32 to vector<8x256xf32>
    %543 = arith.subf %542, %541 : vector<8x256xf32>
    %cst_282 = arith.constant 0.000000e+00 : f32
    %544 = vector.broadcast %cst_282 : f32 to vector<8x256xf32>
    %545 = arith.cmpf oge, %516, %544 : vector<8x256xf32>
    %cst_283 = arith.constant 0.000000e+00 : f32
    %546 = vector.broadcast %cst_283 : f32 to vector<8x256xf32>
    %547 = arith.subf %546, %543 : vector<8x256xf32>
    %548 = arith.select %545, %543, %547 : vector<8x256xi1>, vector<8x256xf32>
    %cst_284 = arith.constant 1.000000e+00 : f32
    %549 = vector.broadcast %cst_284 : f32 to vector<8x256xf32>
    %550 = arith.addf %549, %548 : vector<8x256xf32>
    %551 = arith.mulf %514, %550 : vector<8x256xf32>
    %552 = arith.mulf %551, %511 : vector<8x256xf32>
    %c0_285 = arith.constant 0 : index
    %c16_286 = arith.constant 16 : index
    %c0_287 = arith.constant 0 : index
    %553 = vector.load %arg6[%c0_285, %c16_286, %c0_287] : memref<1x32x256xf32, #tpu.memory_space<vmem>>, vector<1x8x256xf32>
    %554 = vector.shape_cast %553 : vector<1x8x256xf32> to vector<8x256xf32>
    %555 = vector.shape_cast %552 : vector<8x256xf32> to vector<1x8x256xf32>
    tpu.vector_store %arg6[%c0_285, %c16_286, %c0_287], %555 {strides = array<i32>} : memref<1x32x256xf32, #tpu.memory_space<vmem>>, vector<1x8x256xf32>,
    %c0_288 = arith.constant 0 : index
    %c24_289 = arith.constant 24 : index
    %c0_290 = arith.constant 0 : index
    %556 = vector.load %arg2[%c0_288, %c24_289, %c0_290] : memref<1x32x256xf32, #tpu.memory_space<vmem>>, vector<1x8x256xf32>
    %557 = vector.shape_cast %556 : vector<1x8x256xf32> to vector<8x256xf32>
    %558 = vector.extract_strided_slice %417 {offsets = [24, 0], sizes = [8, 256], strides = [1, 1]} : vector<32x256xf32> to vector<8x256xf32>
    %cst_291 = arith.constant 5.000000e-01 : f32
    %559 = vector.broadcast %cst_291 : f32 to vector<8x256xf32>
    %560 = arith.mulf %559, %558 : vector<8x256xf32>
    %cst_292 = arith.constant 0.707106769 : f32
    %561 = vector.broadcast %cst_292 : f32 to vector<8x256xf32>
    %562 = arith.mulf %558, %561 : vector<8x256xf32>
    %563 = math.absf %562 : vector<8x256xf32>
    %cst_293 = arith.constant 0.327591091 : f32
    %564 = vector.broadcast %cst_293 : f32 to vector<8x256xf32>
    %565 = arith.mulf %564, %563 : vector<8x256xf32>
    %cst_294 = arith.constant 1.000000e+00 : f32
    %566 = vector.broadcast %cst_294 : f32 to vector<8x256xf32>
    %567 = arith.addf %566, %565 : vector<8x256xf32>
    %568 = tpu.reciprocal %567 {approx = true} : vector<8x256xf32> -> vector<8x256xf32>
    %cst_295 = arith.constant 1.06140542 : f32
    %569 = vector.broadcast %cst_295 : f32 to vector<8x256xf32>
    %570 = arith.mulf %569, %568 : vector<8x256xf32>
    %cst_296 = arith.constant -1.45315206 : f32
    %571 = vector.broadcast %cst_296 : f32 to vector<8x256xf32>
    %572 = arith.addf %570, %571 : vector<8x256xf32>
    %573 = arith.mulf %572, %568 : vector<8x256xf32>
    %cst_297 = arith.constant 1.42141378 : f32
    %574 = vector.broadcast %cst_297 : f32 to vector<8x256xf32>
    %575 = arith.addf %573, %574 : vector<8x256xf32>
    %576 = arith.mulf %575, %568 : vector<8x256xf32>
    %cst_298 = arith.constant -0.284496725 : f32
    %577 = vector.broadcast %cst_298 : f32 to vector<8x256xf32>
    %578 = arith.addf %576, %577 : vector<8x256xf32>
    %579 = arith.mulf %578, %568 : vector<8x256xf32>
    %cst_299 = arith.constant 0.254829586 : f32
    %580 = vector.broadcast %cst_299 : f32 to vector<8x256xf32>
    %581 = arith.addf %579, %580 : vector<8x256xf32>
    %582 = arith.mulf %581, %568 : vector<8x256xf32>
    %cst_300 = arith.constant 0.000000e+00 : f32
    %583 = vector.broadcast %cst_300 : f32 to vector<8x256xf32>
    %584 = arith.subf %583, %563 : vector<8x256xf32>
    %585 = arith.mulf %584, %563 : vector<8x256xf32>
    %586 = math.exp %585 : vector<8x256xf32>
    %587 = arith.mulf %582, %586 : vector<8x256xf32>
    %cst_301 = arith.constant 1.000000e+00 : f32
    %588 = vector.broadcast %cst_301 : f32 to vector<8x256xf32>
    %589 = arith.subf %588, %587 : vector<8x256xf32>
    %cst_302 = arith.constant 0.000000e+00 : f32
    %590 = vector.broadcast %cst_302 : f32 to vector<8x256xf32>
    %591 = arith.cmpf oge, %562, %590 : vector<8x256xf32>
    %cst_303 = arith.constant 0.000000e+00 : f32
    %592 = vector.broadcast %cst_303 : f32 to vector<8x256xf32>
    %593 = arith.subf %592, %589 : vector<8x256xf32>
    %594 = arith.select %591, %589, %593 : vector<8x256xi1>, vector<8x256xf32>
    %cst_304 = arith.constant 1.000000e+00 : f32
    %595 = vector.broadcast %cst_304 : f32 to vector<8x256xf32>
    %596 = arith.addf %595, %594 : vector<8x256xf32>
    %597 = arith.mulf %560, %596 : vector<8x256xf32>
    %598 = arith.mulf %597, %557 : vector<8x256xf32>
    %c0_305 = arith.constant 0 : index
    %c24_306 = arith.constant 24 : index
    %c0_307 = arith.constant 0 : index
    %599 = vector.load %arg6[%c0_305, %c24_306, %c0_307] : memref<1x32x256xf32, #tpu.memory_space<vmem>>, vector<1x8x256xf32>
    %600 = vector.shape_cast %599 : vector<1x8x256xf32> to vector<8x256xf32>
    %601 = vector.shape_cast %598 : vector<8x256xf32> to vector<1x8x256xf32>
    tpu.vector_store %arg6[%c0_305, %c24_306, %c0_307], %601 {strides = array<i32>} : memref<1x32x256xf32, #tpu.memory_space<vmem>>, vector<1x8x256xf32>,
    return
  }
  func.func @transform_0(%arg0: i32) -> (i32, i32) {
    %c0_i32 = arith.constant 0 : i32
    %c0_i32_0 = arith.constant 0 : i32
    %c0_i32_1 = arith.constant 0 : i32
    return %c0_i32, %c0_i32_0 : i32, i32
  }
  func.func @transform_1(%arg0: i32) -> (i32, i32, i32) {
    %c0_i32 = arith.constant 0 : i32
    %c0_i32_0 = arith.constant 0 : i32
    %c0_i32_1 = arith.constant 0 : i32
    return %arg0, %c0_i32, %c0_i32_0 : i32, i32, i32
  }
  func.func @transform_2(%arg0: i32) -> (i32, i32, i32) {
    %c0_i32 = arith.constant 0 : i32
    %c0_i32_0 = arith.constant 0 : i32
    %c0_i32_1 = arith.constant 0 : i32
    %c0_i32_2 = arith.constant 0 : i32
    return %c0_i32, %c0_i32_0, %c0_i32_1 : i32, i32, i32
  }
  func.func @transform_3(%arg0: i32) -> (i32, i32) {
    %c0_i32 = arith.constant 0 : i32
    %c0_i32_0 = arith.constant 0 : i32
    %c0_i32_1 = arith.constant 0 : i32
    return %c0_i32, %c0_i32_0 : i32, i32
  }
  func.func @transform_4(%arg0: i32) -> (i32, i32) {
    %c0_i32 = arith.constant 0 : i32
    %c0_i32_0 = arith.constant 0 : i32
    %c0_i32_1 = arith.constant 0 : i32
    return %c0_i32, %c0_i32_0 : i32, i32
  }
  func.func @transform_5(%arg0: i32) -> (i32, i32, i32) {
    %c0_i32 = arith.constant 0 : i32
    %c0_i32_0 = arith.constant 0 : i32
    %c0_i32_1 = arith.constant 0 : i32
    return %arg0, %c0_i32, %c0_i32_0 : i32, i32, i32
  }
}

</mosaic_0001>

<bundles_post_ra>
// kernel: tpu_custom_call.1
= control target key start
LH: loop header
LB: loop body
LE: loop exit
PB: predicated region body
PF: predicated region fallthrough
CT: control target
= control target key end

     0   :  { %10 = vsyncpa [#allocation3], 0  ;;  %s7074_s0 = inlined_call_operand.vmem [shape: s32[2,256], index: 0, kind: input, shape index: {}]   ;;  %s7075_s1 = inlined_call_operand.vmem [shape: f32[2,32,256], index: 1, kind: input, shape index: {}]   ;;  %s7076_s2 = inlined_call_operand.vmem [shape: bf16[36,32,8], index: 2, kind: input, shape index: {}]   ;;  %s7077_s3 = inlined_call_operand.vmem [shape: f32[36,256], index: 3, kind: input, shape index: {}]   ;;  %s7078_s4 = inlined_call_operand.vmem [shape: f32[32,1], index: 4, kind: input, shape index: {}]   ;;  %s7079_s5 = inlined_call_operand.hbm [shape: f32[2,32,256], index: 5, kind: output, shape index: {}]  }
   0x1   :  { %12 = vsyncpa [#allocation3 + $0x1], 0  ;;  %s5642_s18 = smov 0   ;;  %s5644_s19 = smov 0  }
   0x2   :  { %s5646_s20 = smov 0   ;;  %s5648_s21 = smov 0  }
   0x3 LB: > { %s5663_s22 = sadd.s32 4294967295, %s5584_s21   ;;  %s4704_s23 = sadd.s32 4294967294, %s5584_s21   ;;  %s5584_s21 = sphi %s5648_s21, %s7114_s21   ;;  %s5580_s20 = sphi %s5646_s20, %s7113_s20   ;;  %s5576_s19 = sphi %s5644_s19, %s7112_s19   ;;  %s5572_s18 = sphi %s5642_s18, %s7111_s18  }
   0x4   : > { %s5667_s24 = sadd.s32 1, %s5584_s21   ;;  %s135_s25 = sadd.s32 1, %s5580_s20 }
   0x5   : > { %s132_s26 = ssub.s32 %s5584_s21, %s5667_s24  ;;  %p145_p0 = scmp.ne.s32.totalorder %s5580_s20, %s5576_s19 }
   0x6   : > { %p133_p1 = scmp.eq.s32.totalorder %s132_s26, 0  ;;  %p146_p2 = scmp.eq.s32.totalorder %s5663_s22, 1 }
   0x7   : > { %p151_p3 = scmp.ne.s32.totalorder %s5576_s19, %s5572_s18  ;;  %p152_p4 = scmp.eq.s32.totalorder %s4704_s23, 1 }
   0x8   : > { %s5678_s27 = scalar_select %p133_p1, %s5580_s20, %s135_s25  }
   0x9   : > { %p5680_p5 = por %p146_p2, %p145_p0  ;;  %p5684_p6 = por %p152_p4, %p151_p3 }
   0xa   : > { %p4707_p7 = scmp.ge.s32.totalorder %s5584_s21, 1  ;;  %p190_p8 = scmp.lt.s32.totalorder %s5584_s21, 3 }
   0xc   : > { %p191_p9 = pnand %p4707_p7, %p190_p8 }
   0xd   : > { %p218_p10 = scmp.lt.s32.totalorder (!%p191_p9), %s5663_s22, 1  ;;  %v5586_v0 = vmov (!%p191_p9), 0   ;;  %s5587_s10 = smov (!%p191_p9), 1   ;;  %v5716_v5 = vld [vmem:[%s7074_s0 + $0x1] ss:$2 sm:$0x3] (!%p191_p9)  ;;  %v245_v6 = vlaneseq (!%p191_p9) }
   0xe   : > { %194 = sbr.rel (%p191_p9) target bundleno = 1327 (0x52f), region = 40  ;;  %355 = vmatprep.mubr.bf16.mxu1 (!%p191_p9), %v5586_v0  ;;  %2426 = vmatprep.mubr.bf16.mxu0 (!%p191_p9), %v5586_v0  ;;  %s5588_s11 = smov (!%p191_p9), 127   ;;  %v229_v7 = vand.u32 (!%p191_p9), 1, %v5716_v5  ;;  %v233_v41 = vand.u32 (!%p191_p9), 2, %v5716_v5 }
   0xf   : > { %5414 = vset.pattern.permute.xlu0 (!%p191_p9), %v5586_v0  ;;  %5415 = vset.pattern.permute.xlu1 (!%p191_p9), %v5586_v0  ;;  %v253_v8 = vshrl.u32 (!%p191_p9), %v245_v6, 7  ;;  %v5724_v12 = vand.u32 (!%p191_p9), 127, %v245_v6  ;;  %s5589_s14 = smov (!%p191_p9), 126   ;;  %s5590_s15 = smov (!%p191_p9), 2  }
  0x10   : > { %vm230_vm0 = vcmp.eq.s32.totalorder (!%p191_p9), %v229_v7, 0  ;;  %vm234_vm5 = vcmp.eq.s32.totalorder (!%p191_p9), %v233_v41, 0  ;;  %s5591_s16 = smov (!%p191_p9), 112   ;;  %s5592_s17 = smov (!%p191_p9), 16  }
  0x11   : > { %v5719_v9 = vsub.s32 (!%p191_p9), 0, %v253_v8  ;;  %v5721_v10 = vsub.s32 (!%p191_p9), 1, %v253_v8  ;;  %v1227_v11 = vsel (!%p191_p9), %vm230_vm0, 1, %v5586_v0  ;;  %vm567_vm1 = vcmp.lt.s32.totalorder (!%p191_p9), %v5724_v12, 1  ;;  %s5593_s23 = smov (!%p191_p9), 124   ;;  %s5594_s25 = smov (!%p191_p9), 4  }
  0x12   : > { %vm769_vm2 = vcmp.lt.s32.totalorder (!%p191_p9), %v5724_v12, 127  ;;  %v2285_v42 = vsel (!%p191_p9), %vm234_vm5, 1, %v5586_v0  ;;  %vm7080_vm6 = vcmp.lt.s32.totalorder (!%p191_p9), %v5724_v12, 126  ;;  %vm7081_vm7 = vcmp.lt.s32.totalorder (!%p191_p9), %v5724_v12, 2  ;;  %s5596_s7 = smov (!%p191_p9), 32   ;;  %s5597_s8 = smov (!%p191_p9), 17  }
  0x13   : > { %v1231_v13 = vrot.slane (!%p191_p9), %v1227_v11, %v5719_v9  ;;  %v1235_v14 = vrot.slane (!%p191_p9), %v1227_v11, %v5721_v10  ;;  %v2289_v43 = vrot.slane (!%p191_p9), %v2285_v42, %v5719_v9  ;;  %v2293_v44 = vrot.slane (!%p191_p9), %v2285_v42, %v5721_v10  ;;  %v5819_v11 = vld [vmem:[%s7074_s0] ss:$2 sm:$0x3] (!%p191_p9)  ;;  %s5598_s12 = smov (!%p191_p9), 68   ;;  %s5604_s26 = smov (!%p191_p9), 34  }
  0x14   : > { %vm993_vm12 = vcmp.lt.s32.totalorder (!%p191_p9), %v5724_v12, 112  ;;  %vm274_vm13 = vcmp.lt.s32.totalorder (!%p191_p9), %v5724_v12, 16  ;;  %vm7082_vm0 = vcmp.lt.s32.totalorder (!%p191_p9), %v5724_v12, 124  ;;  %vm2683_vm5 = vcmp.lt.s32.totalorder (!%p191_p9), %v5724_v12, 4 }
  0x15   : > { %s219_s30 = scalar_select %p218_p10, %s5663_s22, 1  ;;  %vm5730_vm3 = vcmp.eq.s32.totalorder %v1231_v13, 1  ;;  %vm5734_vm4 = vcmp.eq.s32.totalorder %v1235_v14, 1  ;;  %vm5776_vm8 = vcmp.eq.s32.totalorder %v2289_v43, 1  ;;  %vm5780_vm9 = vcmp.eq.s32.totalorder %v2293_v44, 1 }
  0x16   : > { %v227_v13 = vand.u32 1, %v5819_v11 }
  0x17   : > { %s5068_s6 = sshll.u32 %s219_s30, 6  ;;  %s5600_s30 = smov 15  }
  0x18   : > { %s5699_s9 = scalar_lea.vmem %s7075_s1, %s5068_s6  ;;  %vm228_vm10 = vcmp.eq.s32.totalorder %v227_v13, 0  ;;  %s5595_s6 = smov 96  }
  0x19   : > { %v2255_v1 = vld [vmem:[%s5699_s9 + $0x20] sm:$0xff]  ;;  %v2256_v2 = vld [vmem:[%s5699_s9 + $0x28] sm:$0xff]  ;;  %v3309_v3 = vld [vmem:[%s5699_s9 + $0x38] sm:$0xff]  ;;  %v1254_v14 = vsel %vm228_vm10, 1, %v5586_v0 }
  0x1a   : > { %2263 = vrot.lane.b32.xlu1 %v2255_v1, %s5587_s10  ;;  %2257 = vrot.lane.b32.xlu0 %v2255_v1, %s5588_s11  ;;  %v3308_v4 = vld [vmem:[%s5699_s9 + $0x30] sm:$0xff]  ;;  %v5878_v48 = vld [vmem:[%s5699_s9 + $0x8] sm:$0xff] }
  0x1b   : > { %v5925_v13 = vld [vmem:[%s5699_s9 + $0x10] sm:$0xff] }
  0x1e   : > { %2265 = vrot.lane.b32.xlu1 %v2256_v2, %s5587_s10  ;;  %2259 = vrot.lane.b32.xlu0 %v2256_v2, %s5588_s11 }
  0x22   : > { %3312 = vrot.lane.b32.xlu1 %v3309_v3, %s5588_s11  ;;  %3310 = vrot.lane.b32.xlu0 %v3308_v4, %s5588_s11 }
  0x26   : > { %3318 = vrot.lane.b32.xlu1 %v3309_v3, %s5587_s10  ;;  %3316 = vrot.lane.b32.xlu0 %v3308_v4, %s5587_s10 }
  0x8c   : > { %v2264_v15 = vpop.permute.xlu1 %2263  ;;  %v2258_v16 = vpop.permute.xlu0 %2257 }
  0x90   : > { %v2266_v19 = vpop.permute.xlu1 %2265  ;;  %v2260_v20 = vpop.permute.xlu0 %2259 }
  0x91   : > { %v2267_v21 = vsel %vm567_vm1, %v2264_v15, %v2266_v19  ;;  %v2268_v22 = vsel %vm567_vm1, %v2266_v19, %v2264_v15  ;;  %v2261_v23 = vsel %vm769_vm2, %v2258_v16, %v2260_v20  ;;  %v2262_v24 = vsel %vm769_vm2, %v2260_v20, %v2258_v16 }
  0x92   : > { %v2269_v25 = vsel %vm5730_vm3, %v2261_v23, %v2268_v22  ;;  %v2270_v26 = vsel %vm5734_vm4, %v2262_v24, %v2267_v21  ;;  %v237_v15 = vand.u32 4, %v5716_v5  ;;  %v1258_v16 = vrot.slane %v1254_v14, %v5719_v9 }
  0x93   : > { %v2272_v27 = vmax.f32 %v2256_v2, %v2270_v26  ;;  %v2271_v28 = vmax.f32 %v2255_v1, %v2269_v25  ;;  %v1262_v19 = vrot.slane %v1254_v14, %v5721_v10  ;;  %v4712_v14 = vld [vmem:[%s7077_s3 + $0x1] ss:$8 sm:$0x3] }
  0x94   : > { %v3313_v29 = vpop.permute.xlu1 %3312  ;;  %v3311_v30 = vpop.permute.xlu0 %3310  ;;  %vm238_vm11 = vcmp.eq.s32.totalorder %v237_v15, 0  ;;  %vm5828_vm14 = vcmp.eq.s32.totalorder %v1258_v16, 1 }
  0x95   : > { %2275 = vrot.lane.b32.xlu1 %v2272_v27, %s5589_s14  ;;  %2273 = vrot.lane.b32.xlu0 %v2271_v28, %s5589_s14  ;;  %v3314_v31 = vsel %vm769_vm2, %v3311_v30, %v3313_v29  ;;  %v3315_v32 = vsel %vm769_vm2, %v3313_v29, %v3311_v30  ;;  %vm5832_vm15 = vcmp.eq.s32.totalorder %v1262_v19, 1  ;;  %v3354_v25 = vsel %vm238_vm11, 1, %v5586_v0 }
  0x96   : > { %vm2035_vm11 = vcmp.lt.s32.totalorder %v5724_v12, 96  ;;  %v283_v19 = vrot.slane %v4712_v14, %v5719_v9 }
  0x98   : > { %v3319_v33 = vpop.permute.xlu1 %3318  ;;  %v3317_v34 = vpop.permute.xlu0 %3316 }
  0x99   : > { %v3320_v35 = vsel %vm567_vm1, %v3317_v34, %v3319_v33  ;;  %v3321_v36 = vsel %vm567_vm1, %v3319_v33, %v3317_v34  ;;  %2281 = vrot.lane.b32.xlu1 %v2272_v27, %s5590_s15  ;;  %2279 = vrot.lane.b32.xlu0 %v2271_v28, %s5590_s15  ;;  %v3358_v34 = vrot.slane %v3354_v25, %v5719_v9 }
  0x9a   : > { %v3322_v37 = vsel %vm5730_vm3, %v3314_v31, %v3321_v36  ;;  %v3323_v38 = vsel %vm5734_vm4, %v3315_v32, %v3320_v35  ;;  %v3362_v35 = vrot.slane %v3354_v25, %v5721_v10 }
  0x9b   : > { %v3324_v39 = vmax.f32 %v3308_v4, %v3322_v37  ;;  %v3325_v40 = vmax.f32 %v3309_v3, %v3323_v38 }
  0x9d   : > { %3326 = vrot.lane.b32.xlu0 %v3324_v39, %s5589_s14  ;;  %3328 = vrot.lane.b32.xlu1 %v3325_v40, %s5589_s14 }
  0xa1   : > { %3332 = vrot.lane.b32.xlu0 %v3324_v39, %s5590_s15  ;;  %3334 = vrot.lane.b32.xlu1 %v3325_v40, %s5590_s15 }
 0x107   : > { %v2276_v45 = vpop.permute.xlu1 %2275  ;;  %v2274_v46 = vpop.permute.xlu0 %2273 }
 0x108   : > { %v2277_v51 = vsel %vm7080_vm6, %v2274_v46, %v2276_v45  ;;  %v2278_v52 = vsel %vm7080_vm6, %v2276_v45, %v2274_v46 }
 0x10b   : > { %v2282_v49 = vpop.permute.xlu1 %2281  ;;  %v2280_v50 = vpop.permute.xlu0 %2279 }
 0x10c   : > { %v2283_v53 = vsel %vm7081_vm7, %v2280_v50, %v2282_v49  ;;  %v2284_v54 = vsel %vm7081_vm7, %v2282_v49, %v2280_v50  ;;  %v5881_v49 = vld [vmem:[%s5699_s9] sm:$0xff]  ;;  %v231_v50 = vand.u32 2, %v5819_v11 }
 0x10d   : > { %v2296_v55 = vsel %vm5776_vm8, %v2277_v51, %v2284_v54  ;;  %v2297_v56 = vsel %vm5780_vm9, %v2278_v52, %v2283_v53 }
 0x10e   : > { %v2298_v57 = vmax.f32 %v2271_v28, %v2296_v55  ;;  %v2299_v58 = vmax.f32 %v2272_v27, %v2297_v56  ;;  %vm232_vm10 = vcmp.eq.s32.totalorder %v231_v50, 0  ;;  %v5416_v50 = vld [vmem:[%s7076_s2 + $0x10] sm:$0xff]   ;;  %v4905_v56 = vld [vmem:[%s7077_s3 + $0x24] ss:$8 sm:$0x3] }
 0x10f   : > { %v3329_v59 = vpop.permute.xlu1 %3328  ;;  %v3327_v60 = vpop.permute.xlu0 %3326  ;;  %v2328_v51 = vsel %vm232_vm10, 1, %v5586_v0  ;;  %vm247_vm10 = vcmp.lt.s32.totalorder %v5724_v12, 17 }
 0x110   : > { %2300 = vrot.lane.b32.xlu0 %v2298_v57, %s5591_s16  ;;  %2302 = vrot.lane.b32.xlu1 %v2299_v58, %s5591_s16  ;;  %v3330_v61 = vsel %vm7080_vm6, %v3327_v60, %v3329_v59  ;;  %v3331_v62 = vsel %vm7080_vm6, %v3329_v59, %v3327_v60  ;;  %v2332_v52 = vrot.slane %v2328_v51, %v5719_v9 }
 0x111   : > { %v2336_v53 = vrot.slane %v2328_v51, %v5721_v10 }
 0x113   : > { %v3335_v63 = vpop.permute.xlu1 %3334  ;;  %v3333_v1 = vpop.permute.xlu0 %3332  ;;  %vm5899_vm6 = vcmp.eq.s32.totalorder %v2336_v53, 1 }
 0x114   : > { %v3336_v2 = vsel %vm7081_vm7, %v3333_v1, %v3335_v63  ;;  %v3337_v3 = vsel %vm7081_vm7, %v3335_v63, %v3333_v1  ;;  %2306 = vrot.lane.b32.xlu0 %v2298_v57, %s5592_s17  ;;  %2308 = vrot.lane.b32.xlu1 %v2299_v58, %s5592_s17  ;;  %vm316_vm7 = vcmask 1043456  }
 0x115   : > { %v3338_v4 = vsel %vm5776_vm8, %v3330_v61, %v3337_v3  ;;  %v3339_v6 = vsel %vm5780_vm9, %v3331_v62, %v3336_v2  ;;  %vm3363_vm8 = vcmp.eq.s32.totalorder %v3358_v34, 1  ;;  %vm3364_vm9 = vcmp.eq.s32.totalorder %v3362_v35, 1 }
 0x116   : > { %v3340_v7 = vmax.f32 %v3324_v39, %v3338_v4  ;;  %v3341_v8 = vmax.f32 %v3325_v40, %v3339_v6 }
 0x118   : > { %3342 = vrot.lane.b32.xlu0 %v3340_v7, %s5593_s23  ;;  %3344 = vrot.lane.b32.xlu1 %v3341_v8, %s5593_s23 }
 0x11c   : > { %3348 = vrot.lane.b32.xlu0 %v3340_v7, %s5594_s25  ;;  %3350 = vrot.lane.b32.xlu1 %v3341_v8, %s5594_s25 }
 0x182   : > { %v2303_v20 = vpop.permute.xlu1 %2302  ;;  %v2301_v21 = vpop.permute.xlu0 %2300 }
 0x183   : > { %v2304_v26 = vsel %vm993_vm12, %v2301_v21, %v2303_v20  ;;  %v2305_v27 = vsel %vm993_vm12, %v2303_v20, %v2301_v21  ;;  %v287_v20 = vrot.slane %v4712_v14, %v5721_v10  ;;  %v250_v21 = vld [vmem:[%s7077_s3] ss:$8 sm:$0x3] }
 0x186   : > { %v2309_v5 = vpop.permute.xlu1 %2308  ;;  %v2307_v24 = vpop.permute.xlu0 %2306 }
 0x187   : > { %v2310_v28 = vsel %vm274_vm13, %v2307_v24, %v2309_v5  ;;  %v2311_v29 = vsel %vm274_vm13, %v2309_v5, %v2307_v24 }
 0x188   : > { %v2312_v30 = vsel %vm5828_vm14, %v2304_v26, %v2311_v29  ;;  %v2313_v31 = vsel %vm5832_vm15, %v2305_v27, %v2310_v28 }
 0x189   : > { %v2314_v32 = vmax.f32 %v2298_v57, %v2312_v30  ;;  %v2315_v33 = vmax.f32 %v2299_v58, %v2313_v31  ;;  %v255_v30 = vrot.slane %v250_v21, %v5719_v9  ;;  %v259_v31 = vrot.slane %v250_v21, %v5721_v10  ;;  %v5417_v21 = vld [vmem:[%s7076_s2 + $0x120] sm:$0xff]  }
 0x18a   : > { %v3345_v36 = vpop.permute.xlu1 %3344  ;;  %v3343_v37 = vpop.permute.xlu0 %3342 }
 0x18b   : > { %2316 = vrot.lane.b32.xlu0 %v2314_v32, %s5595_s6  ;;  %2318 = vrot.lane.b32.xlu1 %v2315_v33, %s5595_s6  ;;  %v3346_v38 = vsel %vm7082_vm0, %v3343_v37, %v3345_v36  ;;  %v3347_v41 = vsel %vm7082_vm0, %v3345_v36, %v3343_v37  ;;  %vm309_vm0 = vcmask 64512  }
 0x18e   : > { %v3351_v39 = vpop.permute.xlu1 %3350  ;;  %v3349_v40 = vpop.permute.xlu0 %3348 }
 0x18f   : > { %v3352_v42 = vsel %vm2683_vm5, %v3349_v40, %v3351_v39  ;;  %v3353_v43 = vsel %vm2683_vm5, %v3351_v39, %v3349_v40  ;;  %2322 = vrot.lane.b32.xlu0 %v2314_v32, %s5596_s7  ;;  %2324 = vrot.lane.b32.xlu1 %v2315_v33, %s5596_s7 }
 0x190   : > { %v3365_v44 = vsel %vm3363_vm8, %v3346_v38, %v3353_v43  ;;  %v3366_v45 = vsel %vm3364_vm9, %v3347_v41, %v3352_v42  ;;  %vm1385_vm8 = vcmp.lt.s32.totalorder %v5724_v12, 32  ;;  %vm5895_vm9 = vcmp.eq.s32.totalorder %v2332_v52, 1 }
 0x191   : > { %v5865_v46 = vmax.f32 %v3340_v7, %v3365_v44  ;;  %v5867_v47 = vmax.f32 %v3341_v8, %v3366_v45  ;;  %v5922_v8 = vld [vmem:[%s5699_s9 + $0x18] sm:$0xff] }
 0x193   : > { %3369 = vrot.lane.b32.xlu0 %v5865_v46, %s5591_s16  ;;  %3371 = vrot.lane.b32.xlu1 %v5867_v47, %s5591_s16 }
 0x197   : > { %3375 = vrot.lane.b32.xlu0 %v5865_v46, %s5592_s17  ;;  %3377 = vrot.lane.b32.xlu1 %v5867_v47, %s5592_s17 }
 0x19b   : > { %272 = vrot.lane.b32.xlu1 %v5878_v48, %s5592_s17  ;;  %270 = vrot.lane.b32.xlu0 %v5881_v49, %s5592_s17 }
 0x19f   : > { %243 = vrot.lane.b32.xlu1 %v5878_v48, %s5597_s8  ;;  %241 = vrot.lane.b32.xlu0 %v5881_v49, %s5597_s8  ;;  %s5601_s8 = smov 60  }
 0x1fd   : > { %v2319_v54 = vpop.permute.xlu1 %2318  ;;  %v2317_v55 = vpop.permute.xlu0 %2316 }
 0x1fe   : > { %v2320_v60 = vsel %vm2035_vm11, %v2317_v55, %v2319_v54  ;;  %v2321_v61 = vsel %vm2035_vm11, %v2319_v54, %v2317_v55  ;;  %v5425_v55 = vld [vmem:[%s7076_s2] sm:$0xff]  }
 0x201   : > { %v2325_v58 = vpop.permute.xlu1 %2324  ;;  %v2323_v59 = vpop.permute.xlu0 %2322 }
 0x202   : > { %v2326_v62 = vsel %vm1385_vm8, %v2323_v59, %v2325_v58  ;;  %v2327_v63 = vsel %vm1385_vm8, %v2325_v58, %v2323_v59  ;;  %v5426_v58 = vld [vmem:[%s7076_s2 + $0x8] sm:$0xff]  }
 0x203   : > { %v2339_v1 = vsel %vm5895_vm9, %v2320_v60, %v2327_v63  ;;  %v2340_v2 = vsel %vm5899_vm6, %v2321_v61, %v2326_v62  ;;  %v4885_v59 = vld [vmem:[%s7077_s3 + $0x22] ss:$8 sm:$0x3] }
 0x204   : > { %v5915_v3 = vmax.f32 %v2314_v32, %v2339_v1  ;;  %v5917_v4 = vmax.f32 %v2315_v33, %v2340_v2  ;;  %v2356_v60 = vrot.slane %v4885_v59, %v5719_v9  ;;  %v2360_v61 = vrot.slane %v4885_v59, %v5721_v10 }
 0x205   : > { %v3372_v6 = vpop.permute.xlu1 %3371  ;;  %v3370_v7 = vpop.permute.xlu0 %3369 }
 0x206   : > { %2345 = vrot.lane.b32.xlu1 %v5917_v4, %s5598_s12  ;;  %2343 = vrot.lane.b32.xlu0 %v5915_v3, %s5598_s12  ;;  %v3373_v33 = vsel %vm993_vm12, %v3370_v7, %v3372_v6  ;;  %v3374_v34 = vsel %vm993_vm12, %v3372_v6, %v3370_v7  ;;  %s5599_s12 = smov 64  }
 0x209   : > { %v3378_v15 = vpop.permute.xlu1 %3377  ;;  %v3376_v16 = vpop.permute.xlu0 %3375 }
 0x20a   : > { %1217 = vrot.lane.b32.xlu1 %v5922_v8, %s5588_s11  ;;  %1215 = vrot.lane.b32.xlu0 %v5925_v13, %s5588_s11  ;;  %v3379_v5 = vsel %vm274_vm13, %v3376_v16, %v3378_v15  ;;  %v3380_v26 = vsel %vm274_vm13, %v3378_v15, %v3376_v16 }
 0x20b   : > { %v3381_v35 = vsel %vm5828_vm14, %v3373_v33, %v3380_v26  ;;  %v3382_v36 = vsel %vm5832_vm15, %v3374_v34, %v3379_v5  ;;  %v4895_v5 = vld [vmem:[%s7077_s3 + $0x23] ss:$8 sm:$0x3] }
 0x20c   : > { %v5976_v51 = vmax.f32 %v5867_v47, %v3382_v36  ;;  %v5979_v52 = vmax.f32 %v5865_v46, %v3381_v35  ;;  %v5424_v46 = vld [vmem:[%s7076_s2 + $0x18] sm:$0xff]   ;;  %v2472_v33 = vrot.slane %v4895_v5, %v5721_v10 }
 0x20d   : > { %v273_v24 = vpop.permute.xlu1 %272  ;;  %v271_v25 = vpop.permute.xlu0 %270 }
 0x20e   : > { %1223 = vrot.lane.b32.xlu1 %v5922_v8, %s5587_s10  ;;  %1221 = vrot.lane.b32.xlu0 %v5925_v13, %s5587_s10  ;;  %v275_v27 = vsel %vm274_vm13, %v271_v25, %v273_v24  ;;  %v276_v28 = vsel %vm274_vm13, %v273_v24, %v271_v25 }
 0x20f   : > { %v290_v29 = vmul.f32 %v283_v19, %v276_v28  ;;  %v291_v32 = vmul.f32 %v287_v20, %v275_v27 }
 0x211   : > { %v244_v37 = vpop.permute.xlu1 %243  ;;  %v242_v38 = vpop.permute.xlu0 %241  ;;  %v298_v39 = vpack.c.bf16 %v291_v32, %v291_v32  ;;  %v297_v40 = vpack.c.bf16 %v290_v29, %v290_v29  ;;  %v2468_v32 = vrot.slane %v4895_v5, %v5719_v9 }
 0x212   : > { %2457 = vrot.lane.b32.xlu1 %v5917_v4, %s5599_s12  ;;  %2455 = vrot.lane.b32.xlu0 %v5915_v3, %s5599_s12  ;;  %v248_v41 = vsel %vm247_vm10, %v242_v38, %v244_v37  ;;  %v249_v42 = vsel %vm247_vm10, %v244_v37, %v242_v38  ;;  %vm2347_vm10 = vcmp.lt.s32.totalorder %v5724_v12, 68  ;;  %v5418_v38 = vld [vmem:[%s7076_s2 + $0x128] sm:$0xff]  }
 0x213   : > { %v262_v43 = vmul.f32 %v255_v30, %v249_v42  ;;  %v263_v44 = vmul.f32 %v259_v31, %v248_v41  ;;  %4719 = vmatprep.subr.msk.bf16.mxu1 %vm316_vm7, %v298_v39  ;;  %v318_v45 = vsel %vm316_vm7, %v297_v40, 0 }
 0x214   : > { %324 = vmatpush1.bf16.msra.mxu1 %v318_v45 }
 0x215   : > { %v268_v53 = vpack.c.bf16 %v262_v43, %v262_v43  ;;  %v269_v54 = vpack.c.bf16 %v263_v44, %v263_v44  ;;  %v4727_v44 = vld [vmem:[%s7077_s3 + $0x2] ss:$8 sm:$0x3] }
 0x216   : > { %3387 = vrot.lane.b32.xlu1 %v5976_v51, %s5595_s6  ;;  %3385 = vrot.lane.b32.xlu0 %v5979_v52, %s5595_s6  ;;  %v464_v59 = vrot.slane %v4727_v44, %v5719_v9 }
 0x217   : > { %4724 = vmatprep.subr.msk.bf16.mxu1 %vm316_vm7, %v269_v54  ;;  %4720 = vmatmul.mubr.msk.bf16.vlgmr.msra.gmra.mrb[0].mxu1 %vm309_vm0, %v5416_v50  ;;  %v393_v47 = vsel %vm316_vm7, %v268_v53, 0 }
 0x218   : > { %399 = vmatpush1.bf16.msra.mxu1 %v393_v47  ;;  %365 = vmatprep.mubr.bf16.mxu1 %v5586_v0 }
 0x21a   : > { %3393 = vrot.lane.b32.xlu1 %v5976_v51, %s5596_s7  ;;  %3391 = vrot.lane.b32.xlu0 %v5979_v52, %s5596_s7 }
 0x21e   : > { %453 = vrot.lane.b32.xlu1 %v5878_v48, %s5600_s30  ;;  %451 = vrot.lane.b32.xlu0 %v5881_v49, %s5600_s30 }
 0x21f   : > { %4721 = vmatmul.mubr.msk.bf16.gmra.mrb[4].mxu1 %vm309_vm0, %v5424_v46 }
 0x220   : > { %430 = vmatprep.mubr.bf16.mxu1 %v5586_v0 }
 0x222   : > { %2569 = vrot.lane.b32.xlu1 %v5917_v4, %s5601_s8  ;;  %2567 = vrot.lane.b32.xlu0 %v5915_v3, %s5601_s8  ;;  %s5607_s8 = smov 120  }
 0x226   : > { %565 = vrot.lane.b32.xlu1 %v5878_v48, %s5587_s10  ;;  %563 = vrot.lane.b32.xlu0 %v5881_v49, %s5587_s10 }
 0x227   : > { %4725 = vmatmul.mubr.msk.bf16.vlgmr.msra.gmra.mrb[0].mxu1 %vm309_vm0, %v5425_v55 }
 0x228   : > { %440 = vmatprep.mubr.bf16.mxu1 %v5586_v0 }
 0x22a   : > { %2681 = vrot.lane.b32.xlu1 %v5917_v4, %s5594_s25  ;;  %2679 = vrot.lane.b32.xlu0 %v5915_v3, %s5594_s25  ;;  %s215_s25 = sand.u32 1, %s5576_s19  }
 0x22e   : > { %767 = vrot.lane.b32.xlu1 %v5878_v48, %s5588_s11  ;;  %765 = vrot.lane.b32.xlu0 %v5881_v49, %s5588_s11  ;;  %s5605_s11 = smov 8  }
 0x22f   : > { %4726 = vmatmul.mubr.msk.bf16.gmra.mrb[4].mxu1 %vm309_vm0, %v5426_v58 }
 0x230   : > { %534 = vmatprep.mubr.bf16.mxu1 %v5586_v0 }
 0x278   : > { %v2346_v62 = vpop.permute.xlu1 %2345  ;;  %v2344_v63 = vpop.permute.xlu0 %2343 }
 0x279   : > { %v6030_v1 = vsel %vm2347_vm10, %v2344_v63, %v2346_v62  ;;  %v6032_v2 = vsel %vm2347_vm10, %v2346_v62, %v2344_v63  ;;  %vm2459_vm10 = vcmp.lt.s32.totalorder %v5724_v12, 64 }
 0x27a   : > { %v2363_v6 = vmul.f32 %v2356_v60, %v6032_v2  ;;  %v2364_v7 = vmul.f32 %v2360_v61, %v6030_v1  ;;  %v468_v60 = vrot.slane %v4727_v44, %v5721_v10  ;;  %v5419_v61 = vld [vmem:[%s7076_s2 + $0x130] sm:$0xff]  }
 0x27c   : > { %v1218_v14 = vpop.permute.xlu1 %1217  ;;  %v1216_v15 = vpop.permute.xlu0 %1215  ;;  %v2371_v16 = vpack.c.bf16 %v2364_v7, %v2364_v7  ;;  %v2370_v19 = vpack.c.bf16 %v2363_v6, %v2363_v6 }
 0x27d   : > { %v1219_v26 = vsel %vm769_vm2, %v1216_v15, %v1218_v14  ;;  %v1220_v27 = vsel %vm769_vm2, %v1218_v14, %v1216_v15 }
 0x27e   : > { %4892 = vmatprep.subr.msk.bf16.mxu0 %vm316_vm7, %v2371_v16  ;;  %v2389_v20 = vsel %vm316_vm7, %v2370_v19, 0  ;;  %v2584_v16 = vrot.slane %v4905_v56, %v5721_v10  ;;  %v4737_v19 = vld [vmem:[%s7077_s3 + $0x3] ss:$8 sm:$0x3] }
 0x27f   : > { %2395 = vmatpush1.bf16.msra.mxu0 %v2389_v20 }
 0x280   : > { %v1224_v24 = vpop.permute.xlu1 %1223  ;;  %v1222_v25 = vpop.permute.xlu0 %1221 }
 0x281   : > { %v1225_v28 = vsel %vm567_vm1, %v1222_v25, %v1224_v24  ;;  %v1226_v29 = vsel %vm567_vm1, %v1224_v24, %v1222_v25 }
 0x282   : > { %v1238_v30 = vsel %vm5730_vm3, %v1219_v26, %v1226_v29  ;;  %v1239_v31 = vsel %vm5734_vm4, %v1220_v27, %v1225_v28  ;;  %4893 = vmatmul.mubr.msk.bf16.vlgmr.msra.gmra.mrb[0].mxu0 %vm309_vm0, %v5417_v21  ;;  %vm455_vm3 = vcmp.lt.s32.totalorder %v5724_v12, 15  ;;  %vm2571_vm4 = vcmp.lt.s32.totalorder %v5724_v12, 60 }
 0x283   : > { %v6061_v34 = vmax.f32 %v5925_v13, %v1238_v30  ;;  %v6064_v35 = vmax.f32 %v5922_v8, %v1239_v31  ;;  %2436 = vmatprep.mubr.bf16.mxu0 %v5586_v0  ;;  %v576_v29 = vrot.slane %v4737_v19, %v5719_v9  ;;  %v580_v30 = vrot.slane %v4737_v19, %v5721_v10  ;;  %v5420_v31 = vld [vmem:[%s7076_s2 + $0x138] sm:$0xff]  }
 0x284   : > { %v2458_v36 = vpop.permute.xlu1 %2457  ;;  %v2456_v17 = vpop.permute.xlu0 %2455 }
 0x285   : > { %v6069_v18 = vsel %vm2459_vm10, %v2456_v17, %v2458_v36  ;;  %v6073_v37 = vsel %vm2459_vm10, %v2458_v36, %v2456_v17  ;;  %1242 = vrot.lane.b32.xlu0 %v6061_v34, %s5591_s16  ;;  %1244 = vrot.lane.b32.xlu1 %v6064_v35, %s5591_s16 }
 0x286   : > { %v2475_v8 = vmul.f32 %v2468_v32, %v6073_v37  ;;  %v2476_v13 = vmul.f32 %v2472_v33, %v6069_v18  ;;  %v4915_v32 = vld [vmem:[%s7077_s3 + $0x25] ss:$8 sm:$0x3] }
 0x288   : > { %v2482_v39 = vpack.c.bf16 %v2475_v8, %v2475_v8  ;;  %v2483_v40 = vpack.c.bf16 %v2476_v13, %v2476_v13  ;;  %v3388_v41 = vpop.permute.xlu1 %3387  ;;  %v3386_v42 = vpop.permute.xlu0 %3385 }
 0x289   : > { %1248 = vrot.lane.b32.xlu0 %v6061_v34, %s5592_s17  ;;  %1250 = vrot.lane.b32.xlu1 %v6064_v35, %s5592_s17  ;;  %v3389_v45 = vsel %vm2035_vm11, %v3386_v42, %v3388_v41  ;;  %v3390_v54 = vsel %vm2035_vm11, %v3388_v41, %v3386_v42  ;;  %v2692_v41 = vrot.slane %v4915_v32, %v5719_v9 }
 0x28a   : > { %4894 = vmatmul.mubr.msk.bf16.gmra.mrb[4].mxu0 %vm309_vm0, %v5418_v38  ;;  %4902 = vmatprep.subr.msk.bf16.mxu0 %vm316_vm7, %v2483_v40  ;;  %v2501_v43 = vsel %vm316_vm7, %v2482_v39, 0  ;;  %v5427_v38 = vld [vmem:[%s7076_s2 + $0x20] sm:$0xff]  }
 0x28b   : > { %2507 = vmatpush1.bf16.msra.mxu0 %v2501_v43  ;;  %2538 = vmatprep.mubr.bf16.mxu0 %v5586_v0 }
 0x28c   : > { %v3394_v50 = vpop.permute.xlu1 %3393  ;;  %v3392_v53 = vpop.permute.xlu0 %3391 }
 0x28d   : > { %v3395_v47 = vsel %vm1385_vm8, %v3392_v53, %v3394_v50  ;;  %v3396_v46 = vsel %vm1385_vm8, %v3394_v50, %v3392_v53  ;;  %2881 = vrot.lane.b32.xlu0 %v5915_v3, %s5593_s23  ;;  %2883 = vrot.lane.b32.xlu1 %v5917_v4, %s5593_s23 }
 0x28e   : > { %v3397_v55 = vsel %vm5895_vm9, %v3389_v45, %v3396_v46  ;;  %v3398_v58 = vsel %vm5899_vm6, %v3390_v54, %v3395_v47  ;;  %v2696_v45 = vrot.slane %v4915_v32, %v5721_v10  ;;  %v681_v46 = vpack.c.bf16 %v5878_v48, %v5878_v48 }
 0x28f   : > { %v6118_v62 = vmax.f32 %v5979_v52, %v3397_v55  ;;  %v6121_v63 = vmax.f32 %v5976_v51, %v3398_v58  ;;  %v2580_v51 = vrot.slane %v4905_v56, %v5719_v9  ;;  %vm3426_vm9 = vcmp.lt.s32.totalorder %v5724_v12, 8 }
 0x290   : > { %v454_v57 = vpop.permute.xlu1 %453  ;;  %v452_v6 = vpop.permute.xlu0 %451 }
 0x291   : > { %v456_v7 = vsel %vm455_vm3, %v452_v6, %v454_v57  ;;  %v457_v14 = vsel %vm455_vm3, %v454_v57, %v452_v6  ;;  %3401 = vrot.lane.b32.xlu0 %v6118_v62, %s5599_s12  ;;  %3403 = vrot.lane.b32.xlu1 %v6121_v63, %s5599_s12  ;;  %s5602_s12 = smov 113   ;;  %v4756_v57 = vld [vmem:[%s7077_s3 + $0x5] ss:$8 sm:$0x3]  ;;  %vm7107_vm3 = vcmp.lt.s32.totalorder %v5724_v12, 2 }
 0x292   : > { %v471_v52 = vmul.f32 %v464_v59, %v457_v14  ;;  %v472_v15 = vmul.f32 %v468_v60, %v456_v7  ;;  %4903 = vmatmul.mubr.msk.bf16.vlgmr.msra.gmra.mrb[0].mxu0 %vm309_vm0, %v5419_v61  ;;  %v5421_v61 = vld [vmem:[%s7076_s2 + $0x140] sm:$0xff]   ;;  %v5428_v14 = vld [vmem:[%s7076_s2 + $0x28] sm:$0xff]  }
 0x293   : > { %2548 = vmatprep.mubr.bf16.mxu0 %v5586_v0 }
 0x294   : > { %v478_v20 = vpack.c.bf16 %v471_v52, %v471_v52  ;;  %v479_v21 = vpack.c.bf16 %v472_v15, %v472_v15  ;;  %v2570_v5 = vpop.permute.xlu1 %2569  ;;  %v2568_v24 = vpop.permute.xlu0 %2567 }
 0x295   : > { %v6138_v25 = vsel %vm2571_vm4, %v2568_v24, %v2570_v5  ;;  %v6140_v26 = vsel %vm2571_vm4, %v2570_v5, %v2568_v24  ;;  %877 = vrot.lane.b32.xlu0 %v5881_v49, %s5602_s12  ;;  %879 = vrot.lane.b32.xlu1 %v5878_v48, %s5602_s12  ;;  %v5429_v5 = vld [vmem:[%s7076_s2 + $0x30] sm:$0xff]   ;;  %vm7108_vm4 = vmmov %vm7107_vm3 }
 0x296   : > { %v2587_v27 = vmul.f32 %v2580_v51, %v6140_v26  ;;  %v2588_v28 = vmul.f32 %v2584_v16, %v6138_v25  ;;  %4734 = vmatprep.subr.msk.bf16.mxu1 %vm316_vm7, %v479_v21  ;;  %v497_v33 = vsel %vm316_vm7, %v478_v20, 0  ;;  %v2797_v51 = vpack.c.bf16 %v5917_v4, %v5917_v4  ;;  %v5422_v20 = vld [vmem:[%s7076_s2 + $0x148] sm:$0xff]  }
 0x297   : > { %503 = vmatpush1.bf16.msra.mxu1 %v497_v33  ;;  %v782_v16 = vrot.slane %v4756_v57, %v5721_v10  ;;  %v680_v4 = vpack.c.bf16 %v5881_v49, %v5881_v49 }
 0x298   : > { %v2594_v36 = vpack.c.bf16 %v2587_v27, %v2587_v27  ;;  %v2595_v17 = vpack.c.bf16 %v2588_v28, %v2588_v28  ;;  %v566_v8 = vpop.permute.xlu1 %565  ;;  %v564_v13 = vpop.permute.xlu0 %563  ;;  %v2796_v28 = vpack.c.bf16 %v5915_v3, %v5915_v3  ;;  %v5430_v3 = vld [vmem:[%s7076_s2 + $0x158] sm:$0xff]  }
 0x299   : > { %v568_v39 = vsel %vm567_vm1, %v564_v13, %v566_v8  ;;  %v569_v40 = vsel %vm567_vm1, %v566_v8, %v564_v13  ;;  %989 = vrot.lane.b32.xlu0 %v5881_v49, %s5591_s16  ;;  %991 = vrot.lane.b32.xlu1 %v5878_v48, %s5591_s16  ;;  %s5603_s16 = smov 111   ;;  %v699_v27 = vsel %vm316_vm7, %v680_v4, 0  ;;  %v5432_v13 = vld [vmem:[%s7076_s2 + $0x160] sm:$0xff]  }
 0x29a   : > { %v583_v42 = vmul.f32 %v576_v29, %v569_v40  ;;  %v584_v43 = vmul.f32 %v580_v30, %v568_v39  ;;  %4904 = vmatmul.mubr.msk.bf16.gmra.mrb[4].mxu0 %vm309_vm0, %v5420_v31  ;;  %4912 = vmatprep.subr.msk.bf16.mxu0 %vm316_vm7, %v2595_v17  ;;  %v2613_v44 = vsel %vm316_vm7, %v2594_v36, 0  ;;  %v778_v29 = vrot.slane %v4756_v57, %v5719_v9  ;;  %v5431_v31 = vld [vmem:[%s7076_s2 + $0x38] sm:$0xff]   ;;  %v5433_v17 = vld [vmem:[%s7076_s2 + $0x40] sm:$0xff]   ;;  %v5434_v39 = vld [vmem:[%s7076_s2 + $0x168] sm:$0xff]  }
 0x29b   : > { %2619 = vmatpush1.bf16.msra.mxu0 %v2613_v44  ;;  %2650 = vmatprep.mubr.bf16.mxu0 %v5586_v0  ;;  %v2815_v32 = vsel %vm316_vm7, %v2796_v28, 0  ;;  %v5441_v40 = vld [vmem:[%s7076_s2 + $0x50] sm:$0xff]  }
 0x29c   : > { %v590_v50 = vpack.c.bf16 %v583_v42, %v583_v42  ;;  %v591_v53 = vpack.c.bf16 %v584_v43, %v584_v43  ;;  %v2682_v54 = vpop.permute.xlu1 %2681  ;;  %v2680_v47 = vpop.permute.xlu0 %2679  ;;  %4735 = vmatmul.mubr.msk.bf16.vlgmr.msra.gmra.mrb[0].mxu1 %vm309_vm0, %v5427_v38  ;;  %v5440_v38 = vld [vmem:[%s7076_s2 + $0x48] sm:$0xff]   ;;  %v4944_v42 = vld [vmem:[%s7077_s3 + $0x30] ss:$8 sm:$0x3]  ;;  %v235_v43 = vand.u32 4, %v5819_v11 }
 0x29d   : > { %v2684_v55 = vsel %vm2683_vm5, %v2680_v47, %v2682_v54  ;;  %v2685_v58 = vsel %vm2683_vm5, %v2682_v54, %v2680_v47  ;;  %544 = vmatprep.mubr.bf16.mxu1 %v5586_v0  ;;  %1101 = vrot.lane.b32.xlu0 %v5881_v49, %s5603_s16  ;;  %v5423_v49 = vld [vmem:[%s7076_s2 + $0x150] sm:$0xff]   ;;  %v2999_v44 = vrot.slane %v4944_v42, %v5719_v9  ;;  %vm1273_vm5 = vcmp.lt.s32.totalorder %v5724_v12, 34 }
 0x29e   : > { %v2699_v59 = vmul.f32 %v2692_v41, %v2685_v58  ;;  %v2700_v60 = vmul.f32 %v2696_v45, %v2684_v55  ;;  %4744 = vmatprep.subr.msk.bf16.mxu1 %vm316_vm7, %v591_v53  ;;  %v609_v56 = vsel %vm316_vm7, %v590_v50, 0  ;;  %1103 = vrot.lane.b32.xlu1 %v5878_v48, %s5603_s16  ;;  %v5442_v41 = vld [vmem:[%s7076_s2 + $0x58] sm:$0xff]   ;;  %vm236_vm1 = vcmp.eq.s32.totalorder %v235_v43, 0  ;;  %v4934_v53 = vld [vmem:[%s7077_s3 + $0x27] ss:$8 sm:$0x3] }
 0x29f   : > { %615 = vmatpush1.bf16.msra.mxu1 %v609_v56  ;;  %v3003_v54 = vrot.slane %v4944_v42, %v5721_v10  ;;  %v3006_v47 = vmul.f32 %v2999_v44, %v6030_v1  ;;  %v3407_v58 = vsel %vm236_vm1, 1, %v5586_v0  ;;  %v6287_v11 = vld [vmem:[%s7077_s3 + $0x31] ss:$8 sm:$0x3]  ;;  %s5606_s16 = smov 30   ;;  %vm7109_vm1 = vcmp.lt.s32.totalorder %v5724_v12, 126 }
 0x2a0   : > { %v2706_v6 = vpack.c.bf16 %v2699_v59, %v2699_v59  ;;  %v2707_v7 = vpack.c.bf16 %v2700_v60, %v2700_v60  ;;  %v768_v52 = vpop.permute.xlu1 %767  ;;  %v766_v15 = vpop.permute.xlu0 %765  ;;  %4753 = vmatprep.subr.msk.bf16.mxu1 %vm316_vm7, %v681_v46  ;;  %v3108_v23 = vrot.slane %v6287_v11, %v5721_v10 }
 0x2a1   : > { %v771_v19 = vsel %vm769_vm2, %v768_v52, %v766_v15  ;;  %v770_v30 = vsel %vm769_vm2, %v766_v15, %v768_v52  ;;  %v3411_v15 = vrot.slane %v3407_v58, %v5719_v9  ;;  %v3007_v22 = vmul.f32 %v3003_v54, %v6032_v2  ;;  %v4766_v2 = vld [vmem:[%s7077_s3 + $0x6] ss:$8 sm:$0x3] }
 0x2a2   : > { %4913 = vmatmul.mubr.msk.bf16.vlgmr.msra.gmra.mrb[0].mxu0 %vm309_vm0, %v5421_v61  ;;  %4922 = vmatprep.subr.msk.bf16.mxu0 %vm316_vm7, %v2707_v7  ;;  %v2725_v48 = vsel %vm316_vm7, %v2706_v6, 0  ;;  %v786_v21 = vmul.f32 %v782_v16, %v771_v19  ;;  %v785_v33 = vmul.f32 %v778_v29, %v770_v30  ;;  %v2894_v6 = vrot.slane %v4934_v53, %v5719_v9 }
 0x2a3   : > { %2731 = vmatpush1.bf16.msra.mxu0 %v2725_v48  ;;  %2660 = vmatprep.mubr.bf16.mxu0 %v5586_v0  ;;  %v2898_v7 = vrot.slane %v4934_v53, %v5721_v10  ;;  %v3415_v48 = vrot.slane %v3407_v58, %v5721_v10  ;;  %vm7101_vm2 = vcmp.lt.s32.totalorder %v5724_v12, 124  ;;  %v4786_v58 = vld [vmem:[%s7077_s3 + $0x10] ss:$8 sm:$0x3] }
 0x2a4   : > { %4931 = vmatprep.subr.msk.bf16.mxu0 %vm316_vm7, %v2797_v51  ;;  %4736 = vmatmul.mubr.msk.bf16.gmra.mrb[4].mxu1 %vm309_vm0, %v5428_v14  ;;  %v793_v24 = vpack.c.bf16 %v786_v21, %v786_v21  ;;  %v792_v36 = vpack.c.bf16 %v785_v33, %v785_v33  ;;  %vm7102_vm6 = vmmov %vm7101_vm2  ;;  %v3013_v21 = vpack.c.bf16 %v3006_v47, %v3006_v47 }
 0x2a5   : > { %646 = vmatprep.mubr.bf16.mxu1 %v5586_v0  ;;  %v890_v33 = vrot.slane %v4766_v2, %v5719_v9 }
 0x2a6   : > { %v811_v8 = vsel %vm316_vm7, %v792_v36, 0 }
 0x2aa   : > { %4914 = vmatmul.mubr.msk.bf16.gmra.mrb[4].mxu0 %vm309_vm0, %v5422_v20 }
 0x2ab   : > { %2762 = vmatprep.mubr.bf16.mxu0 %v5586_v0 }
 0x2ac   : > { %4745 = vmatmul.mubr.msk.bf16.vlgmr.msra.gmra.mrb[0].mxu1 %vm309_vm0, %v5429_v5  ;;  %v5437_v5 = vld [vmem:[%s7076_s2 + $0x180] sm:$0xff]  }
 0x2ad   : > { %656 = vmatprep.mubr.bf16.mxu1 %v5586_v0  ;;  %705 = vmatpush1.bf16.msra.mxu1 %v699_v27  ;;  %v3112_v27 = vmul.f32 %v3108_v23, %v6073_v37 }
 0x2ae   : > { %4763 = vmatprep.subr.msk.bf16.mxu1 %vm316_vm7, %v793_v24  ;;  %v3014_v24 = vpack.c.bf16 %v3007_v22, %v3007_v22 }
 0x2af   : > { %v3119_v42 = vpack.c.bf16 %v3112_v27, %v3112_v27 }
 0x2b2   : > { %4923 = vmatmul.mubr.msk.bf16.vlgmr.msra.gmra.mrb[0].mxu0 %vm309_vm0, %v5423_v49 }
 0x2b3   : > { %2821 = vmatpush1.bf16.msra.mxu0 %v2815_v32  ;;  %2772 = vmatprep.mubr.bf16.mxu0 %v5586_v0 }
 0x2b4   : > { %4746 = vmatmul.mubr.msk.bf16.gmra.mrb[4].mxu1 %vm309_vm0, %v5431_v31 }
 0x2b5   : > { %736 = vmatprep.mubr.bf16.mxu1 %v5586_v0 }
 0x2ba   : > { %4924 = vmatmul.mubr.msk.bf16.gmra.mrb[4].mxu0 %vm309_vm0, %v5430_v3 }
 0x2bb   : > { %2852 = vmatprep.mubr.bf16.mxu0 %v5586_v0 }
 0x2bc   : > { %4754 = vmatmul.mubr.msk.bf16.vlgmr.msra.gmra.mrb[0].mxu1 %vm309_vm0, %v5433_v17  ;;  %v5435_v17 = vld [vmem:[%s7076_s2 + $0x170] sm:$0xff]  }
 0x2bd   : > { %817 = vmatpush1.bf16.msra.mxu1 %v811_v8  ;;  %746 = vmatprep.mubr.bf16.mxu1 %v5586_v0  ;;  %v894_v8 = vrot.slane %v4766_v2, %v5721_v10 }
 0x2c2   : > { %4932 = vmatmul.mubr.msk.bf16.vlgmr.msra.gmra.mrb[0].mxu0 %vm309_vm0, %v5432_v13 }
 0x2c3   : > { %2862 = vmatprep.mubr.bf16.mxu0 %v5586_v0 }
 0x2c4   : > { %4755 = vmatmul.mubr.msk.bf16.gmra.mrb[4].mxu1 %vm309_vm0, %v5440_v38 }
 0x2c5   : > { %848 = vmatprep.mubr.bf16.mxu1 %v5586_v0 }
 0x2ca   : > { %4933 = vmatmul.mubr.msk.bf16.gmra.mrb[4].mxu0 %vm309_vm0, %v5434_v39  ;;  %v4776_v39 = vld [vmem:[%s7077_s3 + $0x7] ss:$8 sm:$0x3] }
 0x2cb   : > { %2964 = vmatprep.mubr.bf16.mxu0 %v5586_v0  ;;  %v1006_v53 = vrot.slane %v4776_v39, %v5721_v10 }
 0x2cc   : > { %4764 = vmatmul.mubr.msk.bf16.vlgmr.msra.gmra.mrb[0].mxu1 %vm309_vm0, %v5441_v40 }
 0x2cd   : > { %858 = vmatprep.mubr.bf16.mxu1 %v5586_v0 }
 0x2d4   : > { %4765 = vmatmul.mubr.msk.bf16.gmra.mrb[4].mxu1 %vm309_vm0, %v5442_v41 }
 0x2d5   : > { %960 = vmatprep.mubr.bf16.mxu1 %v5586_v0 }
 0x2f7   : > { %v1245_v45 = vpop.permute.xlu1 %1244  ;;  %v1243_v50 = vpop.permute.xlu0 %1242 }
 0x2f8   : > { %v1246_v59 = vsel %vm993_vm12, %v1243_v50, %v1245_v45  ;;  %v1247_v60 = vsel %vm993_vm12, %v1245_v45, %v1243_v50  ;;  %v1002_v50 = vrot.slane %v4776_v39, %v5719_v9  ;;  %v5448_v39 = vld [vmem:[%s7076_s2 + $0x198] sm:$0xff]  }
 0x2fb   : > { %v1251_v46 = vpop.permute.xlu1 %1250  ;;  %v1249_v55 = vpop.permute.xlu0 %1248 }
 0x2fc   : > { %v1252_v61 = vsel %vm274_vm13, %v1249_v55, %v1251_v46  ;;  %v1253_v1 = vsel %vm274_vm13, %v1251_v46, %v1249_v55  ;;  %vm6323_vm13 = vcmp.eq.s32.totalorder %v3411_v15, 1  ;;  %v4964_v15 = vld [vmem:[%s7077_s3 + $0x32] ss:$8 sm:$0x3] }
 0x2fd   : > { %v1265_v56 = vsel %vm5828_vm14, %v1246_v59, %v1253_v1  ;;  %v1266_v57 = vsel %vm5832_vm15, %v1247_v60, %v1252_v61  ;;  %vm6327_vm14 = vcmp.eq.s32.totalorder %v3415_v48, 1  ;;  %vm881_vm15 = vcmp.lt.s32.totalorder %v5724_v12, 113  ;;  %v5436_v1 = vld [vmem:[%s7076_s2 + $0x178] sm:$0xff]  }
 0x2fe   : > { %v6304_v14 = vmax.f32 %v6061_v34, %v1265_v56  ;;  %v6307_v52 = vmax.f32 %v6064_v35, %v1266_v57  ;;  %v3104_v61 = vrot.slane %v6287_v11, %v5719_v9  ;;  %v5443_v57 = vld [vmem:[%s7076_s2 + $0x60] sm:$0xff]   ;;  %v1118_v11 = vrot.slane %v4786_v58, %v5721_v10 }
 0x2ff   : > { %v2884_v51 = vpop.permute.xlu1 %2883  ;;  %v2882_v16 = vpop.permute.xlu0 %2881 }
 0x300   : > { %v2886_v19 = vsel %vm7101_vm2, %v2882_v16, %v2884_v51  ;;  %v2887_v34 = vsel %vm7102_vm6, %v2884_v51, %v2882_v16  ;;  %1269 = vrot.lane.b32.xlu0 %v6304_v14, %s5604_s26  ;;  %1271 = vrot.lane.b32.xlu1 %v6307_v52, %s5604_s26  ;;  %v3111_v16 = vmul.f32 %v3104_v61, %v6069_v18  ;;  %vm7110_vm2 = vmmov %vm7109_vm1  ;;  %vm1923_vm6 = vcmp.lt.s32.totalorder %v5724_v12, 98 }
 0x301   : > { %v2901_v35 = vmul.f32 %v2894_v6, %v2886_v19  ;;  %v2902_v20 = vmul.f32 %v2898_v7, %v2887_v34  ;;  %v3213_v19 = vrot.slane %v4964_v15, %v5721_v10  ;;  %v1114_v18 = vrot.slane %v4786_v58, %v5719_v9 }
 0x303   : > { %v2908_v49 = vpack.c.bf16 %v2901_v35, %v2901_v35  ;;  %v2909_v28 = vpack.c.bf16 %v2902_v20, %v2902_v20  ;;  %v3404_v29 = vpop.permute.xlu1 %3403  ;;  %v3402_v30 = vpop.permute.xlu0 %3401  ;;  %v3217_v4 = vmul.f32 %v3213_v19, %v6140_v26 }
 0x304   : > { %v3405_v31 = vsel %vm2459_vm10, %v3402_v30, %v3404_v29  ;;  %v3406_v32 = vsel %vm2459_vm10, %v3404_v29, %v3402_v30  ;;  %v3209_v30 = vrot.slane %v4964_v15, %v5719_v9  ;;  %vm1497_vm10 = vcmp.lt.s32.totalorder %v5724_v12, 30 }
 0x305   : > { %v3418_v3 = vsel %vm6323_vm13, %v3405_v31, %v3406_v32  ;;  %v3419_v37 = vsel %vm6327_vm14, %v3406_v32, %v3405_v31  ;;  %4941 = vmatprep.subr.msk.bf16.mxu0 %vm316_vm7, %v2909_v28  ;;  %v2927_v36 = vsel %vm316_vm7, %v2908_v49, 0  ;;  %v3224_v49 = vpack.c.bf16 %v3217_v4, %v3217_v4  ;;  %v5438_v31 = vld [vmem:[%s7076_s2 + $0x188] sm:$0xff]   ;;  %v5445_v32 = vld [vmem:[%s7076_s2 + $0x70] sm:$0xff]  }
 0x306   : > { %v6349_v13 = vmax.f32 %v6118_v62, %v3418_v3  ;;  %v6352_v38 = vmax.f32 %v6121_v63, %v3419_v37  ;;  %2933 = vmatpush1.bf16.msra.mxu0 %v2927_v36  ;;  %v3032_v62 = vsel %vm316_vm7, %v3013_v21, 0  ;;  %v3118_v21 = vpack.c.bf16 %v3111_v16, %v3111_v16  ;;  %v5446_v36 = vld [vmem:[%s7076_s2 + $0x78] sm:$0xff]  }
 0x307   : > { %4951 = vmatprep.subr.msk.bf16.mxu0 %vm316_vm7, %v3014_v24  ;;  %v880_v40 = vpop.permute.xlu1 %879  ;;  %v878_v41 = vpop.permute.xlu0 %877  ;;  %v5444_v24 = vld [vmem:[%s7076_s2 + $0x68] sm:$0xff]   ;;  %v3216_v3 = vmul.f32 %v3209_v30, %v6138_v25  ;;  %v5439_v25 = vld [vmem:[%s7076_s2 + $0x190] sm:$0xff]   ;;  %vm2147_vm13 = vcmp.lt.s32.totalorder %v5724_v12, 94 }
 0x308   : > { %3424 = vrot.lane.b32.xlu1 %v6352_v38, %s5605_s11  ;;  %3422 = vrot.lane.b32.xlu0 %v6349_v13, %s5605_s11  ;;  %v882_v63 = vsel %vm881_vm15, %v878_v41, %v880_v40  ;;  %v883_v43 = vsel %vm881_vm15, %v880_v40, %v878_v41  ;;  %v3137_v28 = vsel %vm316_vm7, %v3118_v21, 0  ;;  %s5609_s11 = smov 94   ;;  %v5449_v40 = vld [vmem:[%s7076_s2 + $0x88] sm:$0xff]   ;;  %v5450_v41 = vld [vmem:[%s7076_s2 + $0x1a0] sm:$0xff]  }
 0x309   : > { %4942 = vmatmul.mubr.msk.bf16.vlgmr.msra.gmra.mrb[0].mxu0 %vm309_vm0, %v5435_v17  ;;  %v897_v44 = vmul.f32 %v890_v33, %v882_v63  ;;  %v898_v45 = vmul.f32 %v894_v8, %v883_v43  ;;  %v3223_v37 = vpack.c.bf16 %v3216_v3, %v3216_v3  ;;  %v5447_v8 = vld [vmem:[%s7076_s2 + $0x80] sm:$0xff]   ;;  %v4994_v3 = vld [vmem:[%s7077_s3 + $0x35] ss:$8 sm:$0x3] }
 0x30a   : > { %3038 = vmatpush1.bf16.msra.mxu0 %v3032_v62  ;;  %2974 = vmatprep.mubr.bf16.mxu0 %v5586_v0  ;;  %v4796_v62 = vld [vmem:[%s7077_s3 + $0x11] ss:$8 sm:$0x3] }
 0x30b   : > { %4961 = vmatprep.subr.msk.bf16.mxu0 %vm316_vm7, %v3119_v42  ;;  %v904_v54 = vpack.c.bf16 %v897_v44, %v897_v44  ;;  %v905_v47 = vpack.c.bf16 %v898_v45, %v898_v45  ;;  %v992_v46 = vpop.permute.xlu1 %991  ;;  %v990_v55 = vpop.permute.xlu0 %989  ;;  %v3242_v17 = vsel %vm316_vm7, %v3223_v37, 0  ;;  %v5452_v42 = vld [vmem:[%s7076_s2 + $0x1a8] sm:$0xff]   ;;  %v1282_v63 = vrot.slane %v4796_v62, %v5719_v9 }
 0x30c   : > { %1383 = vrot.lane.b32.xlu1 %v6307_v52, %s5596_s7  ;;  %1381 = vrot.lane.b32.xlu0 %v6304_v14, %s5596_s7  ;;  %v994_v59 = vsel %vm993_vm12, %v990_v55, %v992_v46  ;;  %v995_v60 = vsel %vm993_vm12, %v992_v46, %v990_v55  ;;  %vm1105_vm12 = vcmp.lt.s32.totalorder %v5724_v12, 111  ;;  %s5608_s7 = smov 98   ;;  %v1286_v43 = vrot.slane %v4796_v62, %v5721_v10  ;;  %v4984_v46 = vld [vmem:[%s7077_s3 + $0x34] ss:$8 sm:$0x3] }
 0x30d   : > { %4773 = vmatprep.subr.msk.bf16.mxu1 %vm316_vm7, %v905_v47  ;;  %v923_v56 = vsel %vm316_vm7, %v904_v54, 0  ;;  %v1009_v6 = vmul.f32 %v1002_v50, %v994_v59  ;;  %v1010_v7 = vmul.f32 %v1006_v53, %v995_v60  ;;  %v4974_v55 = vld [vmem:[%s7077_s3 + $0x33] ss:$8 sm:$0x3]  ;;  %v3544_v60 = vrot.slane %v4984_v46, %v5721_v10 }
 0x30e   : > { %929 = vmatpush1.bf16.msra.mxu1 %v923_v56  ;;  %v3439_v56 = vrot.slane %v4974_v55, %v5721_v10  ;;  %v3656_v62 = vrot.slane %v4994_v3, %v5721_v10 }
 0x30f   : > { %v1016_v48 = vpack.c.bf16 %v1009_v6, %v1009_v6  ;;  %v1017_v22 = vpack.c.bf16 %v1010_v7, %v1010_v7  ;;  %v1102_v23 = vpop.permute.xlu0 %1101  ;;  %v4806_v6 = vld [vmem:[%s7077_s3 + $0x12] ss:$8 sm:$0x3]  ;;  %v3540_v7 = vrot.slane %v4984_v46, %v5719_v9 }
 0x310   : > { %1495 = vrot.lane.b32.xlu1 %v6307_v52, %s5606_s16  ;;  %1493 = vrot.lane.b32.xlu0 %v6304_v14, %s5606_s16  ;;  %v1104_v51 = vpop.permute.xlu1 %1103  ;;  %v1398_v19 = vrot.slane %v4806_v6, %v5721_v10  ;;  %s4708_s16 = sshll.u32 %s215_s25, 6 }
 0x311   : > { %4943 = vmatmul.mubr.msk.bf16.gmra.mrb[4].mxu0 %vm309_vm0, %v5436_v1  ;;  %4774 = vmatmul.mubr.msk.bf16.vlgmr.msra.gmra.mrb[0].mxu1 %vm309_vm0, %v5443_v57  ;;  %v1107_v34 = vsel %vm1105_vm12, %v1104_v51, %v1102_v23  ;;  %v1035_v35 = vsel %vm316_vm7, %v1016_v48, 0  ;;  %v1106_v27 = vsel %vm1105_vm12, %v1102_v23, %v1104_v51  ;;  %v3435_v1 = vrot.slane %v4974_v55, %v5719_v9  ;;  %v5451_v57 = vld [vmem:[%s7076_s2 + $0x90] sm:$0xff]   ;;  %v5455_v55 = vld [vmem:[%s7076_s2 + $0xa0] sm:$0xff]  }
 0x312   : > { %3069 = vmatprep.mubr.bf16.mxu0 %v5586_v0  ;;  %970 = vmatprep.mubr.bf16.mxu1 %v5586_v0  ;;  %v1122_v20 = vmul.f32 %v1118_v11, %v1107_v34  ;;  %v1121_v26 = vmul.f32 %v1114_v18, %v1106_v27  ;;  %v1394_v23 = vrot.slane %v4806_v6, %v5719_v9 }
 0x313   : > { %4783 = vmatprep.subr.msk.bf16.mxu1 %vm316_vm7, %v1017_v22  ;;  %v3548_v34 = vmul.f32 %v3544_v60, %v6349_v13  ;;  %v5004_v60 = vld [vmem:[%s7077_s3 + $0x36] ss:$8 sm:$0x3] }
 0x314   : > { %3641 = vrot.lane.b32.xlu1 %v6352_v38, %s5607_s8  ;;  %3639 = vrot.lane.b32.xlu0 %v6349_v13, %s5607_s8  ;;  %v1129_v2 = vpack.c.bf16 %v1122_v20, %v1122_v20  ;;  %v1128_v29 = vpack.c.bf16 %v1121_v26, %v1121_v26  ;;  %v3547_v20 = vmul.f32 %v3540_v7, %v6352_v38  ;;  %s6991_s8 = scalar_lea.vmem [#allocation2], %s4708_s16 }
 0x315   : > { %1041 = vmatpush1.bf16.msra.mxu1 %v1035_v35  ;;  %v4816_v35 = vld [vmem:[%s7077_s3 + $0x13] ss:$8 sm:$0x3]  ;;  %v3555_v30 = vpack.c.bf16 %v3548_v34, %v3548_v34 }
 0x316   : > { %4793 = vmatprep.subr.msk.bf16.mxu1 %vm316_vm7, %v1129_v2  ;;  %v1147_v33 = vsel %vm316_vm7, %v1128_v29, 0  ;;  %v1506_v27 = vrot.slane %v4816_v35, %v5719_v9  ;;  %v1510_v26 = vrot.slane %v4816_v35, %v5721_v10  ;;  %v5457_v35 = vld [vmem:[%s7076_s2 + $0xa8] sm:$0xff]  }
 0x318   : > { %1607 = vrot.lane.b32.xlu1 %v6307_v52, %s5590_s15  ;;  %1605 = vrot.lane.b32.xlu0 %v6304_v14, %s5590_s15  ;;  %s5610_s15 = smov [#allocation2]  }
 0x319   : > { %4952 = vmatmul.mubr.msk.bf16.vlgmr.msra.gmra.mrb[0].mxu0 %vm309_vm0, %v5437_v5  ;;  %4775 = vmatmul.mubr.msk.bf16.gmra.mrb[4].mxu1 %vm309_vm0, %v5444_v24  ;;  %s5526_s10 = sshll.u32 %s5610_s15, 4  ;;  %s5527_s10 = int_to_ptr.vmem [resolvable:$false] %s5526_s10 }
 0x31a   : > { %3143 = vmatpush1.bf16.msra.mxu0 %v3137_v28  ;;  %3079 = vmatprep.mubr.bf16.mxu0 %v5586_v0  ;;  %s5528_s30 = scalar_lea.vmem %s5527_s10, 2048 }
 0x31b   : > { %4971 = vmatprep.subr.msk.bf16.mxu0 %vm316_vm7, %v3224_v49  ;;  %1072 = vmatprep.mubr.bf16.mxu1 %v5586_v0 }
 0x31c   : > { %1809 = vrot.lane.b32.xlu1 %v6307_v52, %s5589_s14  ;;  %1807 = vrot.lane.b32.xlu0 %v6304_v14, %s5589_s14 }
 0x320   : > { %1921 = vrot.lane.b32.xlu1 %v6307_v52, %s5608_s7  ;;  %1919 = vrot.lane.b32.xlu0 %v6304_v14, %s5608_s7 }
 0x321   : > { %4953 = vmatmul.mubr.msk.bf16.gmra.mrb[4].mxu0 %vm309_vm0, %v5438_v31  ;;  %4784 = vmatmul.mubr.msk.bf16.vlgmr.msra.gmra.mrb[0].mxu1 %vm309_vm0, %v5445_v32  ;;  %v5453_v31 = vld [vmem:[%s7076_s2 + $0x98] sm:$0xff]   ;;  %v5454_v32 = vld [vmem:[%s7076_s2 + $0x1b0] sm:$0xff]  }
 0x322   : > { %3174 = vmatprep.mubr.bf16.mxu0 %v5586_v0  ;;  %1082 = vmatprep.mubr.bf16.mxu1 %v5586_v0 }
 0x323   : > { %1153 = vmatpush1.bf16.msra.mxu1 %v1147_v33  ;;  %v3554_v33 = vpack.c.bf16 %v3547_v20, %v3547_v20  ;;  %v4368_v20 = vld [vmem:[%s7078_s4 + $0x10] sm:$0xff] }
 0x324   : > { %2033 = vrot.lane.b32.xlu1 %v6307_v52, %s5595_s6  ;;  %2031 = vrot.lane.b32.xlu0 %v6304_v14, %s5595_s6  ;;  %s4642_s6 = sshll.u32 %s6991_s8, 4  ;;  %s7026_s6 = int_to_ptr.vmem [resolvable:$true] %s4642_s6 }
 0x325   : > { %p5529_p0 = scmp.lt.s32.totalorder %s7026_s6, %s5527_s10 }
 0x328   : > { %2145 = vrot.lane.b32.xlu1 %v6307_v52, %s5609_s11  ;;  %2143 = vrot.lane.b32.xlu0 %v6304_v14, %s5609_s11  ;;  %s5069_s11 = sshll.u32 %s5663_s22, 10  ;;  %s7032_s22 = scalar_lea.sflag [#allocation3], %s215_s25 }
 0x329   : > { %4962 = vmatmul.mubr.msk.bf16.vlgmr.msra.gmra.mrb[0].mxu0 %vm309_vm0, %v5439_v25  ;;  %4785 = vmatmul.mubr.msk.bf16.gmra.mrb[4].mxu1 %vm309_vm0, %v5446_v36  ;;  %s7024_s26 = scalar_lea.hbm %s7079_s5, %s5069_s11 }
 0x32a   : > { %3248 = vmatpush1.bf16.msra.mxu0 %v3242_v17  ;;  %1184 = vmatprep.mubr.bf16.mxu1 %v5586_v0 }
 0x32b   : > { %3184 = vmatprep.mubr.bf16.mxu0 %v5586_v0 }
 0x331   : > { %4794 = vmatmul.mubr.msk.bf16.vlgmr.msra.gmra.mrb[0].mxu1 %vm309_vm0, %v5447_v8  ;;  %4963 = vmatmul.mubr.msk.bf16.gmra.mrb[4].mxu0 %vm309_vm0, %v5448_v39 }
 0x332   : > { %1194 = vmatprep.mubr.bf16.mxu1 %v5586_v0  ;;  %3279 = vmatprep.mubr.bf16.mxu0 %v5586_v0 }
 0x339   : > { %4795 = vmatmul.mubr.msk.bf16.gmra.mrb[4].mxu1 %vm309_vm0, %v5449_v40  ;;  %4972 = vmatmul.mubr.msk.bf16.vlgmr.msra.gmra.mrb[0].mxu0 %vm309_vm0, %v5450_v41 }
 0x33a   : > { %1352 = vmatprep.mubr.bf16.mxu1 %v5586_v0  ;;  %3289 = vmatprep.mubr.bf16.mxu0 %v5586_v0 }
 0x341   : > { %4973 = vmatmul.mubr.msk.bf16.gmra.mrb[4].mxu0 %vm309_vm0, %v5452_v42 }
 0x342   : > { %3505 = vmatprep.mubr.bf16.mxu0 %v5586_v0 }
 0x372   : > { %v1272_v44 = vpop.permute.xlu1 %1271  ;;  %v1270_v45 = vpop.permute.xlu0 %1269 }
 0x373   : > { %v1274_v50 = vsel %vm1273_vm5, %v1270_v45, %v1272_v44  ;;  %v1275_v53 = vsel %vm1273_vm5, %v1272_v44, %v1270_v45 }
 0x374   : > { %v1289_v54 = vmul.f32 %v1282_v63, %v1275_v53  ;;  %v1290_v47 = vmul.f32 %v1286_v43, %v1274_v50  ;;  %v3573_v63 = vsel %vm316_vm7, %v3554_v33, 0  ;;  %v4826_v43 = vld [vmem:[%s7077_s3 + $0x14] ss:$8 sm:$0x3] }
 0x375   : > { %v1622_v46 = vrot.slane %v4826_v43, %v5721_v10  ;;  %v1618_v34 = vrot.slane %v4826_v43, %v5719_v9  ;;  %v5464_v43 = vld [vmem:[%s7076_s2 + $0x1d8] sm:$0xff]  }
 0x376   : > { %v1296_v58 = vpack.c.bf16 %v1289_v54, %v1289_v54  ;;  %v1297_v59 = vpack.c.bf16 %v1290_v47, %v1290_v47 }
 0x378   : > { %4803 = vmatprep.subr.msk.bf16.mxu1 %vm316_vm7, %v1297_v59  ;;  %v1315_v61 = vsel %vm316_vm7, %v1296_v58, 0  ;;  %v3652_v58 = vrot.slane %v4994_v3, %v5719_v9  ;;  %v5456_v59 = vld [vmem:[%s7076_s2 + $0x1b8] sm:$0xff]  }
 0x379   : > { %1321 = vmatpush1.bf16.msra.mxu1 %v1315_v61  ;;  %v5461_v3 = vld [vmem:[%s7076_s2 + $0xb8] sm:$0xff]  }
 0x37a   : > { %v3425_v15 = vpop.permute.xlu1 %3424  ;;  %v3423_v11 = vpop.permute.xlu0 %3422 }
 0x37b   : > { %v6517_v48 = vsel %vm3426_vm9, %v3423_v11, %v3425_v15  ;;  %v6519_v22 = vsel %vm3426_vm9, %v3425_v15, %v3423_v11  ;;  %v3761_v11 = vrot.slane %v5004_v60, %v5721_v10 }
 0x37c   : > { %v3442_v51 = vmul.f32 %v3435_v1, %v6517_v48  ;;  %v3443_v16 = vmul.f32 %v3439_v56, %v6519_v22  ;;  %4804 = vmatmul.mubr.msk.bf16.vlgmr.msra.gmra.mrb[0].mxu1 %vm309_vm0, %v5451_v57 }
 0x37d   : > { %1362 = vmatprep.mubr.bf16.mxu1 %v5586_v0 }
 0x37e   : > { %v3449_v18 = vpack.c.bf16 %v3442_v51, %v3442_v51  ;;  %v3450_v2 = vpack.c.bf16 %v3443_v16, %v3443_v16  ;;  %v1384_v21 = vpop.permute.xlu1 %1383  ;;  %v1382_v4 = vpop.permute.xlu0 %1381  ;;  %v4366_v51 = vld [vmem:[%s7078_s4] sm:$0xff]  ;;  %v4367_v16 = vld [vmem:[%s7078_s4 + $0x8] sm:$0xff] }
 0x37f   : > { %v1386_v5 = vsel %vm1385_vm8, %v1382_v4, %v1384_v21  ;;  %v1387_v24 = vsel %vm1385_vm8, %v1384_v21, %v1382_v4  ;;  %vm3643_vm8 = vcmp.lt.s32.totalorder %v5724_v12, 120  ;;  %4372 = vperm.xlu0 %5414, %v4366_v51   ;;  %4377 = vperm.xlu1 %5415, %v4367_v16   ;;  %v5467_v16 = vld [vmem:[%s7076_s2 + $0xd0] sm:$0xff]  }
 0x380   : > { %v1401_v49 = vmul.f32 %v1394_v23, %v1387_v24  ;;  %v1402_v28 = vmul.f32 %v1398_v19, %v1386_v5  ;;  %4981 = vmatprep.subr.msk.bf16.mxu0 %vm316_vm7, %v3450_v2  ;;  %v3468_v29 = vsel %vm316_vm7, %v3449_v18, 0  ;;  %v4369_v18 = vld [vmem:[%s7078_s4 + $0x18] sm:$0xff]  ;;  %v3765_v2 = vmul.f32 %v3761_v11, %v6517_v48  ;;  %v5458_v5 = vld [vmem:[%s7076_s2 + $0x1c0] sm:$0xff]  }
 0x381   : > { %3474 = vmatpush1.bf16.msra.mxu0 %v3468_v29  ;;  %v3757_v29 = vrot.slane %v5004_v60, %v5719_v9  ;;  %v3861_v60 = vpack.c.bf16 %v6349_v13, %v6349_v13 }
 0x382   : > { %v1408_v37 = vpack.c.bf16 %v1401_v49, %v1401_v49  ;;  %v1409_v25 = vpack.c.bf16 %v1402_v28, %v1402_v28  ;;  %v1496_v36 = vpop.permute.xlu1 %1495  ;;  %4991 = vmatprep.subr.msk.bf16.mxu0 %vm316_vm7, %v3555_v30  ;;  %v1494_v17 = vpop.permute.xlu0 %1493  ;;  %v5459_v28 = vld [vmem:[%s7076_s2 + $0xb0] sm:$0xff]   ;;  %v5460_v30 = vld [vmem:[%s7076_s2 + $0x1c8] sm:$0xff]  }
 0x383   : > { %v1498_v8 = vsel %vm1497_vm10, %v1494_v17, %v1496_v36  ;;  %v1499_v39 = vsel %vm1497_vm10, %v1496_v36, %v1494_v17  ;;  %4382 = vperm.xlu1 %5415, %v4368_v20   ;;  %4387 = vperm.xlu0 %5414, %v4369_v18   ;;  %v3764_v33 = vmul.f32 %v3757_v29, %v6519_v22  ;;  %v3880_v11 = vsel %vm316_vm7, %v3861_v60, 0 }
 0x384   : > { %v1513_v40 = vmul.f32 %v1506_v27, %v1499_v39  ;;  %v1514_v41 = vmul.f32 %v1510_v26, %v1498_v8  ;;  %4805 = vmatmul.mubr.msk.bf16.gmra.mrb[4].mxu1 %vm309_vm0, %v5453_v31  ;;  %4813 = vmatprep.subr.msk.bf16.mxu1 %vm316_vm7, %v1409_v25  ;;  %v1427_v42 = vsel %vm316_vm7, %v1408_v37, 0  ;;  %v3772_v27 = vpack.c.bf16 %v3765_v2, %v3765_v2  ;;  %v5462_v25 = vld [vmem:[%s7076_s2 + $0x1d0] sm:$0xff]  }
 0x385   : > { %4982 = vmatmul.mubr.msk.bf16.vlgmr.msra.gmra.mrb[0].mxu0 %vm309_vm0, %v5454_v32  ;;  %1433 = vmatpush1.bf16.msra.mxu1 %v1427_v42  ;;  %v1723_v32 = vpack.c.bf16 %v6307_v52, %v6307_v52  ;;  %v3771_v37 = vpack.c.bf16 %v3764_v33, %v3764_v33  ;;  %v4845_v52 = vld [vmem:[%s7077_s3 + $0x16] ss:$8 sm:$0x3] }
 0x386   : > { %v1521_v44 = vpack.c.bf16 %v1514_v41, %v1514_v41  ;;  %3579 = vmatpush1.bf16.msra.mxu0 %v3573_v63  ;;  %v3642_v45 = vpop.permute.xlu1 %3641  ;;  %v3640_v50 = vpop.permute.xlu0 %3639  ;;  %1464 = vmatprep.mubr.bf16.mxu1 %v5586_v0  ;;  %v1520_v54 = vpack.c.bf16 %v1513_v40, %v1513_v40  ;;  %v1824_v8 = vrot.slane %v4845_v52, %v5721_v10 }
 0x387   : > { %v6568_v53 = vsel %vm3643_vm8, %v3640_v50, %v3642_v45  ;;  %3515 = vmatprep.mubr.bf16.mxu0 %v5586_v0  ;;  %v6586_v61 = vsel %vm3643_vm8, %v3642_v45, %v3640_v50  ;;  %v3790_v40 = vsel %vm316_vm7, %v3771_v37, 0  ;;  %v3862_v41 = vpack.c.bf16 %v6352_v38, %v6352_v38 }
 0x388   : > { %v3660_v47 = vmul.f32 %v3656_v62, %v6568_v53  ;;  %4823 = vmatprep.subr.msk.bf16.mxu1 %vm316_vm7, %v1521_v44  ;;  %v1539_v15 = vsel %vm316_vm7, %v1520_v54, 0  ;;  %v3659_v23 = vmul.f32 %v3652_v58, %v6586_v61  ;;  %v5463_v62 = vld [vmem:[%s7076_s2 + $0xc0] sm:$0xff]   ;;  %v1722_v63 = vpack.c.bf16 %v6304_v14, %v6304_v14  ;;  %v4855_v58 = vld [vmem:[%s7077_s3 + $0x17] ss:$8 sm:$0x3] }
 0x389   : > { %v5023_v44 = vld [vmem:[%s7077_s3 + $0x40] ss:$8 sm:$0x3]  ;;  %v1820_v14 = vrot.slane %v4845_v52, %v5719_v9 }
 0x38a   : > { %v3667_v1 = vpack.c.bf16 %v3660_v47, %v3660_v47  ;;  %v1608_v56 = vpop.permute.xlu1 %1607  ;;  %v1606_v57 = vpop.permute.xlu0 %1605  ;;  %v3666_v21 = vpack.c.bf16 %v3659_v23, %v3659_v23  ;;  %v1741_v50 = vsel %vm316_vm7, %v1722_v63, 0  ;;  %v3956_v54 = vrot.slane %v5023_v44, %v5721_v10  ;;  %v5465_v47 = vld [vmem:[%s7076_s2 + $0xc8] sm:$0xff]  }
 0x38b   : > { %v1610_v6 = vsel %vm7107_vm3, %v1606_v57, %v1608_v56  ;;  %v1611_v4 = vsel %vm7108_vm4, %v1608_v56, %v1606_v57  ;;  %v5473_v63 = vld [vmem:[%s7076_s2 + $0xe8] sm:$0xff]  }
 0x38c   : > { %v1626_v7 = vmul.f32 %v1622_v46, %v1610_v6  ;;  %4814 = vmatmul.mubr.msk.bf16.vlgmr.msra.gmra.mrb[0].mxu1 %vm309_vm0, %v5455_v55  ;;  %5001 = vmatprep.subr.msk.bf16.mxu0 %vm316_vm7, %v3667_v1  ;;  %v1625_v24 = vmul.f32 %v1618_v34, %v1611_v4  ;;  %v3685_v26 = vsel %vm316_vm7, %v3666_v21, 0  ;;  %v3960_v46 = vmul.f32 %v3956_v54, %v6586_v61  ;;  %v5468_v34 = vld [vmem:[%s7076_s2 + $0x1e8] sm:$0xff]  }
 0x38d   : > { %1545 = vmatpush1.bf16.msra.mxu1 %v1539_v15  ;;  %4983 = vmatmul.mubr.msk.bf16.gmra.mrb[4].mxu0 %vm309_vm0, %v5456_v59  ;;  %v5466_v59 = vld [vmem:[%s7076_s2 + $0x1e0] sm:$0xff]   ;;  %v1936_v6 = vrot.slane %v4855_v58, %v5721_v10  ;;  %v1932_v4 = vrot.slane %v4855_v58, %v5719_v9 }
 0x38e   : > { %v1633_v19 = vpack.c.bf16 %v1626_v7, %v1626_v7  ;;  %1474 = vmatprep.mubr.bf16.mxu1 %v5586_v0  ;;  %3610 = vmatprep.mubr.bf16.mxu0 %v5586_v0  ;;  %v1632_v49 = vpack.c.bf16 %v1625_v24, %v1625_v24  ;;  %v1810_v36 = vpop.permute.xlu1 %1809  ;;  %v1808_v17 = vpop.permute.xlu0 %1807  ;;  %v3967_v7 = vpack.c.bf16 %v3960_v46, %v3960_v46 }
 0x38f   : > { %v1813_v39 = vsel %vm7109_vm1, %v1810_v36, %v1808_v17  ;;  %v1812_v55 = vsel %vm7110_vm2, %v1808_v17, %v1810_v36  ;;  %v5472_v17 = vld [vmem:[%s7076_s2 + $0x1f8] sm:$0xff]  }
 0x390   : > { %4833 = vmatprep.subr.msk.bf16.mxu1 %vm316_vm7, %v1633_v19  ;;  %v1651_v31 = vsel %vm316_vm7, %v1632_v49, 0  ;;  %v1828_v42 = vmul.f32 %v1824_v8, %v1813_v39  ;;  %v1827_v57 = vmul.f32 %v1820_v14, %v1812_v55  ;;  %v3952_v19 = vrot.slane %v5023_v44, %v5719_v9  ;;  %v4865_v49 = vld [vmem:[%s7077_s3 + $0x20] ss:$8 sm:$0x3] }
 0x391   : > { %v5043_v8 = vld [vmem:[%s7077_s3 + $0x42] ss:$8 sm:$0x3]  ;;  %v4875_v44 = vld [vmem:[%s7077_s3 + $0x21] ss:$8 sm:$0x3] }
 0x392   : > { %v1835_v45 = vpack.c.bf16 %v1828_v42, %v1828_v42  ;;  %v1922_v1 = vpop.permute.xlu1 %1921  ;;  %v1920_v56 = vpop.permute.xlu0 %1919  ;;  %v1834_v23 = vpack.c.bf16 %v1827_v57, %v1827_v57  ;;  %v3959_v21 = vmul.f32 %v3952_v19, %v6568_v53  ;;  %v4166_v42 = vrot.slane %v5043_v8, %v5721_v10 }
 0x393   : > { %v1925_v15 = vsel %vm1923_vm6, %v1922_v1, %v1920_v56  ;;  %v2160_v46 = vrot.slane %v4875_v44, %v5721_v10  ;;  %v4162_v57 = vrot.slane %v5043_v8, %v5719_v9 }
 0x394   : > { %4815 = vmatmul.mubr.msk.bf16.gmra.mrb[4].mxu1 %vm309_vm0, %v5457_v35  ;;  %v1940_v51 = vmul.f32 %v1936_v6, %v1925_v15  ;;  %v5033_v35 = vld [vmem:[%s7077_s3 + $0x41] ss:$8 sm:$0x3]  ;;  %v1853_v18 = vsel %vm316_vm7, %v1834_v23, 0 }
 0x395   : > { %4992 = vmatmul.mubr.msk.bf16.vlgmr.msra.gmra.mrb[0].mxu0 %vm309_vm0, %v5458_v5  ;;  %1576 = vmatprep.mubr.bf16.mxu1 %v5586_v0  ;;  %v4061_v2 = vrot.slane %v5033_v35, %v5721_v10  ;;  %v5469_v5 = vld [vmem:[%s7076_s2 + $0xd8] sm:$0xff]   ;;  %v4057_v36 = vrot.slane %v5033_v35, %v5719_v9  ;;  %v5053_v6 = vld [vmem:[%s7077_s3 + $0x43] ss:$8 sm:$0x3]  ;;  %v4169_v23 = vmul.f32 %v4162_v57, %v6352_v38  ;;  %v5478_v38 = vld [vmem:[%s7076_s2 + $0x210] sm:$0xff]  }
 0x396   : > { %3691 = vmatpush1.bf16.msra.mxu0 %v3685_v26  ;;  %3620 = vmatprep.mubr.bf16.mxu0 %v5586_v0  ;;  %v1947_v20 = vpack.c.bf16 %v1940_v51, %v1940_v51  ;;  %v1924_v26 = vsel %vm1923_vm6, %v1920_v56, %v1922_v1  ;;  %v2034_v29 = vpop.permute.xlu1 %2033  ;;  %v5475_v1 = vld [vmem:[%s7076_s2 + $0xf0] sm:$0xff]   ;;  %v5476_v56 = vld [vmem:[%s7076_s2 + $0x208] sm:$0xff]   ;;  %v2156_v51 = vrot.slane %v4875_v44, %v5719_v9 }
 0x397   : > { %5011 = vmatprep.subr.msk.bf16.mxu0 %vm316_vm7, %v3772_v27  ;;  %v4065_v24 = vmul.f32 %v4061_v2, %v6519_v22  ;;  %v3966_v27 = vpack.c.bf16 %v3959_v21, %v3959_v21  ;;  %v4267_v2 = vrot.slane %v5053_v6, %v5719_v9  ;;  %v5480_v21 = vld [vmem:[%s7076_s2 + $0x218] sm:$0xff]  }
 0x399   : > { %v4072_v22 = vpack.c.bf16 %v4065_v24, %v4065_v24 }
 0x39a   : > { %v2146_v54 = vpop.permute.xlu1 %2145 }
 0x39c   : > { %4824 = vmatmul.mubr.msk.bf16.vlgmr.msra.gmra.mrb[0].mxu1 %vm309_vm0, %v5459_v28  ;;  %v5470_v28 = vld [vmem:[%s7076_s2 + $0x1f0] sm:$0xff]  }
 0x39d   : > { %1657 = vmatpush1.bf16.msra.mxu1 %v1651_v31  ;;  %4993 = vmatmul.mubr.msk.bf16.gmra.mrb[4].mxu0 %vm309_vm0, %v5460_v30  ;;  %v2032_v30 = vpop.permute.xlu0 %2031  ;;  %v1939_v31 = vmul.f32 %v1932_v4, %v1924_v26  ;;  %v5483_v26 = vld [vmem:[%s7076_s2 + $0x110] sm:$0xff]  }
 0x39e   : > { %4842 = vmatprep.subr.msk.bf16.mxu1 %vm316_vm7, %v1723_v32  ;;  %1586 = vmatprep.mubr.bf16.mxu1 %v5586_v0  ;;  %v2048_v32 = vrot.slane %v4865_v49, %v5721_v10  ;;  %v2037_v33 = vsel %vm2035_vm11, %v2034_v29, %v2032_v30 }
 0x39f   : > { %3722 = vmatprep.mubr.bf16.mxu0 %v5586_v0  ;;  %v1946_v37 = vpack.c.bf16 %v1939_v31, %v1939_v31 }
 0x3a0   : > { %v2052_v52 = vmul.f32 %v2048_v32, %v2037_v33 }
 0x3a1   : > { %v2144_v14 = vpop.permute.xlu0 %2143 }
 0x3a2   : > { %v2059_v39 = vpack.c.bf16 %v2052_v52, %v2052_v52  ;;  %v2149_v55 = vsel %vm2147_vm13, %v2146_v54, %v2144_v14 }
 0x3a3   : > { %v2164_v60 = vmul.f32 %v2160_v46, %v2149_v55 }
 0x3a4   : > { %4825 = vmatmul.mubr.msk.bf16.gmra.mrb[4].mxu1 %vm309_vm0, %v5461_v3  ;;  %v3985_v3 = vsel %vm316_vm7, %v3966_v27, 0  ;;  %v5482_v27 = vld [vmem:[%s7076_s2 + $0x220] sm:$0xff]  }
 0x3a5   : > { %5002 = vmatmul.mubr.msk.bf16.vlgmr.msra.gmra.mrb[0].mxu0 %vm309_vm0, %v5462_v25  ;;  %1688 = vmatprep.mubr.bf16.mxu1 %v5586_v0  ;;  %v5471_v25 = vld [vmem:[%s7076_s2 + $0xe0] sm:$0xff]  }
 0x3a6   : > { %3796 = vmatpush1.bf16.msra.mxu0 %v3790_v40  ;;  %3732 = vmatprep.mubr.bf16.mxu0 %v5586_v0  ;;  %v1965_v40 = vsel %vm316_vm7, %v1946_v37, 0 }
 0x3a7   : > { %5020 = vmatprep.subr.msk.bf16.mxu0 %vm316_vm7, %v3862_v41  ;;  %v4064_v41 = vmul.f32 %v4057_v36, %v6517_v48  ;;  %v2036_v48 = vsel %vm2035_vm11, %v2032_v30, %v2034_v29  ;;  %v5486_v29 = vld [vmem:[%s7076_s2 + $0x230] sm:$0xff]   ;;  %v5487_v30 = vld [vmem:[%s7076_s2 + $0x238] sm:$0xff]  }
 0x3ac   : > { %4834 = vmatmul.mubr.msk.bf16.vlgmr.msra.gmra.mrb[0].mxu1 %vm309_vm0, %v5463_v62  ;;  %v2044_v62 = vrot.slane %v4865_v49, %v5719_v9  ;;  %v5481_v9 = vld [vmem:[%s7076_s2 + $0x108] sm:$0xff]  }
 0x3ad   : > { %1747 = vmatpush1.bf16.msra.mxu1 %v1741_v50  ;;  %5003 = vmatmul.mubr.msk.bf16.gmra.mrb[4].mxu0 %vm309_vm0, %v5464_v43  ;;  %v4071_v43 = vpack.c.bf16 %v4064_v41, %v4064_v41  ;;  %v4170_v50 = vmul.f32 %v4166_v42, %v6349_v13  ;;  %v5484_v49 = vld [vmem:[%s7076_s2 + $0x228] sm:$0xff]  }
 0x3ae   : > { %4852 = vmatprep.subr.msk.bf16.mxu1 %vm316_vm7, %v1835_v45  ;;  %1698 = vmatprep.mubr.bf16.mxu1 %v5586_v0  ;;  %v5474_v45 = vld [vmem:[%s7076_s2 + $0x200] sm:$0xff]  }
 0x3af   : > { %3827 = vmatprep.mubr.bf16.mxu0 %v5586_v0  ;;  %v4090_v58 = vsel %vm316_vm7, %v4071_v43, 0 }
 0x3b4   : > { %4835 = vmatmul.mubr.msk.bf16.gmra.mrb[4].mxu1 %vm309_vm0, %v5465_v47  ;;  %v2051_v47 = vmul.f32 %v2044_v62, %v2036_v48 }
 0x3b5   : > { %5012 = vmatmul.mubr.msk.bf16.vlgmr.msra.gmra.mrb[0].mxu0 %vm309_vm0, %v5466_v59  ;;  %1778 = vmatprep.mubr.bf16.mxu1 %v5586_v0  ;;  %v4177_v59 = vpack.c.bf16 %v4170_v50, %v4170_v50 }
 0x3b6   : > { %3886 = vmatpush1.bf16.msra.mxu0 %v3880_v11  ;;  %3837 = vmatprep.mubr.bf16.mxu0 %v5586_v0  ;;  %v2058_v13 = vpack.c.bf16 %v2051_v47, %v2051_v47  ;;  %v4271_v11 = vrot.slane %v5053_v6, %v5721_v10  ;;  %v2148_v10 = vsel %vm2147_vm13, %v2144_v14, %v2146_v54 }
 0x3b7   : > { %5030 = vmatprep.subr.msk.bf16.mxu0 %vm316_vm7, %v3967_v7  ;;  %v2171_v7 = vpack.c.bf16 %v2164_v60, %v2164_v60  ;;  %v2163_v35 = vmul.f32 %v2156_v51, %v2148_v10 }
 0x3b8   : > { %v2077_v15 = vsel %vm316_vm7, %v2058_v13, 0  ;;  %v4275_v19 = vmul.f32 %v4271_v11, %v6568_v53  ;;  %v5479_v53 = vld [vmem:[%s7076_s2 + $0x100] sm:$0xff]  }
 0x3b9   : > { %v2170_v12 = vpack.c.bf16 %v2163_v35, %v2163_v35 }
 0x3bb   : > { %v2189_v4 = vsel %vm316_vm7, %v2170_v12, 0 }
 0x3bc   : > { %4843 = vmatmul.mubr.msk.bf16.vlgmr.msra.gmra.mrb[0].mxu1 %vm309_vm0, %v5467_v16  ;;  %v5477_v16 = vld [vmem:[%s7076_s2 + $0xf8] sm:$0xff]  }
 0x3bd   : > { %1859 = vmatpush1.bf16.msra.mxu1 %v1853_v18  ;;  %5013 = vmatmul.mubr.msk.bf16.gmra.mrb[4].mxu0 %vm309_vm0, %v5468_v34  ;;  %v4176_v34 = vpack.c.bf16 %v4169_v23, %v4169_v23 }
 0x3be   : > { %4862 = vmatprep.subr.msk.bf16.mxu1 %vm316_vm7, %v1947_v20  ;;  %1788 = vmatprep.mubr.bf16.mxu1 %v5586_v0  ;;  %v4282_v20 = vpack.c.bf16 %v4275_v19, %v4275_v19 }
 0x3bf   : > { %3917 = vmatprep.mubr.bf16.mxu0 %v5586_v0  ;;  %v4195_v18 = vsel %vm316_vm7, %v4176_v34, 0 }
 0x3c4   : > { %4844 = vmatmul.mubr.msk.bf16.gmra.mrb[4].mxu1 %vm309_vm0, %v5469_v5  ;;  %v4274_v5 = vmul.f32 %v4267_v2, %v6586_v61 }
 0x3c5   : > { %5021 = vmatmul.mubr.msk.bf16.vlgmr.msra.gmra.mrb[0].mxu0 %vm309_vm0, %v5470_v28  ;;  %1890 = vmatprep.mubr.bf16.mxu1 %v5586_v0  ;;  %v5485_v28 = vld [vmem:[%s7076_s2 + $0x118] sm:$0xff]  }
 0x3c6   : > { %3991 = vmatpush1.bf16.msra.mxu0 %v3985_v3  ;;  %3927 = vmatprep.mubr.bf16.mxu0 %v5586_v0  ;;  %v4281_v24 = vpack.c.bf16 %v4274_v5, %v4274_v5 }
 0x3c7   : > { %5040 = vmatprep.subr.msk.bf16.mxu0 %vm316_vm7, %v4072_v22 }
 0x3c8   : > { %v4300_v61 = vsel %vm316_vm7, %v4281_v24, 0 }
 0x3cc   : > { %4853 = vmatmul.mubr.msk.bf16.vlgmr.msra.gmra.mrb[0].mxu1 %vm309_vm0, %v5471_v25 }
 0x3cd   : > { %1971 = vmatpush1.bf16.msra.mxu1 %v1965_v40  ;;  %5022 = vmatmul.mubr.msk.bf16.gmra.mrb[4].mxu0 %vm309_vm0, %v5472_v17 }
 0x3ce   : > { %4872 = vmatprep.subr.msk.bf16.mxu1 %vm316_vm7, %v2059_v39  ;;  %1900 = vmatprep.mubr.bf16.mxu1 %v5586_v0 }
 0x3cf   : > { %4022 = vmatprep.mubr.bf16.mxu0 %v5586_v0 }
 0x3d4   : > { %4854 = vmatmul.mubr.msk.bf16.gmra.mrb[4].mxu1 %vm309_vm0, %v5473_v63 }
 0x3d5   : > { %5031 = vmatmul.mubr.msk.bf16.vlgmr.msra.gmra.mrb[0].mxu0 %vm309_vm0, %v5474_v45  ;;  %2002 = vmatprep.mubr.bf16.mxu1 %v5586_v0 }
 0x3d6   : > { %4096 = vmatpush1.bf16.msra.mxu0 %v4090_v58  ;;  %4032 = vmatprep.mubr.bf16.mxu0 %v5586_v0 }
 0x3d7   : > { %5050 = vmatprep.subr.msk.bf16.mxu0 %vm316_vm7, %v4177_v59 }
 0x3dc   : > { %4863 = vmatmul.mubr.msk.bf16.vlgmr.msra.gmra.mrb[0].mxu1 %vm309_vm0, %v5475_v1 }
 0x3dd   : > { %2083 = vmatpush1.bf16.msra.mxu1 %v2077_v15  ;;  %5032 = vmatmul.mubr.msk.bf16.gmra.mrb[4].mxu0 %vm309_vm0, %v5476_v56 }
 0x3de   : > { %4882 = vmatprep.subr.msk.bf16.mxu1 %vm316_vm7, %v2171_v7  ;;  %2012 = vmatprep.mubr.bf16.mxu1 %v5586_v0 }
 0x3df   : > { %4127 = vmatprep.mubr.bf16.mxu0 %v5586_v0 }
 0x3e4   : > { %4864 = vmatmul.mubr.msk.bf16.gmra.mrb[4].mxu1 %vm309_vm0, %v5477_v16 }
 0x3e5   : > { %5041 = vmatmul.mubr.msk.bf16.vlgmr.msra.gmra.mrb[0].mxu0 %vm309_vm0, %v5478_v38  ;;  %2114 = vmatprep.mubr.bf16.mxu1 %v5586_v0 }
 0x3e6   : > { %4201 = vmatpush1.bf16.msra.mxu0 %v4195_v18  ;;  %4137 = vmatprep.mubr.bf16.mxu0 %v5586_v0 }
 0x3e7   : > { %5060 = vmatprep.subr.msk.bf16.mxu0 %vm316_vm7, %v4282_v20 }
 0x3ec   : > { %4873 = vmatmul.mubr.msk.bf16.vlgmr.msra.gmra.mrb[0].mxu1 %vm309_vm0, %v5479_v53 }
 0x3ed   : > { %2195 = vmatpush1.bf16.msra.mxu1 %v2189_v4  ;;  %5042 = vmatmul.mubr.msk.bf16.gmra.mrb[4].mxu0 %vm309_vm0, %v5480_v21 }
 0x3ee   : > { %2124 = vmatprep.mubr.bf16.mxu1 %v5586_v0  ;;  %4232 = vmatprep.mubr.bf16.mxu0 %v5586_v0 }
 0x3f4   : > { %4874 = vmatmul.mubr.msk.bf16.gmra.mrb[4].mxu1 %vm309_vm0, %v5481_v9 }
 0x3f5   : > { %5051 = vmatmul.mubr.msk.bf16.vlgmr.msra.gmra.mrb[0].mxu0 %vm309_vm0, %v5482_v27  ;;  %2226 = vmatprep.mubr.bf16.mxu1 %v5586_v0 }
 0x3f6   : > { %4306 = vmatpush1.bf16.msra.mxu0 %v4300_v61  ;;  %4242 = vmatprep.mubr.bf16.mxu0 %v5586_v0 }
 0x3fc   : > { %4883 = vmatmul.mubr.msk.bf16.vlgmr.msra.gmra.mrb[0].mxu1 %vm309_vm0, %v5483_v26 }
 0x3fd   : > { %5052 = vmatmul.mubr.msk.bf16.gmra.mrb[4].mxu0 %vm309_vm0, %v5484_v49  ;;  %2236 = vmatprep.mubr.bf16.mxu1 %v5586_v0 }
 0x3fe   : > { %4337 = vmatprep.mubr.bf16.mxu0 %v5586_v0  ;;  %v4373_v3 = vpop.permute.xlu0 %4372  ;;  %v4378_v52 = vpop.permute.xlu1 %4377 }
 0x402   : > { %v4383_v10 = vpop.permute.xlu1 %4382  ;;  %v4388_v4 = vpop.permute.xlu0 %4387 }
 0x404   : > { %4884 = vmatmul.mubr.msk.bf16.gmra.mrb[4].mxu1 %vm309_vm0, %v5485_v28 }
 0x405   : > { %5061 = vmatmul.mubr.msk.bf16.vlgmr.msra.gmra.mrb[0].mxu0 %vm309_vm0, %v5486_v29 }
 0x406   : > { %4347 = vmatprep.mubr.bf16.mxu0 %v5586_v0 }
 0x40d   : > { %5062 = vmatmul.mubr.msk.bf16.gmra.mrb[4].mxu0 %vm309_vm0, %v5487_v30 }
 0x4cf   : > { %v2228_v31 = vpop.f32.mrb[0].mxu1 }
 0x4d0   : > { %v2230_v32 = vpop.f32.mrb[1].mxu1 }
 0x4d1   : > { %v2232_v22 = vpop.f32.mrb[2].mxu1 }
 0x4d2   : > { %v2234_v33 = vpop.f32.mrb[3].mxu1 }
 0x4d7   : > { %v2238_v37 = vpop.f32.mrb[4].mxu1 }
 0x4d8   : > { %v4339_v25 = vpop.f32.mrb[0].mxu0  ;;  %v2240_v36 = vpop.f32.mrb[5].mxu1 }
 0x4d9   : > { %v5070_v17 = vadd.f32 %v4339_v25, %v2228_v31  ;;  %v4341_v8 = vpop.f32.mrb[1].mxu0  ;;  %v2242_v39 = vpop.f32.mrb[6].mxu1 }
 0x4da   : > { %v5071_v40 = vadd.f32 %v4341_v8, %v2230_v32  ;;  %v4343_v0 = vpop.f32.mrb[2].mxu0  ;;  %v2244_v41 = vpop.f32.mrb[7].mxu1 }
 0x4db   : > { %v5072_v42 = vadd.f32 %v4343_v0, %v2232_v22  ;;  %v4390_v62 = vadd.f32 %v5070_v17, %v4373_v3  ;;  %v4345_v63 = vpop.f32.mrb[3].mxu0 }
 0x4dc   : > { %v4391_v43 = vadd.f32 %v5071_v40, %v4373_v3  ;;  %v5073_v48 = vadd.f32 %v4345_v63, %v2234_v33 }
 0x4dd   : > { %v6868_v44 = vmul.f32 0.70710677, %v4390_v62  ;;  %v6870_v45 = vadd.f32 %v5072_v42, %v4378_v52  ;;  %v6904_v31 = vmul.f32 0.5, %v4390_v62 }
 0x4de   : > { %v6872_v50 = vmul.f32 0.70710677, %v4391_v43  ;;  %v6874_v54 = vadd.f32 %v5073_v48, %v4378_v52  ;;  %v6906_v32 = vmul.f32 0.5, %v4391_v43 }
 0x4df   : > { %v4402_v14 = vand.u32 2147483647, %v6868_v44  ;;  %v6878_v47 = vmul.f32 0.70710677, %v6870_v45  ;;  %vm4440_vm7 = vcmp.ge.f32.partialorder %v6868_v44, 0.0 }
 0x4e0   : > { %v4403_v46 = vand.u32 2147483647, %v6872_v50  ;;  %v6882_v55 = vmul.f32 0.70710677, %v6874_v54  ;;  %v4349_v6 = vpop.f32.mrb[4].mxu0  ;;  %vm4441_vm0 = vcmp.ge.f32.partialorder %v6872_v50, 0.0 }
 0x4e1   : > { %v4404_v58 = vmul.f32 0.3275911, %v4402_v14  ;;  %v4460_v59 = vand.u32 2147483647, %v6878_v47  ;;  %v4428_v56 = vsub.f32 0.0, %v4402_v14  ;;  %v4351_v23 = vpop.f32.mrb[5].mxu0  ;;  %v5074_v35 = vadd.f32 %v4349_v6, %v2238_v37 }
 0x4e2   : > { %v4405_v13 = vmul.f32 0.3275911, %v4403_v46  ;;  %v4461_v60 = vand.u32 2147483647, %v6882_v55  ;;  %v4429_v15 = vsub.f32 0.0, %v4403_v46  ;;  %v4353_v16 = vpop.f32.mrb[6].mxu0  ;;  %v5075_v20 = vadd.f32 %v4351_v23, %v2240_v36 }
 0x4e3   : > { %v4406_v1 = vadd.f32 1.0, %v4404_v58  ;;  %v4462_v57 = vmul.f32 0.3275911, %v4460_v59  ;;  %v4355_v38 = vpop.f32.mrb[7].mxu0  ;;  %v4430_v34 = vmul.f32 %v4428_v56, %v4402_v14  ;;  %v5076_v12 = vadd.f32 %v4353_v16, %v2242_v39 }
 0x4e4   : > { %v4407_v7 = vadd.f32 1.0, %v4405_v13  ;;  %v4463_v11 = vmul.f32 0.3275911, %v4461_v60  ;;  %v4431_v18 = vmul.f32 %v4429_v15, %v4403_v46  ;;  %v5077_v53 = vadd.f32 %v4355_v38, %v2244_v41 }
 0x4e5   : > { %5488 = vrcp.f32 %v4406_v1  ;;  %v4464_v51 = vadd.f32 1.0, %v4462_v57  ;;  %v6886_v2 = vadd.f32 %v5074_v35, %v4383_v10  ;;  %v6888_v21 = vadd.f32 %v5075_v20, %v4383_v10 }
 0x4e6   : > { %5490 = vrcp.f32 %v4407_v7  ;;  %v4465_v19 = vadd.f32 1.0, %v4463_v11  ;;  %v6890_v5 = vadd.f32 %v5076_v12, %v4388_v4  ;;  %v6892_v9 = vadd.f32 %v5077_v53, %v4388_v4 }
 0x4e7   : > { %5492 = vrcp.f32 %v4464_v51  ;;  %v4432_v24 = vmul.f32 1.442695, %v4430_v34  ;;  %v4486_v27 = vsub.f32 0.0, %v4460_v59  ;;  %v6895_v61 = vmul.f32 0.70710677, %v6886_v2 }
 0x4e8   : > { %5494 = vrcp.f32 %v4465_v19  ;;  %v4434_v26 = vmul.f32 1.442695, %v4431_v18  ;;  %v4487_v49 = vsub.f32 0.0, %v4461_v60  ;;  %v6898_v28 = vmul.f32 0.70710677, %v6888_v21 }
 0x4e9   : > { %v4518_v29 = vand.u32 2147483647, %v6895_v61  ;;  %v6902_v30 = vmul.f32 0.70710677, %v6890_v5  ;;  %v6910_v33 = vmul.f32 0.70710677, %v6892_v9  ;;  %5496 = vpow2.f32 %v4432_v24 }
 0x4ea   : > { %v4519_v22 = vand.u32 2147483647, %v6898_v28  ;;  %v4488_v37 = vmul.f32 %v4486_v27, %v4460_v59  ;;  %5498 = vpow2.f32 %v4434_v26  ;;  %v4489_v8 = vmul.f32 %v4487_v49, %v4461_v60 }
 0x4eb   : > { %v4520_v52 = vmul.f32 0.3275911, %v4518_v29  ;;  %v4576_v25 = vand.u32 2147483647, %v6902_v30  ;;  %v4544_v41 = vsub.f32 0.0, %v4518_v29  ;;  %v6932_v53 = vmul.f32 0.5, %v6870_v45 }
 0x4ec   : > { %v4521_v39 = vmul.f32 0.3275911, %v4519_v22  ;;  %v4577_v42 = vand.u32 2147483647, %v6910_v33  ;;  %v4545_v43 = vsub.f32 0.0, %v4519_v22  ;;  %vm4498_vm11 = vcmp.ge.f32.partialorder %v6878_v47, 0.0 }
 0x4ed   : > { %v4522_v0 = vadd.f32 1.0, %v4520_v52  ;;  %v4578_v48 = vmul.f32 0.3275911, %v4576_v25  ;;  %v4490_v58 = vmul.f32 1.442695, %v4488_v37  ;;  %v4546_v7 = vmul.f32 %v4544_v41, %v4518_v29  ;;  %v4455_v47 = vld [vmem:[%s5699_s9 + $0x18] sm:$0xff] }
 0x4ee   : > { %v4523_v63 = vadd.f32 1.0, %v4521_v39  ;;  %v4579_v59 = vmul.f32 0.3275911, %v4577_v42  ;;  %v4492_v56 = vmul.f32 1.442695, %v4489_v8  ;;  %v4547_v51 = vmul.f32 %v4545_v43, %v4519_v22 }
 0x4ef   : > { %v6912_v3 = vpop.eup %5488  ;;  %5500 = vrcp.f32 %v4522_v0  ;;  %v4580_v15 = vadd.f32 1.0, %v4578_v48  ;;  %v4602_v38 = vsub.f32 0.0, %v4576_v25  ;;  %v4603_v20 = vsub.f32 0.0, %v4577_v42 }
 0x4f0   : > { %v6915_v36 = vpop.eup %5490  ;;  %v4410_v17 = vmul.f32 1.0614054, %v6912_v3  ;;  %5502 = vrcp.f32 %v4523_v63  ;;  %v4581_v16 = vadd.f32 1.0, %v4579_v59  ;;  %v4548_v29 = vmul.f32 1.442695, %v4546_v7 }
 0x4f1   : > { %v4411_v40 = vmul.f32 1.0614054, %v6915_v36  ;;  %v6920_v14 = vpop.eup %5492  ;;  %5504 = vrcp.f32 %v4580_v15  ;;  %v4604_v24 = vmul.f32 %v4602_v38, %v4576_v25  ;;  %v4605_v22 = vmul.f32 %v4603_v20, %v4577_v42 }
 0x4f2   : > { %v4412_v62 = vadd.f32 -1.4531521, %v4410_v17  ;;  %v6922_v13 = vpop.eup %5494  ;;  %v4468_v1 = vmul.f32 1.0614054, %v6920_v14  ;;  %5506 = vrcp.f32 %v4581_v16  ;;  %v4550_v17 = vmul.f32 1.442695, %v4547_v51 }
 0x4f3   : > { %v4413_v46 = vadd.f32 -1.4531521, %v4411_v40  ;;  %v4469_v6 = vmul.f32 1.0614054, %v6922_v13  ;;  %v5497_v18 = vpop.eup %5496  ;;  %5508 = vpow2.f32 %v4490_v58  ;;  %v4606_v40 = vmul.f32 1.442695, %v4604_v24 }
 0x4f4   : > { %v4414_v60 = vmul.f32 %v6912_v3, %v4412_v62  ;;  %v4470_v23 = vadd.f32 -1.4531521, %v4468_v1  ;;  %v5499_v27 = vpop.eup %5498  ;;  %5510 = vpow2.f32 %v4492_v56  ;;  %v6941_v25 = vmul.f32 0.5, %v6874_v54 }
 0x4f5   : > { %v4415_v57 = vmul.f32 %v6915_v36, %v4413_v46  ;;  %v4471_v10 = vadd.f32 -1.4531521, %v4469_v6  ;;  %v4608_v42 = vmul.f32 1.442695, %v4605_v22  ;;  %5512 = vpow2.f32 %v4548_v29 }
 0x4f6   : > { %v4416_v11 = vadd.f32 1.4214138, %v4414_v60  ;;  %v4472_v35 = vmul.f32 %v6920_v14, %v4470_v23  ;;  %5514 = vpow2.f32 %v4550_v17  ;;  %vm4499_vm14 = vcmp.ge.f32.partialorder %v6882_v55, 0.0 }
 0x4f7   : > { %v4417_v19 = vadd.f32 1.4214138, %v4415_v57  ;;  %v4473_v4 = vmul.f32 %v6922_v13, %v4471_v10  ;;  %5516 = vpow2.f32 %v4606_v40  ;;  %vm4556_vm15 = vcmp.ge.f32.partialorder %v6895_v61, 0.0  ;;  %v4513_v61 = vld [vmem:[%s5699_s9 + $0x28] sm:$0xff] }
 0x4f8   : > { %v4418_v34 = vmul.f32 %v6912_v3, %v4416_v11  ;;  %v4474_v49 = vadd.f32 1.4214138, %v4472_v35  ;;  %5518 = vpow2.f32 %v4608_v42  ;;  %vm4557_vm12 = vcmp.ge.f32.partialorder %v6898_v28, 0.0 }
 0x4f9   : > { %v4419_v12 = vmul.f32 %v6915_v36, %v4417_v19  ;;  %v4475_v52 = vadd.f32 1.4214138, %v4473_v4  ;;  %v6937_v45 = vpop.eup %5500  ;;  %vm4614_vm5 = vcmp.ge.f32.partialorder %v6902_v30, 0.0  ;;  %vm4615_vm9 = vcmp.ge.f32.partialorder %v6910_v33, 0.0 }
 0x4fa   : > { %v4420_v26 = vadd.f32 -0.28449672, %v4418_v34  ;;  %v4476_v39 = vmul.f32 %v6920_v14, %v4474_v49  ;;  %v6944_v62 = vpop.eup %5502  ;;  %v4526_v48 = vmul.f32 1.0614054, %v6937_v45 }
 0x4fb   : > { %v4421_v37 = vadd.f32 -0.28449672, %v4419_v12  ;;  %v4477_v41 = vmul.f32 %v6922_v13, %v4475_v52  ;;  %v4527_v59 = vmul.f32 1.0614054, %v6944_v62  ;;  %v6952_v56 = vpop.eup %5504 }
 0x4fc   : > { %v4422_v8 = vmul.f32 %v6912_v3, %v4420_v26  ;;  %v4478_v43 = vadd.f32 -0.28449672, %v4476_v39  ;;  %v4528_v1 = vadd.f32 -1.4531521, %v4526_v48  ;;  %v6956_v15 = vpop.eup %5506  ;;  %v4584_v51 = vmul.f32 1.0614054, %v6952_v56 }
 0x4fd   : > { %v4423_v0 = vmul.f32 %v6915_v36, %v4421_v37  ;;  %v4479_v58 = vadd.f32 -0.28449672, %v4477_v41  ;;  %v4529_v7 = vadd.f32 -1.4531521, %v4527_v59 }
 0x4fe   : > { %v4424_v63 = vadd.f32 0.2548296, %v4422_v8  ;;  %v4480_v60 = vmul.f32 %v6920_v14, %v4478_v43  ;;  %v4586_v20 = vadd.f32 -1.4531521, %v4584_v51 }
 0x4ff   : > { %v4425_v46 = vadd.f32 0.2548296, %v4423_v0  ;;  %v4481_v6 = vmul.f32 %v6922_v13, %v4479_v58  ;;  %v4531_v10 = vmul.f32 %v6944_v62, %v4529_v7 }
 0x500   : > { %v4426_v54 = vmul.f32 %v6912_v3, %v4424_v63  ;;  %v4482_v23 = vadd.f32 0.2548296, %v4480_v60  ;;  %v4530_v3 = vmul.f32 %v6937_v45, %v4528_v1  ;;  %v4588_v37 = vmul.f32 %v6952_v56, %v4586_v20 }
 0x501   : > { %v4427_v57 = vmul.f32 %v6915_v36, %v4425_v46  ;;  %v4483_v19 = vadd.f32 0.2548296, %v4481_v6  ;;  %v4585_v36 = vmul.f32 1.0614054, %v6956_v15  ;;  %v4533_v24 = vadd.f32 1.4214138, %v4531_v10 }
 0x502   : > { %v4436_v11 = vmul.f32 %v5497_v18, %v4426_v54  ;;  %v4484_v34 = vmul.f32 %v6920_v14, %v4482_v23  ;;  %v4532_v35 = vadd.f32 1.4214138, %v4530_v3  ;;  %v5509_v18 = vpop.eup %5508  ;;  %v4590_v41 = vadd.f32 1.4214138, %v4588_v37 }
 0x503   : > { %v4437_v16 = vmul.f32 %v5499_v27, %v4427_v57  ;;  %v4485_v4 = vmul.f32 %v6922_v13, %v4483_v19  ;;  %v4587_v27 = vadd.f32 -1.4531521, %v4585_v36  ;;  %v5511_v26 = vpop.eup %5510  ;;  %v4535_v17 = vmul.f32 %v6944_v62, %v4533_v24 }
 0x504   : > { %v4438_v38 = vsub.f32 1.0, %v4436_v11  ;;  %v4494_v29 = vmul.f32 %v5509_v18, %v4484_v34  ;;  %v4534_v22 = vmul.f32 %v6937_v45, %v4532_v35  ;;  %v5513_v39 = vpop.eup %5512  ;;  %v4592_v50 = vmul.f32 %v6952_v56, %v4590_v41  ;;  %v4454_v35 = vld [vmem:[%s5699_s9 + $0x10] sm:$0xff] }
 0x505   : > { %v4439_v12 = vsub.f32 1.0, %v4437_v16  ;;  %v4495_v52 = vmul.f32 %v5511_v26, %v4485_v4  ;;  %v4589_v8 = vmul.f32 %v6956_v15, %v4587_v27  ;;  %v5515_v42 = vpop.eup %5514  ;;  %v4537_v46 = vadd.f32 -0.28449672, %v4535_v17  ;;  %v5520_v16 = vld [vmem:[%s5699_s9] sm:$0xff] }
 0x506   : > { %v4442_v49 = vsub.f32 0.0, %v4438_v38  ;;  %v4496_v40 = vsub.f32 1.0, %v4494_v29  ;;  %v4536_v0 = vadd.f32 -0.28449672, %v4534_v22  ;;  %v5517_v58 = vpop.eup %5516  ;;  %v4594_v18 = vadd.f32 -0.28449672, %v4592_v50 }
 0x507   : > { %v4443_v14 = vsub.f32 0.0, %v4439_v12  ;;  %v4497_v48 = vsub.f32 1.0, %v4495_v52  ;;  %v4591_v44 = vadd.f32 1.4214138, %v4589_v8  ;;  %v5519_v1 = vpop.eup %5518  ;;  %v4539_v7 = vmul.f32 %v6944_v62, %v4537_v46 }
 0x508   : > { %v4444_v13 = vsel %vm4440_vm7, %v4438_v38, %v4442_v49  ;;  %v4500_v54 = vsub.f32 0.0, %v4496_v40  ;;  %v4538_v60 = vmul.f32 %v6937_v45, %v4536_v0  ;;  %v5521_v38 = vld [vmem:[%s5699_s9 + $0x8] sm:$0xff] }
 0x509   : > { %v4445_v63 = vsel %vm4441_vm0, %v4439_v12, %v4443_v14  ;;  %v4446_v43 = vadd.f32 1.0, %v4444_v13  ;;  %v4501_v6 = vsub.f32 0.0, %v4497_v48  ;;  %v4593_v51 = vmul.f32 %v6956_v15, %v4591_v44 }
 0x50a   : > { %v4447_v59 = vadd.f32 1.0, %v4445_v63  ;;  %v4502_v23 = vsel %vm4498_vm11, %v4496_v40, %v4500_v54  ;;  %v4540_v3 = vadd.f32 0.2548296, %v4538_v60  ;;  %v4541_v36 = vadd.f32 0.2548296, %v4539_v7  ;;  %v4512_v63 = vld [vmem:[%s5699_s9 + $0x20] sm:$0xff] }
 0x50b   : > { %v4448_v57 = vmul.f32 %v4446_v43, %v6904_v31  ;;  %v4503_v10 = vsel %vm4499_vm14, %v4497_v48, %v4501_v6  ;;  %v4504_v31 = vadd.f32 1.0, %v4502_v23  ;;  %v4595_v4 = vadd.f32 -0.28449672, %v4593_v51  ;;  %v4571_v7 = vld [vmem:[%s5699_s9 + $0x38] sm:$0xff] }
 0x50c   : > { %v4449_v11 = vmul.f32 %v4447_v59, %v6906_v32  ;;  %v4505_v20 = vadd.f32 1.0, %v4503_v10  ;;  %v4542_v32 = vmul.f32 %v6937_v45, %v4540_v3  ;;  %v4543_v55 = vmul.f32 %v6944_v62, %v4541_v36 }
 0x50d   : > { %v4450_v19 = vmul.f32 %v5520_v16, %v4448_v57  ;;  %v4506_v12 = vmul.f32 %v4504_v31, %v6932_v53  ;;  %v4596_v45 = vmul.f32 %v6952_v56, %v4594_v18  ;;  %v4597_v29 = vmul.f32 %v6956_v15, %v4595_v4  ;;  %v4570_v57 = vld [vmem:[%s5699_s9 + $0x30] sm:$0xff]  ;;  %s5522_s9 = scalar_lea.vmem %s7026_s6, 1024 }
 0x50e   : > { %v4451_v34 = vmul.f32 %v5521_v38, %v4449_v11  ;;  %v4507_v24 = vmul.f32 %v4505_v20, %v6941_v25  ;;  %v4552_v27 = vmul.f32 %v5513_v39, %v4542_v32  ;;  %v4553_v49 = vmul.f32 %v5515_v42, %v4543_v55  ;;  %p5523_p11 = scmp.ne.s32.totalorder %s7026_s6, %s5522_s9  ;;  %p5530_p1 = scmp.lt.s32.totalorder %s5528_s30, %s5522_s9 }
 0x50f   : > { %4452 = vst [vmem:[%s6991_s8] sm:$0xff] %v4450_v19  ;;  %v4508_v26 = vmul.f32 %v4506_v12, %v4454_v35  ;;  %v4598_v14 = vadd.f32 0.2548296, %v4596_v45  ;;  %v4599_v52 = vadd.f32 0.2548296, %v4597_v29  ;;  %v4514_v40 = vmul.f32 0.5, %v6886_v2 }
 0x510   : > { %4453 = vst [vmem:[%s6991_s8 + $0x8] sm:$0xff] %v4451_v34  ;;  %v4509_v22 = vmul.f32 %v4507_v24, %v4455_v47  ;;  %v4554_v37 = vsub.f32 1.0, %v4552_v27  ;;  %v4555_v53 = vsub.f32 1.0, %v4553_v49  ;;  %v4515_v43 = vmul.f32 0.5, %v6888_v21  ;;  %p5524_p12 = pnand %p5523_p11, %p5680_p5  ;;  %p5531_p2 = por %p5530_p1, %p5529_p0 }
 0x511   : > { %4510 = vst [vmem:[%s6991_s8 + $0x10] sm:$0xff] %v4508_v26  ;;  %v4600_v17 = vmul.f32 %v6952_v56, %v4598_v14  ;;  %v4601_v8 = vmul.f32 %v6956_v15, %v4599_v52  ;;  %v4572_v60 = vmul.f32 0.5, %v6890_v5  ;;  %v4573_v6 = vmul.f32 0.5, %v6892_v9 }
 0x512   : > { %4511 = vst [vmem:[%s6991_s8 + $0x18] sm:$0xff] %v4509_v22  ;;  %v4558_v62 = vsub.f32 0.0, %v4554_v37  ;;  %v4559_v25 = vsub.f32 0.0, %v4555_v53  ;;  %p5525_p13 = pneg %p5524_p12 }
 0x513   : > { %v4610_v13 = vmul.f32 %v5517_v58, %v4600_v17  ;;  %v4611_v42 = vmul.f32 %v5519_v1, %v4601_v8 }
 0x514   : > { %v4560_v39 = vsel %vm4556_vm15, %v4554_v37, %v4558_v62  ;;  %v4561_v0 = vsel %vm4557_vm12, %v4555_v53, %v4559_v25  ;;  %p5532_p3 = pnand %p5531_p2, %p5525_p13 }
 0x515   : > { %v4562_v41 = vadd.f32 1.0, %v4560_v39  ;;  %v4563_v48 = vadd.f32 1.0, %v4561_v0  ;;  %v4612_v56 = vsub.f32 1.0, %v4610_v13  ;;  %v4613_v15 = vsub.f32 1.0, %v4611_v42 }
 0x517   : > { %v4564_v46 = vmul.f32 %v4562_v41, %v4514_v40  ;;  %v4565_v59 = vmul.f32 %v4563_v48, %v4515_v43  ;;  %v4616_v28 = vsub.f32 0.0, %v4612_v56  ;;  %v4617_v2 = vsub.f32 0.0, %v4613_v15 }
 0x519   : > { %v4566_v58 = vmul.f32 %v4564_v46, %v4512_v63  ;;  %v4567_v54 = vmul.f32 %v4565_v59, %v4513_v61  ;;  %v4618_v21 = vsel %vm4614_vm5, %v4612_v56, %v4616_v28  ;;  %v4619_v44 = vsel %vm4615_vm9, %v4613_v15, %v4617_v2 }
 0x51a   : > { %v4620_v1 = vadd.f32 1.0, %v4618_v21  ;;  %v4621_v30 = vadd.f32 1.0, %v4619_v44 }
 0x51b   : > { %4568 = vst [vmem:[%s6991_s8 + $0x20] sm:$0xff] %v4566_v58  ;;  %4569 = vst [vmem:[%s6991_s8 + $0x28] sm:$0xff] %v4567_v54 }
 0x51c   : > { %v4622_v50 = vmul.f32 %v4620_v1, %v4572_v60  ;;  %v4623_v33 = vmul.f32 %v4621_v30, %v4573_v6 }
 0x51e   : > { %v4624_v11 = vmul.f32 %v4622_v50, %v4570_v57  ;;  %v4625_v5 = vmul.f32 %v4623_v33, %v4571_v7 }
 0x520   : > { %4626 = vst [vmem:[%s6991_s8 + $0x30] sm:$0xff] %v4624_v11  ;;  %4627 = vst [vmem:[%s6991_s8 + $0x38] sm:$0xff] %v4625_v5 }
 0x521   : > { %5535 = shalt.err (!%p5532_p3)
}
 0x522   : > { %s5536_s23 = scalar_lea.hbm %s7024_s26, 1024  ;;  %s5540_s25 = scalar_lea.hbm %s7079_s5, 2048 }
 0x523   : > { %p5537_p4 = scmp.ne.s32.totalorder %s7024_s26, %s5536_s23  ;;  %p5541_p9 = scmp.lt.u32.totalorder %s7024_s26, %s7079_s5 }
 0x524   : > { %p5542_p10 = scmp.lt.u32.totalorder %s5540_s25, %s5536_s23  ;;  %p5544_p12 = scmp.lt.u32.totalorder %s5536_s23, %s7024_s26 }
 0x525   : > { %p5538_p7 = pnand %p5537_p4, %p5680_p5 }
 0x526   : > { %p5543_p11 = por %p5542_p10, %p5541_p9 }
 0x527   : > { %p5539_p8 = pneg %p5538_p7 }
 0x528   : > { %p5545_p13 = por %p5544_p12, %p5543_p11 }
 0x52a   : > { %p5546_p0 = pnand %p5545_p13, %p5539_p8 }
 0x52c   : > { %5549 = shalt.err (!%p5546_p0)
}
 0x52d   : > { %s5611_s11 = smov 256  }
 0x52e   : > { %5350 = dma.vmem_to_hbm [thread:$0]  (%p5680_p5), %s7026_s6, 1024, %s7024_s26, %s7032_s22, %s5611_s11, %s5611_s11, %s5592_s17  }
 0x52f PF: > { %p5356_p1 = scmp.ge.s32.totalorder %s5584_s21, 2  ;;  %s4657_s12 = sand.u32 1, %s5572_s18  }
 0x530   : > { %s4658_s13 = scalar_lea.sflag [#allocation3], %s4657_s12 }
 0x531   : > { %p5353_p2 = pnand %p5356_p1, %p5684_p6 }
 0x533   : > { %5567 = dma.done.wait (!%p5353_p2), %s4658_s13, 1024  }
 0x534   : > { %5569 = vsyncadd (!%p5353_p2), %s4658_s13, 4294966272  ;;  %p15_p3 = scmp.ge.s32.totalorder %s5667_s24, 4   ;;  %s7111_s18 = smov %s5576_s19 }
 0x535   : > { %s7112_s19 = smov %s5580_s20  ;;  %s7113_s20 = smov %s5678_s27 }
 0x536   : > { %s7114_s21 = smov %s5667_s24  ;;  %17 = sbr.rel (!%p15_p3) target bundleno = 3 (0x3), region = 142 }
 0x53d   :  { %4663 = vsyncpa [#allocation3], 1 }
 0x53e   :  { %4665 = vsyncpa [#allocation3 + $0x1], 1 }

</bundles_post_ra>
